<compile_context>
chip_gen: v6e
topology: v6e:2x2x1
jax: 0.10.0
libtpu: 0.0.40
codegen_flags: <defaults>
</compile_context>

<pallas_src>
import jax
import jax.numpy as jnp
from jax.experimental import pallas as pl
from jax.experimental.pallas import tpu as pltpu


def _sbert_head_kernel(u_enc_ref, v_enc_ref, u_len_ref, v_len_ref,
                       w_ref, b_ref, o_ref, u_sum_ref, v_sum_ref):
    """Grid step (i, k): pair-tile i (parallel), seq-tile k (reduction).

    u_enc/v_enc : (TB, TS, H)  encodings for the u / v half of the batch
    u_len/v_len : (TB, 1) int32 valid-token counts (prefix masks rebuilt here)
    w           : (4, H, OUT_P) Linear(4H, out) weight split into K=H chunks
    b           : (1, OUT_P)
    o           : (TB, OUT_P)
    u_sum/v_sum : (TB, H) f32 VMEM accumulators persisting across the seq axis
    """
    k = pl.program_id(1)
    tb, ts, _ = u_enc_ref.shape

    @pl.when(k == 0)
    def _init():
        u_sum_ref[...] = jnp.zeros_like(u_sum_ref)
        v_sum_ref[...] = jnp.zeros_like(v_sum_ref)

    # Rebuild the prefix mask in-kernel (no mask HBM stream): token position
    # within this seq tile vs. remaining valid tokens for each sentence.
    pos = jax.lax.broadcasted_iota(jnp.int32, (tb, ts, 1), 1)        # (TB, TS, 1)
    base = k * ts
    mask_u = pos < (u_len_ref[...][:, None, :] - base)               # (TB, TS, 1) bool
    mask_v = pos < (v_len_ref[...][:, None, :] - base)

    # Select in the encodings' native dtype (bf16 on v6e/v7x); widen to f32
    # only at the accumulate.  (On v5e Mosaic widens anyway — still correct.)
    u_enc = u_enc_ref[...]                                           # (TB, TS, H)
    v_enc = v_enc_ref[...]
    u_sum_ref[...] += jnp.sum(jnp.where(mask_u, u_enc, 0).astype(jnp.float32), axis=1)
    v_sum_ref[...] += jnp.sum(jnp.where(mask_v, v_enc, 0).astype(jnp.float32), axis=1)

    @pl.when(k == pl.num_programs(1) - 1)
    def _finalize():
        # Exact divide: runs once per pair tile, fully hidden under the matmuls.
        cnt_u = jnp.maximum(u_len_ref[...].astype(jnp.float32), 1.0)  # (TB, 1)
        cnt_v = jnp.maximum(v_len_ref[...].astype(jnp.float32), 1.0)
        u = u_sum_ref[...] / cnt_u                                    # (TB, H) pooled
        v = v_sum_ref[...] / cnt_v
        wdt = w_ref.dtype
        # [u, v, |u-v|, u*v] @ W == u@W0 + v@W1 + |u-v|@W2 + (u*v)@W3 (no concat)
        logits = jnp.dot(u.astype(wdt), w_ref[0], preferred_element_type=jnp.float32)
        logits += jnp.dot(v.astype(wdt), w_ref[1], preferred_element_type=jnp.float32)
        logits += jnp.dot(jnp.abs(u - v).astype(wdt), w_ref[2],
                          preferred_element_type=jnp.float32)
        logits += jnp.dot((u * v).astype(wdt), w_ref[3],
                          preferred_element_type=jnp.float32)
        o_ref[...] = logits + b_ref[...]                              # (1, OUT_P) bcast


def _tpu_generation_defaults():
    """Best-effort (encoding-block budget bytes, scoped vmem_limit_bytes)."""
    kind = ""
    try:
        kind = jax.devices()[0].device_kind.lower()
    except Exception:
        pass
    if "v7" in kind or "7x" in kind:
        # 64 MiB VMEM per TensorCore: keep blocks ~2 MiB, scoped limit <= 48 MiB.
        return 2 * 1024 * 1024, 48 * 1024 * 1024
    if "v6" in kind:
        # 128 MiB VMEM, 1.4 TB/s HBM: 4 MiB blocks amortize per-step overhead.
        return 4 * 1024 * 1024, 96 * 1024 * 1024
    if "v5" in kind:
        return 4 * 1024 * 1024, 64 * 1024 * 1024
    return 3 * 1024 * 1024, 48 * 1024 * 1024


def _pick_pair_tile(n_pairs):
    """Pair-axis tile: multiple of 8 dividing n_pairs, preferring >=2 tiles so
    the 'parallel' axis can shard across v7x's two TensorCores."""
    if n_pairs % 8 != 0:
        return n_pairs
    for tb in (64, 32, 16, 8):
        if n_pairs % tb == 0 and n_pairs // tb >= 2:
            return tb
    return 8


def _pick_seq_tile(seq_len, row_bytes, budget_bytes, min_rows):
    """Largest multiple of min_rows dividing seq_len whose (TB, TS, H) block
    fits budget_bytes; falls back to the full axis for short sequences."""
    if seq_len * row_bytes <= budget_bytes:
        return seq_len
    ts = (budget_bytes // row_bytes) // min_rows * min_rows
    while ts >= min_rows:
        if seq_len % ts == 0:
            return ts
        ts -= min_rows
    if seq_len * row_bytes > 4 * budget_bytes:
        raise ValueError(
            f"no seq tile aligned to {min_rows} divides seq_len={seq_len} within the "
            f"VMEM budget ({budget_bytes} B); pass an explicit seq_tile= or pad S")
    return seq_len


def sbert_semantic_similarity_head(encodings, attention_mask, weight, bias, *,
                                   pair_tile=None, seq_tile=None,
                                   weight_dtype=jnp.bfloat16):
    """encodings: (B, S, H) float (bf16 or f32), attention_mask: (B, S) prefix
    (padding) mask as produced by the BERT tokenizer, weight: (4H, out_dim)
    (transposed vs. torch Linear), bias: (out_dim,).  Sentences [0:B//2] are
    "u", [B//2:B] are "v" (matches the PyTorch reshape(fusion_n, n_samples, H)).
    Returns logits (B//2, out_dim) f32."""
    B, S, H = encodings.shape
    assert B % 2 == 0, "fusion_n = 2 requires an even number of sentences"
    n_pairs = B // 2
    four_h, out_dim = weight.shape
    assert four_h == 4 * H

    # Per-sentence valid-token counts: the only mask-derived data the kernel
    # needs (prefix masks are rebuilt in-kernel from these counts).
    lengths = jnp.sum(attention_mask.astype(jnp.int32), axis=1).astype(jnp.int32)
    u_len = lengths[:n_pairs].reshape(n_pairs, 1)
    v_len = lengths[n_pairs:].reshape(n_pairs, 1)

    TB = pair_tile if pair_tile is not None else _pick_pair_tile(n_pairs)
    assert n_pairs % TB == 0 and (TB % 8 == 0 or TB == n_pairs)

    itemsize = jnp.dtype(encodings.dtype).itemsize
    min_rows = 16 if itemsize < 4 else 8           # bf16 packs 16 rows per sublane tile
    block_budget, vmem_limit = _tpu_generation_defaults()
    row_bytes = TB * H * itemsize
    TS = seq_tile if seq_tile is not None else _pick_seq_tile(S, row_bytes,
                                                              block_budget, min_rows)
    assert S % TS == 0 and (TS % min_rows == 0 or TS == S)

    n_pair_tiles = n_pairs // TB
    n_seq_tiles = S // TS

    # Lane-dense output: zero-pad out_dim up to a multiple of 128, slice after.
    out_p = max(128, ((out_dim + 127) // 128) * 128)
    w4 = weight.reshape(4, H, out_dim).astype(weight_dtype)        # resident, bf16
    w4 = jnp.pad(w4, ((0, 0), (0, 0), (0, out_p - out_dim)))
    b_pad = jnp.pad(bias.astype(jnp.float32), (0, out_p - out_dim)).reshape(1, out_p)

    enc_spec_u = pl.BlockSpec((TB, TS, H), lambda i, k: (i, k, 0))
    enc_spec_v = pl.BlockSpec((TB, TS, H), lambda i, k: (i + n_pair_tiles, k, 0))
    len_spec = pl.BlockSpec((TB, 1), lambda i, k: (i, 0))          # fetched once/pair tile
    w_spec = pl.BlockSpec((4, H, out_p), lambda i, k: (0, 0, 0))   # resident weights
    b_spec = pl.BlockSpec((1, out_p), lambda i, k: (0, 0))
    out_spec = pl.BlockSpec((TB, out_p), lambda i, k: (i, 0))

    logits = pl.pallas_call(
        _sbert_head_kernel,
        out_shape=jax.ShapeDtypeStruct((n_pairs, out_p), jnp.float32),
        grid_spec=pltpu.PrefetchScalarGridSpec(
            num_scalar_prefetch=0,
            grid=(n_pair_tiles, n_seq_tiles),
            in_specs=[enc_spec_u, enc_spec_v, len_spec, len_spec, w_spec, b_spec],
            out_specs=out_spec,
            scratch_shapes=[pltpu.VMEM((TB, H), jnp.float32),
                            pltpu.VMEM((TB, H), jnp.float32)]),
        compiler_params=pltpu.CompilerParams(
            dimension_semantics=("parallel", "arbitrary"),
            vmem_limit_bytes=vmem_limit),
    )(encodings, encodings, u_len, v_len, w4, b_pad)

    return logits[:, :out_dim]


def _reference(encodings, attention_mask, weight, bias):
    """Pure-JAX reference of the same math (sanity check)."""
    enc = encodings.astype(jnp.float32)
    msk = attention_mask.astype(jnp.float32)
    masked = enc * msk[:, :, None]
    denom = jnp.maximum(msk.sum(axis=1, keepdims=True), 1.0)
    pooled = masked.sum(axis=1) / denom
    n = pooled.shape[0] // 2
    u, v = pooled[:n], pooled[n:]
    feats = jnp.concatenate([u, v, jnp.abs(u - v), u * v], axis=-1)
    return feats @ weight.astype(jnp.float32) + bias.astype(jnp.float32)


if __name__ == "__main__":
    # Scaled-down stand-in for real SBERT shapes: 32 sentences = 16 pairs,
    # seq 256, hidden 128 (real BERT: 768), out_dim 8.
    B, S, H, OUT = 32, 256, 128, 8
    key = jax.random.PRNGKey(0)
    k_enc, k_w, k_b = jax.random.split(key, 3)

    # TODO(synk): the real BERT backbone / tokenizer / sub-word merge bookkeeping
    # are external pretrained components; synthetic bf16 encodings stand in here.
    encodings = jax.random.normal(k_enc, (B, S, H), dtype=jnp.float32).astype(jnp.bfloat16)
    lengths = 32 + (jnp.arange(B) * 29) % (S - 32)                   # prefix masks
    attention_mask = (jnp.arange(S)[None, :] < lengths[:, None]).astype(jnp.float32)

    # Linear(4H -> out_dim) parameters, stored as (4H, out_dim).
    weight = (jax.random.normal(k_w, (4 * H, OUT), dtype=jnp.float32)
              * (1.0 / jnp.sqrt(4.0 * H)))
    bias = jax.random.normal(k_b, (OUT,), dtype=jnp.float32) * 0.01

    # Force a 2x2 grid (2 pair tiles x 2 seq tiles) to exercise the accumulator
    # init / finalize path, the u/v half index maps, and the in-kernel mask.
    logits = sbert_semantic_similarity_head(encodings, attention_mask, weight, bias,
                                            pair_tile=8, seq_tile=128)
    logits = jax.block_until_ready(logits)

    ref = _reference(encodings, attention_mask, weight, bias)
    assert logits.shape == (B // 2, OUT)
    # bf16 encodings + bf16 weights in the finalize dots -> loosened tolerance.
    assert jnp.allclose(logits, ref, atol=2e-2, rtol=2e-2), "mismatch vs reference"

    print("KERNEL_OK")
</pallas_src>

<mosaic_0001>
module attributes {stable_mosaic.version = 11 : i64} {
  func.func @_sbert_head_kernel(%arg0: i32, %arg1: i32, %arg2: memref<8x128x128xbf16, #tpu.memory_space<vmem>>, %arg3: memref<8x128x128xbf16, #tpu.memory_space<vmem>>, %arg4: memref<8x1xi32, #tpu.memory_space<vmem>>, %arg5: memref<8x1xi32, #tpu.memory_space<vmem>>, %arg6: memref<4x128x128xbf16, #tpu.memory_space<vmem>>, %arg7: memref<1x128xf32, #tpu.memory_space<vmem>>, %arg8: memref<8x128xf32, #tpu.memory_space<vmem>>, %arg9: memref<8x128xf32, #tpu.memory_space<vmem>>, %arg10: memref<8x128xf32, #tpu.memory_space<vmem>>) attributes {dimension_semantics = [#tpu.dimension_semantics<parallel>, #tpu.dimension_semantics<arbitrary>], iteration_bounds = array<i64: 2, 2>, scalar_prefetch = 0 : i64, scratch_operands = 2 : i64, tpu.core_type = #tpu.core_type<tc>, window_params = [{transform_indices = @transform_0, window_bounds = array<i64: 8, 128, 128>}, {transform_indices = @transform_1, window_bounds = array<i64: 8, 128, 128>}, {transform_indices = @transform_2, window_bounds = array<i64: 8, 1>}, {transform_indices = @transform_3, window_bounds = array<i64: 8, 1>}, {pipeline_mode = #tpu.pipeline_mode<synchronous>, transform_indices = @transform_4, window_bounds = array<i64: 4, 128, 128>}, {pipeline_mode = #tpu.pipeline_mode<synchronous>, transform_indices = @transform_5, window_bounds = array<i64: 1, 128>}, {transform_indices = @transform_6, window_bounds = array<i64: 8, 128>}]} {
    %c0_i32 = arith.constant 0 : i32
    %0 = arith.cmpi eq, %arg1, %c0_i32 : i32
    %1 = arith.extui %0 : i1 to i32
    %c0_i32_0 = arith.constant 0 : i32
    %2 = arith.cmpi ne, %1, %c0_i32_0 : i32
    scf.if %2 {
      %cst_22 = arith.constant 0.000000e+00 : f32
      %42 = vector.broadcast %cst_22 : f32 to vector<8x128xf32>
      %c0_23 = arith.constant 0 : index
      %c0_24 = arith.constant 0 : index
      %43 = vector.load %arg9[%c0_23, %c0_24] : memref<8x128xf32, #tpu.memory_space<vmem>>, vector<8x128xf32>
      tpu.vector_store %arg9[%c0_23, %c0_24], %42 {strides = array<i32>} : memref<8x128xf32, #tpu.memory_space<vmem>>, vector<8x128xf32>,
      %cst_25 = arith.constant 0.000000e+00 : f32
      %44 = vector.broadcast %cst_25 : f32 to vector<8x128xf32>
      %c0_26 = arith.constant 0 : index
      %c0_27 = arith.constant 0 : index
      %45 = vector.load %arg10[%c0_26, %c0_27] : memref<8x128xf32, #tpu.memory_space<vmem>>, vector<8x128xf32>
      tpu.vector_store %arg10[%c0_26, %c0_27], %44 {strides = array<i32>} : memref<8x128xf32, #tpu.memory_space<vmem>>, vector<8x128xf32>,
    } else {
    }
    %3 = tpu.iota {dimensions = array<i32: 1>} : vector<8x128x1xi32>
    %c128_i32 = arith.constant 128 : i32
    %4 = arith.muli %arg1, %c128_i32 : i32
    %c0 = arith.constant 0 : index
    %c0_1 = arith.constant 0 : index
    %5 = vector.load %arg4[%c0, %c0_1] : memref<8x1xi32, #tpu.memory_space<vmem>>, vector<8x1xi32>
    %6 = vector.shape_cast %5 : vector<8x1xi32> to vector<8x1x1xi32>
    %7 = vector.broadcast %4 : i32 to vector<8x1x1xi32>
    %8 = arith.subi %6, %7 : vector<8x1x1xi32>
    %9 = vector.broadcast %8 : vector<8x1x1xi32> to vector<8x128x1xi32>
    %10 = arith.cmpi slt, %3, %9 : vector<8x128x1xi32>
    %c0_2 = arith.constant 0 : index
    %c0_3 = arith.constant 0 : index
    %11 = vector.load %arg5[%c0_2, %c0_3] : memref<8x1xi32, #tpu.memory_space<vmem>>, vector<8x1xi32>
    %12 = vector.shape_cast %11 : vector<8x1xi32> to vector<8x1x1xi32>
    %13 = vector.broadcast %4 : i32 to vector<8x1x1xi32>
    %14 = arith.subi %12, %13 : vector<8x1x1xi32>
    %15 = vector.broadcast %14 : vector<8x1x1xi32> to vector<8x128x1xi32>
    %16 = arith.cmpi slt, %3, %15 : vector<8x128x1xi32>
    %c0_4 = arith.constant 0 : index
    %c0_5 = arith.constant 0 : index
    %c0_6 = arith.constant 0 : index
    %17 = vector.load %arg2[%c0_4, %c0_5, %c0_6] : memref<8x128x128xbf16, #tpu.memory_space<vmem>>, vector<8x128x128xbf16>
    %c0_7 = arith.constant 0 : index
    %c0_8 = arith.constant 0 : index
    %c0_9 = arith.constant 0 : index
    %18 = vector.load %arg3[%c0_7, %c0_8, %c0_9] : memref<8x128x128xbf16, #tpu.memory_space<vmem>>, vector<8x128x128xbf16>
    %c0_10 = arith.constant 0 : index
    %c0_11 = arith.constant 0 : index
    %19 = vector.load %arg9[%c0_10, %c0_11] : memref<8x128xf32, #tpu.memory_space<vmem>>, vector<8x128xf32>
    %c0_i32_12 = arith.constant 0 : i32
    %20 = arith.sitofp %c0_i32_12 : i32 to bf16
    %21 = vector.shape_cast %10 : vector<8x128x1xi1> to vector<8x128x1xi1>
    %22 = vector.broadcast %21 : vector<8x128x1xi1> to vector<8x128x128xi1>
    %23 = vector.broadcast %20 : bf16 to vector<8x128x128xbf16>
    %24 = arith.select %22, %17, %23 : vector<8x128x128xi1>, vector<8x128x128xbf16>
    %25 = arith.extf %24 : vector<8x128x128xbf16> to vector<8x128x128xf32>
    %cst = arith.constant dense<0.000000e+00> : vector<8x128xf32>
    %26 = vector.multi_reduction <add>, %25, %cst [1] : vector<8x128x128xf32> to vector<8x128xf32>
    %27 = arith.addf %19, %26 : vector<8x128xf32>
    %c0_13 = arith.constant 0 : index
    %c0_14 = arith.constant 0 : index
    %28 = vector.load %arg9[%c0_13, %c0_14] : memref<8x128xf32, #tpu.memory_space<vmem>>, vector<8x128xf32>
    tpu.vector_store %arg9[%c0_13, %c0_14], %27 {strides = array<i32>} : memref<8x128xf32, #tpu.memory_space<vmem>>, vector<8x128xf32>,
    %c0_15 = arith.constant 0 : index
    %c0_16 = arith.constant 0 : index
    %29 = vector.load %arg10[%c0_15, %c0_16] : memref<8x128xf32, #tpu.memory_space<vmem>>, vector<8x128xf32>
    %c0_i32_17 = arith.constant 0 : i32
    %30 = arith.sitofp %c0_i32_17 : i32 to bf16
    %31 = vector.shape_cast %16 : vector<8x128x1xi1> to vector<8x128x1xi1>
    %32 = vector.broadcast %31 : vector<8x128x1xi1> to vector<8x128x128xi1>
    %33 = vector.broadcast %30 : bf16 to vector<8x128x128xbf16>
    %34 = arith.select %32, %18, %33 : vector<8x128x128xi1>, vector<8x128x128xbf16>
    %35 = arith.extf %34 : vector<8x128x128xbf16> to vector<8x128x128xf32>
    %cst_18 = arith.constant dense<0.000000e+00> : vector<8x128xf32>
    %36 = vector.multi_reduction <add>, %35, %cst_18 [1] : vector<8x128x128xf32> to vector<8x128xf32>
    %37 = arith.addf %29, %36 : vector<8x128xf32>
    %c0_19 = arith.constant 0 : index
    %c0_20 = arith.constant 0 : index
    %38 = vector.load %arg10[%c0_19, %c0_20] : memref<8x128xf32, #tpu.memory_space<vmem>>, vector<8x128xf32>
    tpu.vector_store %arg10[%c0_19, %c0_20], %37 {strides = array<i32>} : memref<8x128xf32, #tpu.memory_space<vmem>>, vector<8x128xf32>,
    %c1_i32 = arith.constant 1 : i32
    %39 = arith.cmpi eq, %arg1, %c1_i32 : i32
    %40 = arith.extui %39 : i1 to i32
    %c0_i32_21 = arith.constant 0 : i32
    %41 = arith.cmpi ne, %40, %c0_i32_21 : i32
    scf.if %41 {
      %c0_22 = arith.constant 0 : index
      %c0_23 = arith.constant 0 : index
      %42 = vector.load %arg4[%c0_22, %c0_23] : memref<8x1xi32, #tpu.memory_space<vmem>>, vector<8x1xi32>
      %43 = arith.sitofp %42 : vector<8x1xi32> to vector<8x1xf32>
      %cst_24 = arith.constant 1.000000e+00 : f32
      %44 = vector.broadcast %cst_24 : f32 to vector<8x1xf32>
      %45 = arith.maximumf %43, %44 : vector<8x1xf32>
      %c0_25 = arith.constant 0 : index
      %c0_26 = arith.constant 0 : index
      %46 = vector.load %arg5[%c0_25, %c0_26] : memref<8x1xi32, #tpu.memory_space<vmem>>, vector<8x1xi32>
      %47 = arith.sitofp %46 : vector<8x1xi32> to vector<8x1xf32>
      %cst_27 = arith.constant 1.000000e+00 : f32
      %48 = vector.broadcast %cst_27 : f32 to vector<8x1xf32>
      %49 = arith.maximumf %47, %48 : vector<8x1xf32>
      %c0_28 = arith.constant 0 : index
      %c0_29 = arith.constant 0 : index
      %50 = vector.load %arg9[%c0_28, %c0_29] : memref<8x128xf32, #tpu.memory_space<vmem>>, vector<8x128xf32>
      %51 = vector.broadcast %45 : vector<8x1xf32> to vector<8x128xf32>
      %52 = arith.divf %50, %51 : vector<8x128xf32>
      %c0_30 = arith.constant 0 : index
      %c0_31 = arith.constant 0 : index
      %53 = vector.load %arg10[%c0_30, %c0_31] : memref<8x128xf32, #tpu.memory_space<vmem>>, vector<8x128xf32>
      %54 = vector.broadcast %49 : vector<8x1xf32> to vector<8x128xf32>
      %55 = arith.divf %53, %54 : vector<8x128xf32>
      %56 = arith.truncf %52 : vector<8x128xf32> to vector<8x128xbf16>
      %c0_32 = arith.constant 0 : index
      %c0_33 = arith.constant 0 : index
      %c0_34 = arith.constant 0 : index
      %57 = vector.load %arg6[%c0_32, %c0_33, %c0_34] : memref<4x128x128xbf16, #tpu.memory_space<vmem>>, vector<1x128x128xbf16>
      %58 = vector.shape_cast %57 : vector<1x128x128xbf16> to vector<128x128xbf16>
      %cst_35 = arith.constant dense<0.000000e+00> : vector<8x128xf32>
      %59 = tpu.matmul %56, %58, %cst_35 {dimension_numbers = #tpu.dot_dimension_numbers<[1], [0], [0], [1], [0, 0, 1, 1], [], []>} : vector<8x128xbf16>, vector<128x128xbf16>, vector<8x128xf32> -> vector<8x128xf32>
      %60 = arith.truncf %55 : vector<8x128xf32> to vector<8x128xbf16>
      %c1 = arith.constant 1 : index
      %c0_36 = arith.constant 0 : index
      %c0_37 = arith.constant 0 : index
      %61 = vector.load %arg6[%c1, %c0_36, %c0_37] : memref<4x128x128xbf16, #tpu.memory_space<vmem>>, vector<1x128x128xbf16>
      %62 = vector.shape_cast %61 : vector<1x128x128xbf16> to vector<128x128xbf16>
      %cst_38 = arith.constant dense<0.000000e+00> : vector<8x128xf32>
      %63 = tpu.matmul %60, %62, %cst_38 {dimension_numbers = #tpu.dot_dimension_numbers<[1], [0], [0], [1], [0, 0, 1, 1], [], []>} : vector<8x128xbf16>, vector<128x128xbf16>, vector<8x128xf32> -> vector<8x128xf32>
      %64 = arith.addf %59, %63 : vector<8x128xf32>
      %65 = arith.subf %52, %55 : vector<8x128xf32>
      %66 = math.absf %65 : vector<8x128xf32>
      %67 = arith.truncf %66 : vector<8x128xf32> to vector<8x128xbf16>
      %c2 = arith.constant 2 : index
      %c0_39 = arith.constant 0 : index
      %c0_40 = arith.constant 0 : index
      %68 = vector.load %arg6[%c2, %c0_39, %c0_40] : memref<4x128x128xbf16, #tpu.memory_space<vmem>>, vector<1x128x128xbf16>
      %69 = vector.shape_cast %68 : vector<1x128x128xbf16> to vector<128x128xbf16>
      %cst_41 = arith.constant dense<0.000000e+00> : vector<8x128xf32>
      %70 = tpu.matmul %67, %69, %cst_41 {dimension_numbers = #tpu.dot_dimension_numbers<[1], [0], [0], [1], [0, 0, 1, 1], [], []>} : vector<8x128xbf16>, vector<128x128xbf16>, vector<8x128xf32> -> vector<8x128xf32>
      %71 = arith.addf %64, %70 : vector<8x128xf32>
      %72 = arith.mulf %52, %55 : vector<8x128xf32>
      %73 = arith.truncf %72 : vector<8x128xf32> to vector<8x128xbf16>
      %c3 = arith.constant 3 : index
      %c0_42 = arith.constant 0 : index
      %c0_43 = arith.constant 0 : index
      %74 = vector.load %arg6[%c3, %c0_42, %c0_43] : memref<4x128x128xbf16, #tpu.memory_space<vmem>>, vector<1x128x128xbf16>
      %75 = vector.shape_cast %74 : vector<1x128x128xbf16> to vector<128x128xbf16>
      %cst_44 = arith.constant dense<0.000000e+00> : vector<8x128xf32>
      %76 = tpu.matmul %73, %75, %cst_44 {dimension_numbers = #tpu.dot_dimension_numbers<[1], [0], [0], [1], [0, 0, 1, 1], [], []>} : vector<8x128xbf16>, vector<128x128xbf16>, vector<8x128xf32> -> vector<8x128xf32>
      %77 = arith.addf %71, %76 : vector<8x128xf32>
      %c0_45 = arith.constant 0 : index
      %c0_46 = arith.constant 0 : index
      %78 = vector.load %arg7[%c0_45, %c0_46] : memref<1x128xf32, #tpu.memory_space<vmem>>, vector<1x128xf32>
      %79 = vector.broadcast %78 : vector<1x128xf32> to vector<8x128xf32>
      %80 = arith.addf %77, %79 : vector<8x128xf32>
      %c0_47 = arith.constant 0 : index
      %c0_48 = arith.constant 0 : index
      %81 = vector.load %arg8[%c0_47, %c0_48] : memref<8x128xf32, #tpu.memory_space<vmem>>, vector<8x128xf32>
      tpu.vector_store %arg8[%c0_47, %c0_48], %80 {strides = array<i32>} : memref<8x128xf32, #tpu.memory_space<vmem>>, vector<8x128xf32>,
    } else {
    }
    return
  }
  func.func @transform_0(%arg0: i32, %arg1: i32) -> (i32, i32, i32) {
    %c0_i32 = arith.constant 0 : i32
    %c0_i32_0 = arith.constant 0 : i32
    return %arg0, %arg1, %c0_i32 : i32, i32, i32
  }
  func.func @transform_1(%arg0: i32, %arg1: i32) -> (i32, i32, i32) {
    %c2_i32 = arith.constant 2 : i32
    %0 = arith.addi %arg0, %c2_i32 : i32
    %c0_i32 = arith.constant 0 : i32
    %c0_i32_0 = arith.constant 0 : i32
    return %0, %arg1, %c0_i32 : i32, i32, i32
  }
  func.func @transform_2(%arg0: i32, %arg1: i32) -> (i32, i32) {
    %c0_i32 = arith.constant 0 : i32
    %c0_i32_0 = arith.constant 0 : i32
    return %arg0, %c0_i32 : i32, i32
  }
  func.func @transform_3(%arg0: i32, %arg1: i32) -> (i32, i32) {
    %c0_i32 = arith.constant 0 : i32
    %c0_i32_0 = arith.constant 0 : i32
    return %arg0, %c0_i32 : i32, i32
  }
  func.func @transform_4(%arg0: i32, %arg1: i32) -> (i32, i32, i32) {
    %c0_i32 = arith.constant 0 : i32
    %c0_i32_0 = arith.constant 0 : i32
    %c0_i32_1 = arith.constant 0 : i32
    %c0_i32_2 = arith.constant 0 : i32
    return %c0_i32, %c0_i32_0, %c0_i32_1 : i32, i32, i32
  }
  func.func @transform_5(%arg0: i32, %arg1: i32) -> (i32, i32) {
    %c0_i32 = arith.constant 0 : i32
    %c0_i32_0 = arith.constant 0 : i32
    %c0_i32_1 = arith.constant 0 : i32
    return %c0_i32, %c0_i32_0 : i32, i32
  }
  func.func @transform_6(%arg0: i32, %arg1: i32) -> (i32, i32) {
    %c0_i32 = arith.constant 0 : i32
    %c0_i32_0 = arith.constant 0 : i32
    return %arg0, %c0_i32 : i32, i32
  }
}

</mosaic_0001>

<bundles_post_ra>
// kernel: tpu_custom_call.1
= control target key start
LH: loop header
LB: loop body
LE: loop exit
PB: predicated region body
PF: predicated region fallthrough
CT: control target
= control target key end

     0   :  { %s9094_s0 = inlined_call_operand.hbm [shape: bf16[32,256,128], index: 0, kind: input, shape index: {}]   ;;  %s9095_s1 = inlined_call_operand.hbm [shape: bf16[32,256,128], index: 1, kind: input, shape index: {}]   ;;  %s9096_s2 = inlined_call_operand.vmem [shape: s32[16,1], index: 2, kind: input, shape index: {}]   ;;  %s9097_s3 = inlined_call_operand.vmem [shape: s32[16,1], index: 3, kind: input, shape index: {}]   ;;  %s9098_s4 = inlined_call_operand.hbm [shape: bf16[4,128,128], index: 4, kind: input, shape index: {}]   ;;  %s9099_s5 = inlined_call_operand.hbm [shape: f32[1,128], index: 5, kind: input, shape index: {}]   ;;  %s9100_s6 = inlined_call_operand.hbm [shape: f32[16,128], index: 6, kind: output, shape index: {}]  }
   0x1   :  { %9187 = sst [smem:[#allocation76_spill]] %s9094_s0 }
   0x2   :  { %9188 = sst [smem:[#allocation77_spill]] %s9096_s2 }
   0x3   :  { %9189 = sst [smem:[#allocation78_spill]] %s9097_s3 }
   0x4   :  { %9190 = sst [smem:[#allocation79_spill]] %s9098_s4 }
   0x5   :  { %9191 = sst [smem:[#allocation80_spill]] %s9099_s5 }
   0x6   :  { %9192 = sst [smem:[#allocation81_spill]] %s9100_s6 }
   0x7   :  { %11 = vsyncpa [#allocation5], 0 }
   0x8   :  { %13 = vsyncpa [#allocation5 + $0x1], 0 }
   0x9   :  { %14 = vsyncpa [#allocation8], 0 }
   0xa   :  { %16 = vsyncpa [#allocation8 + $0x1], 0 }
   0xb   :  { %17 = vsyncpa [#allocation11], 0 }
   0xc   :  { %18 = vsyncpa [#allocation6], 0 }
   0xd   :  { %20 = vsyncpa [#allocation6 + $0x1], 0  ;;  %s4902_s21 = smov 0   ;;  %s4904_s22 = smov 0  }
   0xe   :  { %s4906_s23 = smov 0   ;;  %s4908_s24 = smov 0  }
   0xf   :  { %s4910_s25 = smov 0   ;;  %s4912_s26 = smov 0  }
  0x10   :  { %s4914_s27 = smov 0   ;;  %s4916_s28 = smov 0  }
  0x11   :  { %s4918_s29 = smov 0   ;;  %s4920_s30 = smov 0  }
  0x12   :  { %s4922_s7 = smov 0   ;;  %s4924_s8 = smov 0  }
  0x13   :  { %s4926_s9 = smov 0   ;;  %s4928_s10 = smov 0  }
  0x14 LB: > { %9193 = sst [smem:[#allocation24_spill]] %s4798_s23  ;;  %s4971_s11 = sadd.s32 4294967295, %s4842_s10   ;;  %s4842_s10 = sphi %s4928_s10, %s26_s10   ;;  %s4838_s9 = sphi %s4926_s9, %s9759_s9   ;;  %s4834_s8 = sphi %s4924_s8, %s9769_s8   ;;  %s4830_s7 = sphi %s4922_s7, %s9757_s7   ;;  %s4826_s30 = sphi %s4920_s30, %s9768_s30   ;;  %s4822_s29 = sphi %s4918_s29, %s9767_s29   ;;  %s4818_s28 = sphi %s4916_s28, %s9766_s28   ;;  %s4814_s27 = sphi %s4914_s27, %s9765_s27   ;;  %s4810_s26 = sphi %s4912_s26, %s9764_s26   ;;  %s4806_s25 = sphi %s4910_s25, %s9763_s25   ;;  %s4802_s24 = sphi %s4908_s24, %s9762_s24   ;;  %s4798_s23 = sphi %s4906_s23, %s9754_s23   ;;  %s4794_s22 = sphi %s4904_s22, %s9761_s22   ;;  %s4790_s21 = sphi %s4902_s21, %s9760_s21  }
  0x15   : > { %9194 = sst [smem:[#allocation25_spill]] %s4826_s30  ;;  %s35_s13 = sadd.s32 1, %s4834_s8 }
  0x16   : > { %9195 = sst [smem:[#allocation26_spill]] %s4830_s7  ;;  %s38_s14 = sadd.s32 1, %s4838_s9 }
  0x17   : > { %9196 = sst [smem:[#allocation27_spill]] %s4838_s9  ;;  %p36_p0 = scmp.ge.s32.totalorder %s35_s13, 2 }
  0x18   : > { %s47_s15 = sadd.s32 1, %s4822_s29  ;;  %p54_p1 = scmp.ne.s32.totalorder %s4822_s29, %s4818_s28 }
  0x19   : > { %p55_p2 = scmp.eq.s32.totalorder %s4842_s10, 0  ;;  %s9771_s13 = smov (%p36_p0, %s35_s13), 0 }
  0x1a   : > { %9197 = sst [smem:[#allocation28_spill]] %s9771_s13  ;;  %s9773_s14 = smov (!%p36_p0, %s38_s14), %s4838_s9 }
  0x1b   : > { %s43_s16 = ssub.s32 %s4834_s8, %s9771_s13  ;;  %p4987_p3 = por %p55_p2, %p54_p1 }
  0x1c   : > { %p40_p4 = scmp.ge.s32.totalorder %s9773_s14, 2  ;;  %p60_p5 = scmp.ne.s32.totalorder %s4818_s28, %s4814_s27 }
  0x1d   : > { %p9108_p6 = scmp.eq.s32.totalorder %s4971_s11, 0  ;;  %s70_s18 = sadd.s32 2, %s4838_s9 }
  0x1e   : > { %s9775_s14 = smov (%p40_p4, %s9773_s14), 0  ;;  %s77_s20 = sadd.s32 1, %s4810_s26 }
  0x1f   : > { %9199 = sst [smem:[#allocation29_spill]] %s9775_s14  ;;  %p4998_p7 = por %p9108_p6, %p60_p5 }
  0x20   : > { %s42_s27 = ssub.s32 %s4838_s9, %s9775_s14  ;;  %s71_s12 = sadd.s32 2, %s9775_s14 }
  0x21   : > { %s9200_s19 = scalar_select %p4998_p7, 1, 0 }
  0x22   : > { %s44_s13 = sor.u32 %s43_s16, %s42_s27  ;;  %s72_s6 = ssub.s32 %s70_s18, %s71_s12 }
  0x23   : > { %p45_p8 = scmp.eq.s32.totalorder %s44_s13, 0  ;;  %s74_s30 = sor.u32 %s72_s6, %s43_s16 }
  0x24   : > { %p75_p9 = scmp.eq.s32.totalorder %s74_s30, 0  ;;  %p84_p10 = scmp.ne.s32.totalorder %s4810_s26, %s4806_s25 }
  0x25   : > { %s5009_s3 = scalar_select %p45_p8, %s4822_s29, %s47_s15  }
  0x26   : > { %s5012_s2 = scalar_select %p75_p9, %s4810_s26, %s77_s20  }
  0x27   : > { %9201 = sst [smem:[#allocation30_spill]] %s5009_s3  ;;  %p5016_p11 = por %p84_p10, %p55_p2 }
  0x28   : > { %9202 = sst [smem:[#allocation31_spill]] %s5012_s2  ;;  %p90_p12 = scmp.ne.s32.totalorder %s4806_s25, %s4802_s24 }
  0x29   : > { %p195_p13 = scmp.eq.s32.totalorder %s42_s27, 0  ;;  %s197_s14 = sadd.s32 1, %s4798_s23 }
  0x2a   : > { %p5025_p0 = por %p90_p12, %p9108_p6  ;;  %p207_p1 = scmp.ne.s32.totalorder %s4798_s23, %s4794_s22 }
  0x2b   : > { %s5032_s6 = scalar_select %p195_p13, %s4798_s23, %s197_s14  }
  0x2c   : > { %s9204_s12 = scalar_select %p5025_p0, 1, 0 }
  0x2d   : > { %9205 = sst [smem:[#allocation32_spill]] %s5032_s6  ;;  %p208_p4 = scmp.eq.s32.totalorder %s4971_s11, 3 }
  0x2e   : > { %p213_p5 = scmp.ne.s32.totalorder %s4794_s22, %s4790_s21  ;;  %s9206_s30 = sadd.s32 4294967294, %s4842_s10  }
  0x2f   : > { %p214_p8 = scmp.eq.s32.totalorder %s9206_s30, 3  ;;  %p4231_p2 = scmp.ge.s32.totalorder %s4842_s10, 1 }
  0x30   : > { %p5040_p9 = por %p208_p4, %p207_p1  ;;  %p221_p10 = scmp.lt.s32.totalorder %s4842_s10, 5 }
  0x31   : > { %p5045_p7 = por %p214_p8, %p213_p5  ;;  %s4844_s14 = smov [#allocation9]  }
  0x32   : > { %s9207_s13 = scalar_select %p5040_p9, 1, 0 }
  0x33   : > { %s9208_s24 = scalar_select %p5045_p7, 1, 0 }
  0x34   : > { %p5049_p12 = pnand %p4231_p2, %p221_p10  ;;  %s233_s16 = sshll.u32 %s4844_s14, 4  ;;  %s234_s16 = int_to_ptr.vmem [resolvable:$true] %s233_s16 }
  0x35   : > { %9209 = sst [smem:[#allocation33_spill]] %s9208_s24  ;;  %s4845_s20 = smov [#allocation10]  }
  0x36   : > { %p4441_p13 = pneg %p5049_p12  ;;  %s247_s27 = sshll.u32 %s4845_s20, 4  ;;  %s248_s27 = int_to_ptr.vmem [resolvable:$true] %s247_s27 }
  0x37   : > { %s4645_s30 = scalar_lea.vmem %s234_s16, 4096  ;;  %p4653_p10 = scmp.lt.s32.totalorder %s234_s16, %s234_s16 }
  0x38   : > { %p5057_p1 = pnand %p4441_p13, %p9108_p6  ;;  %p4646_p5 = scmp.ne.s32.totalorder %s234_s16, %s4645_s30 }
  0x39   : > { %p4654_p7 = scmp.lt.s32.totalorder %s4645_s30, %s4645_s30 }
  0x3a   : > { %p4636_p4 = pneg %p5057_p1 }
  0x3b   : > { %p4655_p9 = por %p4654_p7, %p4653_p10 }
  0x3c   : > { %p4648_p8 = pnand %p4646_p5, %p4636_p4 }
  0x3e   : > { %p4649_p2 = pneg %p4648_p8 }
  0x40   : > { %p4656_p13 = pnand %p4655_p9, %p4649_p2 }
  0x42   : > { %4659 = shalt.err (!%p4656_p13)
}
  0x43   : > { %s4846_s14 = smov 64   ;;  %s4847_s3 = smov 4  }
  0x44   : > { %s9212_s4 = sld [smem:[#allocation79_spill]]  ;;  %s4671_s6 = scalar_lea.vmem %s248_s27, 16 }
  0x45   : > { %p4672_p6 = scmp.ne.s32.totalorder %s248_s27, %s4671_s6  ;;  %s4678_s23 = scalar_lea.vmem %s248_s27, 32 }
  0x46   : > { %p4679_p0 = scmp.lt.s32.totalorder %s248_s27, %s248_s27  ;;  %p4680_p7 = scmp.lt.s32.totalorder %s4678_s23, %s4671_s6 }
  0x47   : > { %p4674_p5 = pnand %p4672_p6, %p4636_p4 }
  0x48   : > { %p4681_p9 = por %p4680_p7, %p4679_p0 }
  0x49   : > { %p4675_p8 = pneg %p4674_p5 }
  0x4a   : > { %4444 = dma.hbm_to_vmem [thread:$0]  (!%p5057_p1), %s9212_s4, 4096, %s234_s16, [#allocation8], %s4846_s14, %s4846_s14, %s4847_s3  }
  0x4b   : > { %p4682_p2 = pnand %p4681_p9, %p4675_p8 }
  0x4d   : > { %4685 = shalt.err (!%p4682_p2)
}
  0x4e   : > { %s9213_s5 = sld [smem:[#allocation80_spill]]  ;;  %p4234_p10 = scmp.ge.s32.totalorder %s4842_s10, 4 }
  0x50   : > { %254 = sbr.rel (%p4234_p10) target bundleno = 118 (0x76), region = 24 }
  0x54   : > { %4447 = dma.hbm_to_vmem [thread:$0]  (!%p5057_p1), %s9213_s5, 16, %s248_s27, [#allocation11]  }
  0x55   : > { %s258_s2 = sand.u32 1, %s4822_s29   ;;  %s4237_s3 = sshll.u32 %s4834_s8, 4 }
  0x56   : > { %s4235_s23 = sshll.u32 %s258_s2, 9  ;;  %s4296_s6 = sshll.u32 %s4838_s9, 8 }
  0x57   : > { %s269_s16 = sadd.s32 %s4296_s6, %s4237_s3  ;;  %s262_s18 = scalar_lea.vmem [#allocation4], %s4235_s23 }
  0x58   : > { %s284_s24 = sshll.u32 %s262_s18, 4  ;;  %s4239_s27 = sshll.u32 %s269_s16, 6  ;;  %s285_s24 = int_to_ptr.vmem [resolvable:$true] %s284_s24 }
  0x59   : > { %s4417_s14 = scalar_select %p4987_p3, [#allocation0], [#allocation17] }
  0x5a   : > { %s4848_s20 = smov 2048   ;;  %s4849_s4 = smov 1024  }
  0x5b   : > { %4418 = sst [smem:[#allocation14]] (%p4987_p3), %s4848_s20  ;;  %s4850_s5 = smov 16  }
  0x5c   : > { %s276_s30 = sld [smem:[%s4417_s14]]   ;;  %s4851_s3 = smov 64  }
  0x5d   : > { %4419 = sst [smem:[#allocation14 + $0x1]] (%p4987_p3), %s4849_s4  ;;  %s4852_s18 = smov 4  }
  0x5e   : > { %4420 = sst [smem:[#allocation14 + $0x2]] (%p4987_p3), %s4850_s5  ;;  %s259_s9 = scalar_lea.sflag [#allocation5], %s258_s2 }
  0x5f   : > { %4421 = sst [smem:[#allocation14 + $0x3]] (%p4987_p3), %s4851_s3  ;;  %s4853_s4 = smov 131072  }
  0x60   : > { %s9214_s0 = sld [smem:[#allocation76_spill]] }
  0x61   : > { %4422 = sst [smem:[#allocation14 + $0x4]] (%p4987_p3), %s4851_s3 }
  0x62   : > { %4423 = sst [smem:[#allocation14 + $0x5]] (%p4987_p3), %s4852_s18  ;;  %s4240_s14 = sshll.u32 %s276_s30, 26 }
  0x63   : > { %s4241_s20 = sadd.s32 134217728, %s4240_s14 }
  0x66   : > { %s271_s16 = scalar_lea.hbm %s9214_s0, %s4239_s27 }
  0x67   : > { %4424 = dma.general (%p4987_p3), %s271_s16, 8192, %s285_s24, %s259_s9, %s4853_s4, [#allocation14], %s4241_s20, 0  }
  0x68   : > { %s307_s5 = sand.u32 1, %s4842_s10   ;;  %s309_s23 = sand.u32 1, %s4810_s26  }
  0x69   : > { %s4242_s6 = sshll.u32 %s309_s23, 9  ;;  %s4118_s30 = scalar_lea.hbm %s9095_s1, %s4239_s27 }
  0x6a   : > { %s4119_s18 = scalar_lea.hbm %s4118_s30, 32768  ;;  %s311_s9 = scalar_lea.vmem [#allocation7], %s4242_s6 }
  0x6b   : > { %s4425_s2 = scalar_select %p5016_p11, [#allocation0], [#allocation18] }
  0x6c   : > { %s334_s17 = sshll.u32 %s311_s9, 4  ;;  %s4854_s16 = smov 2048   ;;  %s335_s17 = int_to_ptr.vmem [resolvable:$true] %s334_s17 }
  0x6d   : > { %s326_s24 = sld [smem:[%s4425_s2]]   ;;  %s4855_s14 = smov 1024  }
  0x6e   : > { %4426 = sst [smem:[#allocation16]] (%p5016_p11), %s4854_s16  ;;  %s4856_s20 = smov 16  }
  0x6f   : > { %4427 = sst [smem:[#allocation16 + $0x1]] (%p5016_p11), %s4855_s14  ;;  %s4857_s0 = smov 64  }
  0x70   : > { %4428 = sst [smem:[#allocation16 + $0x2]] (%p5016_p11), %s4856_s20  ;;  %s4858_s4 = smov 4  }
  0x71   : > { %4429 = sst [smem:[#allocation16 + $0x3]] (%p5016_p11), %s4857_s0  ;;  %s308_s6 = scalar_lea.sflag [#allocation8], %s307_s5 }
  0x72   : > { %4430 = sst [smem:[#allocation16 + $0x4]] (%p5016_p11), %s4857_s0  ;;  %s4859_s3 = smov 131072  }
  0x73   : > { %s4246_s27 = sshll.u32 %s326_s24, 26  ;;  %4431 = sst [smem:[#allocation16 + $0x5]] (%p5016_p11), %s4858_s4 }
  0x74   : > { %s4247_s23 = sadd.s32 134217728, %s4246_s27 }
  0x75   : > { %4432 = dma.general (%p5016_p11), %s4119_s18, 8192, %s335_s17, %s308_s6, %s4859_s3, [#allocation16], %s4247_s23, 0  }
  0x76 PF: > { %373 = sbr.rel (%p5049_p12) target bundleno = 1239 (0x4d7), region = 44 }
  0x7b   : > { %s375_s30 = sand.u32 1, %s4818_s28   ;;  %p9215_p3 = scmp.ne.s32.totalorder %s9200_s19, 0 }
  0x7c   : > { %s4249_s2 = sshll.u32 %s375_s30, 9  ;;  %s376_s9 = scalar_lea.sflag [#allocation5], %s375_s30 }
  0x7d   : > { %s5126_s16 = scalar_lea.vmem [#allocation4], %s4249_s2 }
  0x7e   : > { %4769 = dma.done.wait (%p9215_p3), %s376_s9, 8192  }
  0x7f   : > { %4771 = vsyncadd (%p9215_p3), %s376_s9, 4294959104  ;;  %s384_s7 = sand.u32 1, %s4971_s11   ;;  %s386_s5 = sand.u32 1, %s4806_s25  }
  0x80   : > { %s4250_s18 = sshll.u32 %s386_s5, 9  ;;  %s385_s15 = scalar_lea.sflag [#allocation8], %s384_s7 }
  0x81   : > { %s5134_s17 = scalar_lea.vmem [#allocation7], %s4250_s18  ;;  %p9216_p6 = scmp.ne.s32.totalorder %s9204_s12, 0 }
  0x83   : > { %4773 = dma.done.wait (%p9216_p6), %s385_s15, 8192  }
  0x84   : > { %4775 = vsyncadd (%p9216_p6), %s385_s15, 4294959104  ;;  %p9217_p11 = scmp.eq.s32.totalorder %s4971_s11, 0 }
  0x86   : > { %4777 = dma.done.wait (%p9217_p11), [#allocation8], 4096   ;;  %p9218_p0 = pmov %p9217_p11 }
  0x88   : > { %4779 = vsyncadd (%p9218_p0), [#allocation8], 4294963200  ;;  %p9219_p12 = pmov %p9218_p0 }
  0x89   : > { %p9220_p1 = pmov %p9218_p0 }
  0x8a   : > { %4781 = dma.done.wait (%p9219_p12), [#allocation11], 16  }
  0x8b   : > { %4783 = vsyncadd (%p9220_p1), [#allocation11], 4294967280  ;;  %s9221_s19 = sld [smem:[#allocation26_spill]]  ;;  %s435_s24 = sand.u32 1, %s4794_s22  }
  0x8c   : > { %s5152_s12 = sshll.u32 %s435_s24, 3  ;;  %s9222_s27 = sld [smem:[#allocation77_spill]] }
  0x8d   : > { %s9223_s6 = sld [smem:[#allocation78_spill]]  ;;  %s437_s30 = scalar_lea.vmem [#allocation12], %s5152_s12 }
  0x8e   : > { %s9224_s2 = sld [smem:[#allocation25_spill]] }
  0x91   : > { %p443_p4 = scmp.lt.s32.totalorder %s9221_s19, 1 }
  0x93   : > { %s9777_s19 = smov (!%p443_p4, %s9221_s19), 1 }
  0x94   : > { %s4254_s14 = sshll.u32 %s9777_s19, 3  ;;  %p4256_p13 = scmp.ne.s32.totalorder %s9224_s2, 0 }
  0x95   : > { %s5158_s4 = scalar_lea.vmem %s9222_s27, %s4254_s14  ;;  %s5163_s3 = scalar_lea.vmem %s9223_s6, %s4254_s14 }
  0x96   : > { %455 = sbr.rel (%p4256_p13) target bundleno = 157 (0x9d), region = 64 }
  0x9b   : > { %v4860_v0 = vmov 0.0  }
  0x9c   : > { %456 = vst [vmem:[#allocation2] sm:$0xff] %v4860_v0  ;;  %457 = vst [vmem:[#allocation3] sm:$0xff] %v4860_v0 }
  0x9d PF: > { %v458_v1 = vlaneseq  ;;  %s9225_s9 = sld [smem:[#allocation25_spill]]  ;;  %v9119_v2 = vmov 0   ;;  %v4862_v3 = vmov 1966171168   ;;  %v5172_v7 = vld [vmem:[%s5158_s4] sm:$0xff] }
  0x9e   : > { %4592 = vset.pattern.permute.xlu1 %v9119_v2  ;;  %4591 = vset.pattern.permute.xlu0 %v9119_v2  ;;  %v479_v4 = vunpack.c.l.s4 %v4862_v3 }
  0x9f   : > { %v5169_v5 = vshrl.u32 %v458_v1, 7 }
  0xa0   : > { %v480_v6 = vunpack.c.0.s8 %v479_v4 }
  0xa1   : > { %9226 = vst [vmem:[#allocation34_spill] sm:$0xff] %v5169_v5  ;;  %v5186_v12 = vsub.s32 0, %v5169_v5  ;;  %v5191_v14 = vadd.s32 16, %v5169_v5  ;;  %v5194_v15 = vadd.s32 24, %v5169_v5  ;;  %v5197_v16 = vadd.s32 8, %v5169_v5 }
  0xa2   : > { %v5176_v8 = vsub.s32 %v480_v6, %v5169_v5  ;;  %v5203_v18 = vadd.s32 40, %v5169_v5  ;;  %v5206_v19 = vadd.s32 32, %v5169_v5  ;;  %v5225_v24 = vadd.s32 56, %v5169_v5 }
  0xa3   : > { %s4257_s7 = sshll.u32 %s9225_s9, 7  ;;  %9229 = vst [vmem:[#allocation37_spill] sm:$0xff] %v5186_v12  ;;  %9230 = vst [vmem:[#allocation38_spill] sm:$0xff] %v5191_v14  ;;  %v5228_v25 = vadd.s32 48, %v5169_v5  ;;  %v5237_v28 = vadd.s32 72, %v5169_v5  ;;  %v5240_v29 = vadd.s32 64, %v5169_v5 }
  0xa4   : > { %9227 = vst [vmem:[#allocation35_spill] sm:$0xff] %v5176_v8  ;;  %v484_v9 = vrot.slane %v5172_v7, %v5176_v8  ;;  %v5180_v10 = vstv %s4257_s7  ;;  %9231 = vst [vmem:[#allocation39_spill] sm:$0xff] %v5194_v15  ;;  %v5245_v32 = vadd.s32 88, %v5169_v5  ;;  %v5252_v33 = vadd.s32 80, %v5169_v5  ;;  %p4258_p5 = scmp.ne.s32.totalorder %s9225_s9, 1 }
  0xa5   : > { %9228 = vst [vmem:[#allocation36_spill] sm:$0xff] %v5180_v10  ;;  %9232 = vst [vmem:[#allocation40_spill] sm:$0xff] %v5197_v16  ;;  %v5257_v37 = vadd.s32 104, %v5169_v5  ;;  %v5264_v38 = vadd.s32 96, %v5169_v5  ;;  %v5272_v42 = vadd.s32 120, %v5169_v5  ;;  %v5279_v43 = vadd.s32 112, %v5169_v5 }
  0xa6   : > { %v5183_v11 = vrot.slane %v484_v9, %v5176_v8  ;;  %9233 = vst [vmem:[#allocation41_spill] sm:$0xff] %v5203_v18  ;;  %9234 = vst [vmem:[#allocation42_spill] sm:$0xff] %v5206_v19  ;;  %v492_v34 = vcombine.high %v484_v9, %v484_v9 }
  0xa7   : > { %9235 = vst [vmem:[#allocation43_spill] sm:$0xff] %v5225_v24  ;;  %9236 = vst [vmem:[#allocation44_spill] sm:$0xff] %v5252_v33 }
  0xa8   : > { %v527_v13 = vsub.s32 %v5183_v11, %v5180_v10  ;;  %9237 = vst [vmem:[#allocation45_spill] sm:$0xff] %v5257_v37  ;;  %9238 = vst [vmem:[#allocation46_spill] sm:$0xff] %v5264_v38  ;;  %v5267_v39 = vrot.slane %v492_v34, %v5176_v8  ;;  %v522_v60 = vcombine.high %v5183_v11, %v5183_v11 }
  0xa9   : > { %9239 = vst [vmem:[#allocation47_spill] sm:$0xff] %v5272_v42  ;;  %9240 = vst [vmem:[#allocation48_spill] sm:$0xff] %v5279_v43 }
  0xaa   : > { %v5200_v17 = vrot.slane %v527_v13, %v5186_v12  ;;  %v528_v44 = vsub.s32 %v5267_v39, %v5180_v10  ;;  %v529_v63 = vsub.s32 %v522_v60, %v5180_v10 }
  0xac   : > { %vm567_vm0 = vcmp.lt.s32.totalorder %v5169_v5, %v5200_v17  ;;  %vm569_vm1 = vcmp.lt.s32.totalorder %v5191_v14, %v5200_v17  ;;  %vm570_vm2 = vcmp.lt.s32.totalorder %v5194_v15, %v5200_v17  ;;  %vm568_vm3 = vcmp.lt.s32.totalorder %v5197_v16, %v5200_v17 }
  0xad   : > { %v1170_v20 = vsel %vm567_vm0, 1, %v9119_v2  ;;  %v1172_v21 = vsel %vm569_vm1, 1, %v9119_v2  ;;  %v1173_v22 = vsel %vm570_vm2, 1, %v9119_v2  ;;  %v1171_v23 = vsel %vm568_vm3, 1, %v9119_v2 }
  0xae   : > { %1299 = vperm.xlu0 %4591, %v1170_v20   ;;  %1305 = vperm.xlu1 %4592, %v1172_v21   ;;  %vm572_vm4 = vcmp.lt.s32.totalorder %v5203_v18, %v5200_v17  ;;  %vm571_vm5 = vcmp.lt.s32.totalorder %v5206_v19, %v5200_v17  ;;  %vm574_vm6 = vcmp.lt.s32.totalorder %v5225_v24, %v5200_v17 }
  0xaf   : > { %v1175_v26 = vsel %vm572_vm4, 1, %v9119_v2  ;;  %v1174_v27 = vsel %vm571_vm5, 1, %v9119_v2  ;;  %vm573_vm7 = vcmp.lt.s32.totalorder %v5228_v25, %v5200_v17  ;;  %v1177_v30 = vsel %vm574_vm6, 1, %v9119_v2 }
  0xb0   : > { %v1176_v31 = vsel %vm573_vm7, 1, %v9119_v2  ;;  %vm576_vm8 = vcmp.lt.s32.totalorder %v5237_v28, %v5200_v17  ;;  %vm575_vm9 = vcmp.lt.s32.totalorder %v5240_v29, %v5200_v17  ;;  %vm578_vm10 = vcmp.lt.s32.totalorder %v5245_v32, %v5200_v17 }
  0xb1   : > { %v1179_v35 = vsel %vm576_vm8, 1, %v9119_v2  ;;  %v1178_v36 = vsel %vm575_vm9, 1, %v9119_v2  ;;  %vm577_vm11 = vcmp.lt.s32.totalorder %v5252_v33, %v5200_v17  ;;  %v1181_v40 = vsel %vm578_vm10, 1, %v9119_v2 }
  0xb2   : > { %1308 = vperm.xlu1 %4592, %v1173_v22   ;;  %1302 = vperm.xlu0 %4591, %v1171_v23   ;;  %v1180_v41 = vsel %vm577_vm11, 1, %v9119_v2  ;;  %vm580_vm12 = vcmp.lt.s32.totalorder %v5257_v37, %v5200_v17  ;;  %vm579_vm13 = vcmp.lt.s32.totalorder %v5264_v38, %v5200_v17  ;;  %vm582_vm14 = vcmp.lt.s32.totalorder %v5272_v42, %v5200_v17 }
  0xb3   : > { %v1183_v45 = vsel %vm580_vm12, 1, %v9119_v2  ;;  %v1182_v46 = vsel %vm579_vm13, 1, %v9119_v2  ;;  %vm581_vm15 = vcmp.lt.s32.totalorder %v5279_v43, %v5200_v17  ;;  %v542_v47 = vrot.slane %v528_v44, %v5186_v12 }
  0xb4   : > { %v1185_v48 = vsel %vm582_vm14, 1, %v9119_v2  ;;  %v1184_v49 = vsel %vm581_vm15, 1, %v9119_v2  ;;  %v546_v3 = vrot.slane %v529_v63, %v5186_v12 }
  0xb5   : > { %vm584_vm0 = vcmp.lt.s32.totalorder %v5197_v16, %v542_v47  ;;  %vm583_vm1 = vcmp.lt.s32.totalorder %v5169_v5, %v542_v47  ;;  %vm586_vm2 = vcmp.lt.s32.totalorder %v5194_v15, %v542_v47  ;;  %vm585_vm3 = vcmp.lt.s32.totalorder %v5191_v14, %v542_v47 }
  0xb6   : > { %1314 = vperm.xlu1 %4592, %v1175_v26   ;;  %1311 = vperm.xlu0 %4591, %v1174_v27   ;;  %v1187_v50 = vsel %vm584_vm0, 1, %v9119_v2  ;;  %v1186_v51 = vsel %vm583_vm1, 1, %v9119_v2  ;;  %v1189_v52 = vsel %vm586_vm2, 1, %v9119_v2  ;;  %v1188_v53 = vsel %vm585_vm3, 1, %v9119_v2 }
  0xb7   : > { %vm588_vm4 = vcmp.lt.s32.totalorder %v5203_v18, %v542_v47  ;;  %vm587_vm5 = vcmp.lt.s32.totalorder %v5206_v19, %v542_v47  ;;  %vm590_vm6 = vcmp.lt.s32.totalorder %v5225_v24, %v542_v47  ;;  %vm589_vm7 = vcmp.lt.s32.totalorder %v5228_v25, %v542_v47 }
  0xb8   : > { %v1191_v54 = vsel %vm588_vm4, 1, %v9119_v2  ;;  %v1190_v55 = vsel %vm587_vm5, 1, %v9119_v2  ;;  %v1193_v56 = vsel %vm590_vm6, 1, %v9119_v2  ;;  %v1192_v57 = vsel %vm589_vm7, 1, %v9119_v2 }
  0xb9   : > { %vm592_vm8 = vcmp.lt.s32.totalorder %v5237_v28, %v542_v47  ;;  %vm591_vm9 = vcmp.lt.s32.totalorder %v5240_v29, %v542_v47  ;;  %vm594_vm10 = vcmp.lt.s32.totalorder %v5245_v32, %v542_v47  ;;  %vm593_vm11 = vcmp.lt.s32.totalorder %v5252_v33, %v542_v47 }
  0xba   : > { %1320 = vperm.xlu1 %4592, %v1177_v30   ;;  %1317 = vperm.xlu0 %4591, %v1176_v31   ;;  %v1195_v58 = vsel %vm592_vm8, 1, %v9119_v2  ;;  %v1194_v59 = vsel %vm591_vm9, 1, %v9119_v2  ;;  %v1197_v61 = vsel %vm594_vm10, 1, %v9119_v2  ;;  %v1196_v62 = vsel %vm593_vm11, 1, %v9119_v2 }
  0xbb   : > { %vm596_vm12 = vcmp.lt.s32.totalorder %v5257_v37, %v542_v47  ;;  %vm595_vm13 = vcmp.lt.s32.totalorder %v5264_v38, %v542_v47  ;;  %vm598_vm14 = vcmp.lt.s32.totalorder %v5272_v42, %v542_v47  ;;  %vm597_vm15 = vcmp.lt.s32.totalorder %v5279_v43, %v542_v47 }
  0xbc   : > { %v1199_v0 = vsel %vm596_vm12, 1, %v9119_v2  ;;  %v1198_v1 = vsel %vm595_vm13, 1, %v9119_v2  ;;  %v1201_v4 = vsel %vm598_vm14, 1, %v9119_v2  ;;  %v1200_v6 = vsel %vm597_vm15, 1, %v9119_v2 }
  0xbd   : > { %vm600_vm0 = vcmp.lt.s32.totalorder %v5197_v16, %v546_v3  ;;  %vm599_vm1 = vcmp.lt.s32.totalorder %v5169_v5, %v546_v3  ;;  %vm602_vm2 = vcmp.lt.s32.totalorder %v5194_v15, %v546_v3  ;;  %vm601_vm3 = vcmp.lt.s32.totalorder %v5191_v14, %v546_v3 }
  0xbe   : > { %1326 = vperm.xlu1 %4592, %v1179_v35   ;;  %1323 = vperm.xlu0 %4591, %v1178_v36   ;;  %v1203_v9 = vsel %vm600_vm0, 1, %v9119_v2  ;;  %v1202_v11 = vsel %vm599_vm1, 1, %v9119_v2  ;;  %v1205_v13 = vsel %vm602_vm2, 1, %v9119_v2  ;;  %v1204_v17 = vsel %vm601_vm3, 1, %v9119_v2 }
  0xbf   : > { %vm604_vm4 = vcmp.lt.s32.totalorder %v5203_v18, %v546_v3  ;;  %vm603_vm5 = vcmp.lt.s32.totalorder %v5206_v19, %v546_v3  ;;  %vm606_vm6 = vcmp.lt.s32.totalorder %v5225_v24, %v546_v3  ;;  %vm605_vm7 = vcmp.lt.s32.totalorder %v5228_v25, %v546_v3 }
  0xc0   : > { %v1207_v20 = vsel %vm604_vm4, 1, %v9119_v2  ;;  %v1206_v21 = vsel %vm603_vm5, 1, %v9119_v2  ;;  %v1209_v22 = vsel %vm606_vm6, 1, %v9119_v2  ;;  %v1208_v23 = vsel %vm605_vm7, 1, %v9119_v2 }
  0xc1   : > { %vm608_vm8 = vcmp.lt.s32.totalorder %v5237_v28, %v546_v3  ;;  %vm607_vm9 = vcmp.lt.s32.totalorder %v5240_v29, %v546_v3  ;;  %vm610_vm10 = vcmp.lt.s32.totalorder %v5245_v32, %v546_v3  ;;  %vm609_vm11 = vcmp.lt.s32.totalorder %v5252_v33, %v546_v3 }
  0xc2   : > { %1332 = vperm.xlu1 %4592, %v1181_v40   ;;  %1329 = vperm.xlu0 %4591, %v1180_v41   ;;  %v1211_v26 = vsel %vm608_vm8, 1, %v9119_v2  ;;  %v1210_v27 = vsel %vm607_vm9, 1, %v9119_v2  ;;  %v524_v30 = vcombine.high %v5267_v39, %v5267_v39  ;;  %v1213_v31 = vsel %vm610_vm10, 1, %v9119_v2 }
  0xc3   : > { %v1212_v34 = vsel %vm609_vm11, 1, %v9119_v2  ;;  %vm612_vm12 = vcmp.lt.s32.totalorder %v5257_v37, %v546_v3  ;;  %vm611_vm13 = vcmp.lt.s32.totalorder %v5264_v38, %v546_v3  ;;  %vm614_vm14 = vcmp.lt.s32.totalorder %v5272_v42, %v546_v3 }
  0xc4   : > { %v530_v35 = vsub.s32 %v524_v30, %v5180_v10  ;;  %v1215_v36 = vsel %vm612_vm12, 1, %v9119_v2  ;;  %v1214_v40 = vsel %vm611_vm13, 1, %v9119_v2  ;;  %vm613_vm15 = vcmp.lt.s32.totalorder %v5279_v43, %v546_v3 }
  0xc5   : > { %v1217_v41 = vsel %vm614_vm14, 1, %v9119_v2  ;;  %v1216_v44 = vsel %vm613_vm15, 1, %v9119_v2 }
  0xc6   : > { %1338 = vperm.xlu1 %4592, %v1183_v45   ;;  %1335 = vperm.xlu0 %4591, %v1182_v46   ;;  %v550_v39 = vrot.slane %v530_v35, %v5186_v12 }
  0xc8   : > { %vm616_vm0 = vcmp.lt.s32.totalorder %v5197_v16, %v550_v39  ;;  %vm615_vm1 = vcmp.lt.s32.totalorder %v5169_v5, %v550_v39  ;;  %vm618_vm2 = vcmp.lt.s32.totalorder %v5194_v15, %v550_v39  ;;  %vm617_vm3 = vcmp.lt.s32.totalorder %v5191_v14, %v550_v39 }
  0xc9   : > { %v1219_v45 = vsel %vm616_vm0, 1, %v9119_v2  ;;  %v1218_v46 = vsel %vm615_vm1, 1, %v9119_v2  ;;  %v1221_v47 = vsel %vm618_vm2, 1, %v9119_v2  ;;  %vm620_vm4 = vcmp.lt.s32.totalorder %v5203_v18, %v550_v39 }
  0xca   : > { %1344 = vperm.xlu1 %4592, %v1185_v48   ;;  %1341 = vperm.xlu0 %4591, %v1184_v49   ;;  %v1220_v48 = vsel %vm617_vm3, 1, %v9119_v2  ;;  %vm619_vm5 = vcmp.lt.s32.totalorder %v5206_v19, %v550_v39  ;;  %v1223_v49 = vsel %vm620_vm4, 1, %v9119_v2  ;;  %vm622_vm6 = vcmp.lt.s32.totalorder %v5225_v24, %v550_v39 }
  0xcb   : > { %vm621_vm7 = vcmp.lt.s32.totalorder %v5228_v25, %v550_v39  ;;  %vm624_vm8 = vcmp.lt.s32.totalorder %v5237_v28, %v550_v39  ;;  %vm623_vm9 = vcmp.lt.s32.totalorder %v5240_v29, %v550_v39  ;;  %vm626_vm10 = vcmp.lt.s32.totalorder %v5245_v32, %v550_v39 }
  0xcc   : > { %vm625_vm11 = vcmp.lt.s32.totalorder %v5252_v33, %v550_v39  ;;  %vm628_vm12 = vcmp.lt.s32.totalorder %v5257_v37, %v550_v39  ;;  %vm627_vm13 = vcmp.lt.s32.totalorder %v5264_v38, %v550_v39  ;;  %vm630_vm14 = vcmp.lt.s32.totalorder %v5272_v42, %v550_v39 }
  0xcd   : > { %v1231_v60 = vsel %vm628_vm12, 1, %v9119_v2  ;;  %vm629_vm15 = vcmp.lt.s32.totalorder %v5279_v43, %v550_v39  ;;  %v1233_v63 = vsel %vm630_vm14, 1, %v9119_v2 }
  0xce   : > { %1350 = vperm.xlu1 %4592, %v1187_v50   ;;  %1347 = vperm.xlu0 %4591, %v1186_v51   ;;  %v1222_v50 = vsel %vm619_vm5, 1, %v9119_v2  ;;  %v477_v51 = vcombine.high %v5172_v7, %v5172_v7  ;;  %v1227_v7 = vsel %vm624_vm8, 1, %v9119_v2 }
  0xd2   : > { %1356 = vperm.xlu1 %4592, %v1189_v52   ;;  %1353 = vperm.xlu0 %4591, %v1188_v53   ;;  %v1225_v52 = vsel %vm622_vm6, 1, %v9119_v2  ;;  %v1224_v53 = vsel %vm621_vm7, 1, %v9119_v2 }
  0xd6   : > { %1362 = vperm.xlu1 %4592, %v1191_v54   ;;  %1359 = vperm.xlu0 %4591, %v1190_v55   ;;  %v5385_v54 = vrot.slane %v477_v51, %v5176_v8  ;;  %v1226_v55 = vsel %vm623_vm9, 1, %v9119_v2 }
  0xda   : > { %1368 = vperm.xlu1 %4592, %v1193_v56   ;;  %1365 = vperm.xlu0 %4591, %v1192_v57   ;;  %v5393_v56 = vrot.slane %v5385_v54, %v5176_v8  ;;  %v1229_v57 = vsel %vm626_vm10, 1, %v9119_v2 }
  0xde   : > { %1374 = vperm.xlu1 %4592, %v1195_v58   ;;  %1371 = vperm.xlu0 %4591, %v1194_v59   ;;  %v1228_v58 = vsel %vm625_vm11, 1, %v9119_v2  ;;  %v531_v59 = vsub.s32 %v5393_v56, %v5180_v10 }
  0xe2   : > { %1380 = vperm.xlu1 %4592, %v1197_v61   ;;  %1377 = vperm.xlu0 %4591, %v1196_v62   ;;  %v1230_v61 = vsel %vm627_vm13, 1, %v9119_v2  ;;  %v5406_v62 = vrot.slane %v531_v59, %v5186_v12 }
  0xe4   : > { %vm632_vm0 = vcmp.lt.s32.totalorder %v5197_v16, %v5406_v62  ;;  %vm631_vm1 = vcmp.lt.s32.totalorder %v5169_v5, %v5406_v62  ;;  %vm634_vm2 = vcmp.lt.s32.totalorder %v5194_v15, %v5406_v62  ;;  %vm633_vm3 = vcmp.lt.s32.totalorder %v5191_v14, %v5406_v62 }
  0xe5   : > { %vm636_vm4 = vcmp.lt.s32.totalorder %v5203_v18, %v5406_v62  ;;  %vm635_vm5 = vcmp.lt.s32.totalorder %v5206_v19, %v5406_v62  ;;  %vm638_vm6 = vcmp.lt.s32.totalorder %v5225_v24, %v5406_v62  ;;  %vm637_vm7 = vcmp.lt.s32.totalorder %v5228_v25, %v5406_v62 }
  0xe6   : > { %1386 = vperm.xlu1 %4592, %v1199_v0   ;;  %1383 = vperm.xlu0 %4591, %v1198_v1   ;;  %v1232_v0 = vsel %vm629_vm15, 1, %v9119_v2  ;;  %v1241_v30 = vsel %vm638_vm6, 1, %v9119_v2  ;;  %vm640_vm8 = vcmp.lt.s32.totalorder %v5237_v28, %v5406_v62  ;;  %vm639_vm9 = vcmp.lt.s32.totalorder %v5240_v29, %v5406_v62 }
  0xe7   : > { %v1242_v39 = vsel %vm639_vm9, 1, %v9119_v2  ;;  %vm642_vm10 = vcmp.lt.s32.totalorder %v5245_v32, %v5406_v62  ;;  %vm641_vm11 = vcmp.lt.s32.totalorder %v5252_v33, %v5406_v62  ;;  %vm644_vm12 = vcmp.lt.s32.totalorder %v5257_v37, %v5406_v62 }
  0xe8   : > { %vm643_vm13 = vcmp.lt.s32.totalorder %v5264_v38, %v5406_v62  ;;  %v1247_v51 = vsel %vm644_vm12, 1, %v9119_v2  ;;  %vm646_vm14 = vcmp.lt.s32.totalorder %v5272_v42, %v5406_v62  ;;  %vm645_vm15 = vcmp.lt.s32.totalorder %v5279_v43, %v5406_v62 }
  0xea   : > { %1392 = vperm.xlu1 %4592, %v1201_v4   ;;  %1389 = vperm.xlu0 %4591, %v1200_v6   ;;  %v1235_v4 = vsel %vm632_vm0, 1, %v9119_v2  ;;  %v1234_v6 = vsel %vm631_vm1, 1, %v9119_v2 }
  0xee   : > { %1398 = vperm.xlu1 %4592, %v1203_v9   ;;  %1395 = vperm.xlu0 %4591, %v1202_v11  }
  0xf2   : > { %1404 = vperm.xlu1 %4592, %v1205_v13   ;;  %1401 = vperm.xlu0 %4591, %v1204_v17   ;;  %v1237_v13 = vsel %vm634_vm2, 1, %v9119_v2  ;;  %v1236_v17 = vsel %vm633_vm3, 1, %v9119_v2 }
  0xf6   : > { %1410 = vperm.xlu1 %4592, %v1207_v20   ;;  %1407 = vperm.xlu0 %4591, %v1206_v21  }
  0xfa   : > { %1416 = vperm.xlu1 %4592, %v1209_v22   ;;  %1413 = vperm.xlu0 %4591, %v1208_v23   ;;  %v1239_v22 = vsel %vm636_vm4, 1, %v9119_v2  ;;  %v1238_v23 = vsel %vm635_vm5, 1, %v9119_v2 }
  0xfe   : > { %1422 = vperm.xlu1 %4592, %v1211_v26   ;;  %1419 = vperm.xlu0 %4591, %v1210_v27  }
 0x102   : > { %1428 = vperm.xlu1 %4592, %v1213_v31   ;;  %1425 = vperm.xlu0 %4591, %v1212_v34   ;;  %v1240_v31 = vsel %vm637_vm7, 1, %v9119_v2  ;;  %v493_v34 = vcombine.high %v5385_v54, %v5385_v54 }
 0x106   : > { %1434 = vperm.xlu1 %4592, %v1215_v36   ;;  %1431 = vperm.xlu0 %4591, %v1214_v40   ;;  %v1243_v40 = vsel %vm640_vm8, 1, %v9119_v2 }
 0x10a   : > { %1440 = vperm.xlu1 %4592, %v1217_v41   ;;  %1437 = vperm.xlu0 %4591, %v1216_v44   ;;  %v5467_v41 = vrot.slane %v493_v34, %v5176_v8 }
 0x10e   : > { %1446 = vperm.xlu1 %4592, %v1219_v45   ;;  %1443 = vperm.xlu0 %4591, %v1218_v46   ;;  %v1245_v46 = vsel %vm642_vm10, 1, %v9119_v2 }
 0x112   : > { %1452 = vperm.xlu1 %4592, %v1221_v47   ;;  %1449 = vperm.xlu0 %4591, %v1220_v48   ;;  %v1244_v47 = vsel %vm641_vm11, 1, %v9119_v2  ;;  %v532_v48 = vsub.s32 %v5467_v41, %v5180_v10 }
 0x116   : > { %1458 = vperm.xlu1 %4592, %v1223_v49   ;;  %1455 = vperm.xlu0 %4591, %v1222_v50  }
 0x11a   : > { %1464 = vperm.xlu1 %4592, %v1225_v52   ;;  %1461 = vperm.xlu0 %4591, %v1224_v53   ;;  %v1246_v52 = vsel %vm643_vm13, 1, %v9119_v2  ;;  %v5492_v53 = vrot.slane %v532_v48, %v5186_v12  ;;  %v523_v48 = vcombine.high %v5393_v56, %v5393_v56 }
 0x11c   : > { %vm648_vm0 = vcmp.lt.s32.totalorder %v5197_v16, %v5492_v53  ;;  %vm647_vm1 = vcmp.lt.s32.totalorder %v5169_v5, %v5492_v53  ;;  %vm650_vm2 = vcmp.lt.s32.totalorder %v5194_v15, %v5492_v53  ;;  %vm649_vm3 = vcmp.lt.s32.totalorder %v5191_v14, %v5492_v53 }
 0x11d   : > { %vm652_vm4 = vcmp.lt.s32.totalorder %v5203_v18, %v5492_v53  ;;  %vm651_vm5 = vcmp.lt.s32.totalorder %v5206_v19, %v5492_v53  ;;  %vm654_vm6 = vcmp.lt.s32.totalorder %v5225_v24, %v5492_v53  ;;  %vm653_vm7 = vcmp.lt.s32.totalorder %v5228_v25, %v5492_v53 }
 0x11e   : > { %1470 = vperm.xlu1 %4592, %v1227_v7   ;;  %1467 = vperm.xlu0 %4591, %v1226_v55   ;;  %v1249_v55 = vsel %vm646_vm14, 1, %v9119_v2  ;;  %v1256_v34 = vsel %vm653_vm7, 1, %v9119_v2  ;;  %vm656_vm8 = vcmp.lt.s32.totalorder %v5237_v28, %v5492_v53  ;;  %vm655_vm9 = vcmp.lt.s32.totalorder %v5240_v29, %v5492_v53 }
 0x11f   : > { %vm658_vm10 = vcmp.lt.s32.totalorder %v5245_v32, %v5492_v53  ;;  %vm657_vm11 = vcmp.lt.s32.totalorder %v5252_v33, %v5492_v53  ;;  %vm660_vm12 = vcmp.lt.s32.totalorder %v5257_v37, %v5492_v53  ;;  %vm659_vm13 = vcmp.lt.s32.totalorder %v5264_v38, %v5492_v53 }
 0x120   : > { %vm662_vm14 = vcmp.lt.s32.totalorder %v5272_v42, %v5492_v53 }
 0x122   : > { %1476 = vperm.xlu1 %4592, %v1229_v57   ;;  %1473 = vperm.xlu0 %4591, %v1228_v58   ;;  %v1248_v57 = vsel %vm645_vm15, 1, %v9119_v2  ;;  %vm661_vm15 = vcmp.lt.s32.totalorder %v5279_v43, %v5492_v53 }
 0x126   : > { %1482 = vperm.xlu1 %4592, %v1231_v60   ;;  %1479 = vperm.xlu0 %4591, %v1230_v61   ;;  %v1251_v60 = vsel %vm648_vm0, 1, %v9119_v2  ;;  %v1250_v61 = vsel %vm647_vm1, 1, %v9119_v2 }
 0x129   : > { %v5414_v1 = vpop.permute.xlu0 %1299  ;;  %v5416_v3 = vpop.permute.xlu1 %1305 }
 0x12a   : > { %1488 = vperm.xlu1 %4592, %v1233_v63   ;;  %1485 = vperm.xlu0 %4591, %v1232_v0   ;;  %v1253_v0 = vsel %vm650_vm2, 1, %v9119_v2 }
 0x12d   : > { %v5424_v9 = vpop.permute.xlu1 %1308  ;;  %v5426_v11 = vpop.permute.xlu0 %1302 }
 0x12e   : > { %1494 = vperm.xlu1 %4592, %v1235_v4   ;;  %1491 = vperm.xlu0 %4591, %v1234_v6   ;;  %v1252_v4 = vsel %vm649_vm3, 1, %v9119_v2  ;;  %vm1683_vm2 = vcmp.eq.s32.totalorder %v5426_v11, 1  ;;  %vm1682_vm3 = vcmp.eq.s32.totalorder %v5414_v1, 1  ;;  %v913_v1 = vld [vmem:[%s5126_s16] sm:$0xf] }
 0x12f   : > { %vm5612_vm7 = vmpackc.low %vm1682_vm3, %vm1682_vm3 }
 0x131   : > { %v5434_v20 = vpop.permute.xlu1 %1314  ;;  %v5436_v21 = vpop.permute.xlu0 %1311 }
 0x132   : > { %1500 = vperm.xlu1 %4592, %v1237_v13   ;;  %1497 = vperm.xlu0 %4591, %v1236_v17   ;;  %v1255_v17 = vsel %vm652_vm4, 1, %v9119_v2  ;;  %vm5599_vm4 = vmpackc.low %vm1683_vm2, %vm1683_vm2 }
 0x135   : > { %v5444_v26 = vpop.permute.xlu1 %1320  ;;  %v5446_v27 = vpop.permute.xlu0 %1317 }
 0x136   : > { %1506 = vperm.xlu1 %4592, %v1239_v22   ;;  %1503 = vperm.xlu0 %4591, %v1238_v23   ;;  %v1254_v22 = vsel %vm651_vm5, 1, %v9119_v2 }
 0x139   : > { %v5456_v35 = vpop.permute.xlu1 %1326  ;;  %v5458_v36 = vpop.permute.xlu0 %1323 }
 0x13a   : > { %1512 = vperm.xlu1 %4592, %v1241_v30   ;;  %1509 = vperm.xlu0 %4591, %v1240_v31   ;;  %v1257_v31 = vsel %vm654_vm6, 1, %v9119_v2 }
 0x13d   : > { %v5469_v44 = vpop.permute.xlu1 %1332  ;;  %v5471_v45 = vpop.permute.xlu0 %1329 }
 0x13e   : > { %1518 = vperm.xlu1 %4592, %v1243_v40   ;;  %1515 = vperm.xlu0 %4591, %v1242_v39  }
 0x141   : > { %v5481_v49 = vpop.permute.xlu1 %1338  ;;  %v5483_v50 = vpop.permute.xlu0 %1335 }
 0x142   : > { %1524 = vperm.xlu1 %4592, %v1245_v46   ;;  %1521 = vperm.xlu0 %4591, %v1244_v47   ;;  %v1259_v46 = vsel %vm656_vm8, 1, %v9119_v2  ;;  %v1258_v47 = vsel %vm655_vm9, 1, %v9119_v2  ;;  %vm1684_vm8 = vcmp.eq.s32.totalorder %v5416_v3, 1  ;;  %v915_v3 = vld [vmem:[%s5126_s16 + $0x8] sm:$0xf] }
 0x145   : > { %v5494_v54 = vpop.permute.xlu1 %1344  ;;  %v5496_v7 = vpop.permute.xlu0 %1341 }
 0x146   : > { %9241 = vst [vmem:[#allocation49_spill] sm:$0xff] %v5494_v54  ;;  %9242 = vst [vmem:[#allocation50_spill] sm:$0xff] %v5496_v7  ;;  %1530 = vperm.xlu1 %4592, %v1247_v51   ;;  %1527 = vperm.xlu0 %4591, %v1246_v52  }
 0x149   : > { %v5504_v58 = vpop.permute.xlu1 %1350  ;;  %v5506_v59 = vpop.permute.xlu0 %1347 }
 0x14a   : > { %1536 = vperm.xlu1 %4592, %v1249_v55   ;;  %1533 = vperm.xlu0 %4591, %v1248_v57   ;;  %v1261_v55 = vsel %vm658_vm10, 1, %v9119_v2  ;;  %v1260_v57 = vsel %vm657_vm11, 1, %v9119_v2  ;;  %vm5632_vm11 = vmpackc.low %vm1684_vm8, %vm1684_vm8  ;;  %vm1699_vm2 = vcmp.eq.s32.totalorder %v5504_v58, 1  ;;  %v917_v58 = vld [vmem:[%s5126_s16 + $0x10] sm:$0xf] }
 0x14d   : > { %v5514_v62 = vpop.permute.xlu1 %1356  ;;  %v5516_v63 = vpop.permute.xlu0 %1353 }
 0x14e   : > { %1542 = vperm.xlu1 %4592, %v1251_v60   ;;  %1539 = vperm.xlu0 %4591, %v1250_v61   ;;  %v533_v60 = vsub.s32 %v523_v48, %v5180_v10  ;;  %vm1700_vm8 = vcmp.eq.s32.totalorder %v5516_v63, 1 }
 0x151   : > { %v5524_v6 = vpop.permute.xlu1 %1362  ;;  %v5526_v13 = vpop.permute.xlu0 %1359 }
 0x152   : > { %1548 = vperm.xlu1 %4592, %v1253_v0   ;;  %1545 = vperm.xlu0 %4591, %v1252_v4   ;;  %v1263_v0 = vsel %vm660_vm12, 1, %v9119_v2  ;;  %v1262_v4 = vsel %vm659_vm13, 1, %v9119_v2  ;;  %vm1685_vm12 = vcmp.eq.s32.totalorder %v5424_v9, 1  ;;  %v525_v9 = vcombine.high %v5467_v41, %v5467_v41 }
 0x155   : > { %v5534_v23 = vpop.permute.xlu1 %1368  ;;  %v5536_v30 = vpop.permute.xlu0 %1365 }
 0x156   : > { %1554 = vperm.xlu1 %4592, %v1255_v17   ;;  %1551 = vperm.xlu0 %4591, %v1254_v22   ;;  %v5578_v17 = vrot.slane %v533_v60, %v5186_v12 }
 0x158   : > { %vm664_vm0 = vcmp.lt.s32.totalorder %v5197_v16, %v5578_v17  ;;  %vm663_vm1 = vcmp.lt.s32.totalorder %v5169_v5, %v5578_v17  ;;  %vm666_vm5 = vcmp.lt.s32.totalorder %v5194_v15, %v5578_v17  ;;  %vm665_vm6 = vcmp.lt.s32.totalorder %v5191_v14, %v5578_v17 }
 0x159   : > { %v5544_v40 = vpop.permute.xlu1 %1374  ;;  %v5546_v39 = vpop.permute.xlu0 %1371  ;;  %v1267_v48 = vsel %vm664_vm0, 1, %v9119_v2  ;;  %vm668_vm9 = vcmp.lt.s32.totalorder %v5203_v18, %v5578_v17  ;;  %vm667_vm10 = vcmp.lt.s32.totalorder %v5206_v19, %v5578_v17  ;;  %vm670_vm13 = vcmp.lt.s32.totalorder %v5225_v24, %v5578_v17 }
 0x15a   : > { %1560 = vperm.xlu1 %4592, %v1257_v31   ;;  %1557 = vperm.xlu0 %4591, %v1256_v34   ;;  %v1265_v34 = vsel %vm662_vm14, 1, %v9119_v2  ;;  %vm669_vm14 = vcmp.lt.s32.totalorder %v5228_v25, %v5578_v17  ;;  %vm1686_vm0 = vcmp.eq.s32.totalorder %v5436_v21, 1  ;;  %vm671_vm3 = vcmp.lt.s32.totalorder %v5240_v29, %v5578_v17 }
 0x15d   : > { %v5556_v51 = vpop.permute.xlu1 %1380  ;;  %v5558_v52 = vpop.permute.xlu0 %1377 }
 0x15e   : > { %9243 = vst [vmem:[#allocation51_spill] sm:$0xff] %v5556_v51  ;;  %1566 = vperm.xlu1 %4592, %v1259_v46   ;;  %1563 = vperm.xlu0 %4591, %v1258_v47   ;;  %v1264_v46 = vsel %vm661_vm15, 1, %v9119_v2  ;;  %vm5652_vm15 = vmpackc.low %vm1685_vm12, %vm1685_vm12  ;;  %vm676_vm12 = vcmp.lt.s32.totalorder %v5257_v37, %v5578_v17  ;;  %v931_v51 = vld [vmem:[%s5126_s16 + $0x48] sm:$0xf] }
 0x161   : > { %v5567_v61 = vpop.permute.xlu1 %1386  ;;  %v5569_v56 = vpop.permute.xlu0 %1383 }
 0x162   : > { %9244 = vst [vmem:[#allocation52_spill] sm:$0xff] %v5567_v61  ;;  %9245 = vst [vmem:[#allocation53_spill] sm:$0xff] %v5569_v56  ;;  %1572 = vperm.xlu1 %4592, %v1261_v55   ;;  %1569 = vperm.xlu0 %4591, %v1260_v57   ;;  %v1266_v55 = vsel %vm663_vm1, 1, %v9119_v2  ;;  %v914_v57 = vld [vmem:[%s5126_s16 + $0x4] sm:$0xf]  ;;  %v1271_v61 = vsel %vm668_vm9, 1, %v9119_v2  ;;  %vm672_vm1 = vcmp.lt.s32.totalorder %v5237_v28, %v5578_v17 }
 0x163   : > { %v1940_v56 = vsel %vm5632_vm11, %v915_v3, 0  ;;  %v1273_v3 = vsel %vm670_vm13, 1, %v9119_v2  ;;  %vm674_vm9 = vcmp.lt.s32.totalorder %v5245_v32, %v5578_v17 }
 0x165   : > { %v5580_v22 = vpop.permute.xlu1 %1392  ;;  %v5582_v31 = vpop.permute.xlu0 %1389 }
 0x166   : > { %9246 = vst [vmem:[#allocation54_spill] sm:$0xff] %v5580_v22  ;;  %9247 = vst [vmem:[#allocation55_spill] sm:$0xff] %v5582_v31  ;;  %1578 = vperm.xlu1 %4592, %v1263_v0   ;;  %1575 = vperm.xlu0 %4591, %v1262_v4   ;;  %v1268_v22 = vsel %vm665_vm6, 1, %v9119_v2  ;;  %v1938_v31 = vsel %vm5612_vm7, %v913_v1, 0  ;;  %v1270_v4 = vsel %vm667_vm10, 1, %v9119_v2  ;;  %vm673_vm10 = vcmp.lt.s32.totalorder %v5252_v33, %v5578_v17 }
 0x167   : > { %v2066_v1 = vunpack.c.l.bf16 %v1938_v31  ;;  %vm5674_vm6 = vmpackc.low %vm1686_vm0, %vm1686_vm0  ;;  %vm1688_vm0 = vcmp.eq.s32.totalorder %v5446_v27, 1 }
 0x168   : > { %vm5679_vm7 = vmpackc.low %vm1699_vm2, %vm1699_vm2  ;;  %vm677_vm2 = vcmp.lt.s32.totalorder %v5279_v43, %v5578_v17 }
 0x169   : > { %v5591_v53 = vpop.permute.xlu1 %1398  ;;  %v5593_v47 = vpop.permute.xlu0 %1395 }
 0x16a   : > { %1584 = vperm.xlu1 %4592, %v1265_v34   ;;  %1581 = vperm.xlu0 %4591, %v1264_v46   ;;  %v1939_v34 = vsel %vm5599_vm4, %v914_v57, 0  ;;  %v1269_v46 = vsel %vm666_vm5, 1, %v9119_v2  ;;  %v1272_v57 = vsel %vm669_vm14, 1, %v9119_v2  ;;  %vm1698_vm4 = vcmp.eq.s32.totalorder %v5506_v59, 1 }
 0x16b   : > { %v2067_v60 = vunpack.c.l.bf16 %v1939_v34  ;;  %vm1687_vm5 = vcmp.eq.s32.totalorder %v5434_v20, 1  ;;  %vm5694_vm11 = vmpackc.low %vm1698_vm4, %vm1698_vm4  ;;  %vm675_vm14 = vcmp.lt.s32.totalorder %v5264_v38, %v5578_v17 }
 0x16c   : > { %vm5703_vm13 = vmpackc.low %vm1687_vm5, %vm1687_vm5  ;;  %vm1689_vm5 = vcmp.eq.s32.totalorder %v5444_v26, 1 }
 0x16d   : > { %v5607_v11 = vpop.permute.xlu1 %1404  ;;  %v5609_v0 = vpop.permute.xlu0 %1401  ;;  %v2194_v31 = vadd.f32 %v2067_v60, %v2066_v1  ;;  %v534_v60 = vsub.s32 %v525_v9, %v5180_v10  ;;  %v1275_v1 = vsel %vm672_vm1, 1, %v9119_v2  ;;  %vm678_vm1 = vcmp.lt.s32.totalorder %v5272_v42, %v5578_v17 }
 0x16e   : > { %1590 = vperm.xlu1 %4592, %v1267_v48   ;;  %1587 = vperm.xlu0 %4591, %v1266_v55  }
 0x171   : > { %v5627_v48 = vpop.permute.xlu1 %1410  ;;  %v5629_v55 = vpop.permute.xlu0 %1407 }
 0x172   : > { %1596 = vperm.xlu1 %4592, %v1269_v46   ;;  %1593 = vperm.xlu0 %4591, %v1268_v22   ;;  %v916_v22 = vld [vmem:[%s5126_s16 + $0xc] sm:$0xf]  ;;  %v930_v46 = vld [vmem:[%s5126_s16 + $0x44] sm:$0xf] }
 0x173   : > { %v1941_v41 = vsel %vm5652_vm15, %v916_v22, 0  ;;  %vm5723_vm15 = vmpackc.low %vm1700_vm8, %vm1700_vm8  ;;  %v1955_v63 = vsel %vm5679_vm7, %v930_v46, 0  ;;  %vm1702_vm7 = vcmp.eq.s32.totalorder %v5526_v13, 1 }
 0x174   : > { %v2069_v9 = vunpack.c.l.bf16 %v1941_v41  ;;  %v1942_v41 = vsel %vm5674_vm6, %v917_v58, 0  ;;  %v9270_v58 = vmov 0   ;;  %v1956_v46 = vsel %vm5723_vm15, %v931_v51, 0  ;;  %vm5765_vm6 = vmpackc.low %vm1688_vm0, %vm1688_vm0 }
 0x175   : > { %v5645_v54 = vpop.permute.xlu1 %1416  ;;  %v5647_v34 = vpop.permute.xlu0 %1413  ;;  %v2083_v7 = vunpack.c.l.bf16 %v1955_v63  ;;  %vm5818_vm15 = vmpackc.low %vm1702_vm7, %vm1702_vm7  ;;  %vm1690_vm0 = vcmp.eq.s32.totalorder %v5458_v36, 1  ;;  %v949_v63 = vld [vmem:[%s5126_s16 + $0x90] sm:$0xf] }
 0x176   : > { %9254 = vst [vmem:[#allocation56_spill] sm:$0xff] %v5645_v54  ;;  %1602 = vperm.xlu1 %4592, %v1271_v61   ;;  %1599 = vperm.xlu0 %4591, %v1270_v4   ;;  %v2068_v54 = vunpack.c.l.bf16 %v1940_v56  ;;  %v1277_v56 = vsel %vm674_vm9, 1, %v9270_v58 }
 0x178   : > { %v2195_v4 = vadd.f32 %v2194_v31, %v2068_v54  ;;  %v1274_v54 = vsel %vm671_vm3, 1, %v9119_v2  ;;  %v929_v31 = vld [vmem:[%s5126_s16 + $0x40] sm:$0xf]  ;;  %vm1701_vm3 = vcmp.eq.s32.totalorder %v5514_v62, 1 }
 0x179   : > { %v5667_v61 = vpop.permute.xlu1 %1422  ;;  %v5669_v21 = vpop.permute.xlu0 %1419 }
 0x17a   : > { %9257 = vst [vmem:[#allocation57_spill] sm:$0xff] %v5667_v61  ;;  %9258 = vst [vmem:[#allocation58_spill] sm:$0xff] %v5669_v21  ;;  %1608 = vperm.xlu1 %4592, %v1273_v3   ;;  %1605 = vperm.xlu0 %4591, %v1272_v57   ;;  %v5716_v61 = vrot.slane %v534_v60, %v5186_v12  ;;  %v918_v21 = vld [vmem:[%s5126_s16 + $0x14] sm:$0xf]  ;;  %v2196_v20 = vadd.f32 %v2195_v4, %v2069_v9  ;;  %v1276_v60 = vsel %vm673_vm10, 1, %v9270_v58 }
 0x17b   : > { %v1954_v4 = vsel %vm5694_vm11, %v929_v31, 0  ;;  %v1278_v9 = vsel %vm675_vm14, 1, %v9270_v58  ;;  %v1943_v22 = vsel %vm5703_vm13, %v918_v21, 0  ;;  %v1281_v57 = vsel %vm678_vm1, 1, %v9270_v58  ;;  %vm5782_vm10 = vmpackc.low %vm1701_vm3, %vm1701_vm3 }
 0x17c   : > { %vm680_vm4 = vcmp.lt.s32.totalorder %v5197_v16, %v5716_v61  ;;  %v2082_v51 = vunpack.c.l.bf16 %v1954_v4  ;;  %vm679_vm8 = vcmp.lt.s32.totalorder %v5169_v5, %v5716_v61  ;;  %vm682_vm9 = vcmp.lt.s32.totalorder %v5194_v15, %v5716_v61  ;;  %vm5793_vm13 = vmpackc.low %vm1689_vm5, %vm1689_vm5 }
 0x17d   : > { %v5709_v2 = vpop.permute.xlu1 %1428  ;;  %v5711_v59 = vpop.permute.xlu0 %1425  ;;  %v2071_v27 = vunpack.c.l.bf16 %v1943_v22  ;;  %vm681_vm11 = vcmp.lt.s32.totalorder %v5191_v14, %v5716_v61  ;;  %v1280_v22 = vsel %vm677_vm2, 1, %v9270_v58  ;;  %v1283_v26 = vsel %vm680_vm4, 1, %v9270_v58  ;;  %vm5872_vm4 = vmpackc.low %vm1690_vm0, %vm1690_vm0 }
 0x17e   : > { %9267 = vst [vmem:[#allocation59_spill] sm:$0xff] %v5709_v2  ;;  %1614 = vperm.xlu1 %4592, %v1275_v1   ;;  %1611 = vperm.xlu0 %4591, %v1274_v54   ;;  %v1279_v1 = vsel %vm676_vm12, 1, %v9270_v58  ;;  %v2070_v54 = vunpack.c.l.bf16 %v1942_v41  ;;  %v919_v2 = vld [vmem:[%s5126_s16 + $0x18] sm:$0xf]  ;;  %vm684_vm12 = vcmp.lt.s32.totalorder %v5203_v18, %v5716_v61  ;;  %vm683_vm14 = vcmp.lt.s32.totalorder %v5206_v19, %v5716_v61 }
 0x17f   : > { %v1944_v62 = vsel %vm5765_vm6, %v919_v2, 0  ;;  %v2215_v2 = vadd.f32 %v2083_v7, %v2082_v51  ;;  %v1282_v17 = vsel %vm679_vm8, 1, %v9270_v58  ;;  %vm1691_vm1 = vcmp.eq.s32.totalorder %v5456_v35, 1 }
 0x180   : > { %v2197_v41 = vadd.f32 %v2196_v20, %v2070_v54  ;;  %v932_v20 = vld [vmem:[%s5126_s16 + $0x4c] sm:$0xf]  ;;  %v2072_v7 = vunpack.c.l.bf16 %v1944_v62  ;;  %vm1703_vm2 = vcmp.eq.s32.totalorder %v5524_v6, 1  ;;  %vm686_vm3 = vcmp.lt.s32.totalorder %v5225_v24, %v5716_v61  ;;  %vm5882_vm7 = vmpackc.low %vm1691_vm1, %vm1691_vm1 }
 0x181   : > { %v5754_v31 = vpop.permute.xlu1 %1434  ;;  %v5756_v3 = vpop.permute.xlu0 %1431  ;;  %v1957_v13 = vsel %vm5782_vm10, %v932_v20, 0  ;;  %v5855_v20 = vld.sshfl [vmem:[%s5163_s3] sm:$0xff pattern:$0x75316420]  ;;  %vm1704_vm5 = vcmp.eq.s32.totalorder %v5536_v30, 1  ;;  %vm685_vm6 = vcmp.lt.s32.totalorder %v5228_v25, %v5716_v61  ;;  %vm1715_vm8 = vcmp.eq.s32.totalorder %v5591_v53, 1 }
 0x182   : > { %9271 = vst [vmem:[#allocation60_spill] sm:$0xff] %v5754_v31  ;;  %9272 = vst [vmem:[#allocation61_spill] sm:$0xff] %v5756_v3  ;;  %1620 = vperm.xlu1 %4592, %v1277_v56   ;;  %1617 = vperm.xlu0 %4591, %v1276_v60   ;;  %v2084_v60 = vunpack.c.l.bf16 %v1956_v46  ;;  %v920_v46 = vld [vmem:[%s5126_s16 + $0x1c] sm:$0xf]  ;;  %v2198_v21 = vadd.f32 %v2197_v41, %v2071_v27  ;;  %v5830_v41 = vsel %vm682_vm9, 1, %v9270_v58  ;;  %v5852_v27 = vsel %vm683_vm14, 1, %v9270_v58 }
 0x183   : > { %v1945_v56 = vsel %vm5793_vm13, %v920_v46, 0  ;;  %v921_v3 = vld [vmem:[%s5126_s16 + $0x20] sm:$0xf]  ;;  %vm688_vm9 = vcmp.lt.s32.totalorder %v5237_v28, %v5716_v61  ;;  %vm687_vm10 = vcmp.lt.s32.totalorder %v5240_v29, %v5716_v61  ;;  %vm5906_vm13 = vmpackc.low %vm1704_vm5, %vm1704_vm5  ;;  %v5924_v30 = vsel %vm685_vm6, 1, %v9270_v58 }
 0x184   : > { %v2216_v51 = vadd.f32 %v2215_v2, %v2084_v60  ;;  %v2199_v2 = vadd.f32 %v2198_v21, %v2072_v7  ;;  %v2073_v36 = vunpack.c.l.bf16 %v1945_v56  ;;  %v922_v21 = vld [vmem:[%s5126_s16 + $0x24] sm:$0xf]  ;;  %vm690_vm14 = vcmp.lt.s32.totalorder %v5245_v32, %v5716_v61 }
 0x185   : > { %v5799_v4 = vpop.permute.xlu1 %1440  ;;  %v5801_v54 = vpop.permute.xlu0 %1437  ;;  %vm1716_vm0 = vcmp.eq.s32.totalorder %v5609_v0, 1  ;;  %v5947_v53 = vsel %vm687_vm10, 1, %v9270_v58  ;;  %vm1692_vm1 = vcmp.eq.s32.totalorder %v5471_v45, 1  ;;  %vm1705_vm5 = vcmp.eq.s32.totalorder %v5534_v23, 1 }
 0x186   : > { %9279 = vst [vmem:[#allocation62_spill] sm:$0xff] %v5799_v4  ;;  %9280 = vst [vmem:[#allocation63_spill] sm:$0xff] %v5801_v54  ;;  %v933_v4 = vld [vmem:[%s5126_s16 + $0x50] sm:$0xf]  ;;  %1626 = vperm.xlu1 %4592, %v1279_v1   ;;  %1623 = vperm.xlu0 %4591, %v1278_v9   ;;  %v5839_v1 = vsel %vm681_vm11, 1, %v9270_v58  ;;  %v5845_v9 = vsel %vm684_vm12, 1, %v9270_v58  ;;  %v2085_v54 = vunpack.c.l.bf16 %v1957_v13  ;;  %vm691_vm10 = vcmp.lt.s32.totalorder %v5264_v38, %v5716_v61 }
 0x187   : > { %v1958_v31 = vsel %vm5818_vm15, %v933_v4, 0  ;;  %vm5895_vm11 = vmpackc.low %vm1703_vm2, %vm1703_vm2  ;;  %vm1714_vm12 = vcmp.eq.s32.totalorder %v5593_v47, 1  ;;  %v1946_v13 = vsel %vm5872_vm4, %v921_v3, 0  ;;  %v2200_v3 = vadd.f32 %v2199_v2, %v2073_v36  ;;  %v937_v4 = vld [vmem:[%s5126_s16 + $0x60] sm:$0xf] }
 0x188   : > { %v2086_v46 = vunpack.c.l.bf16 %v1958_v31  ;;  %v5918_v31 = vsel %vm686_vm3, 1, %v9270_v58  ;;  %vm5932_vm15 = vmpackc.low %vm1715_vm8, %vm1715_vm8  ;;  %vm689_vm3 = vcmp.lt.s32.totalorder %v5252_v33, %v5716_v61  ;;  %v2074_v35 = vunpack.c.l.bf16 %v1946_v13  ;;  %v923_v13 = vld [vmem:[%s5126_s16 + $0x28] sm:$0xf] }
 0x189   : > { %v5862_v62 = vpop.permute.xlu1 %1446  ;;  %v5864_v60 = vpop.permute.xlu0 %1443  ;;  %vm5957_vm2 = vmpackc.low %vm1714_vm12, %vm1714_vm12  ;;  %v5973_v47 = vsel %vm690_vm14, 1, %v9270_v58  ;;  %vm1693_vm4 = vcmp.eq.s32.totalorder %v5469_v44, 1  ;;  %vm1717_vm12 = vcmp.eq.s32.totalorder %v5607_v11, 1  ;;  %v6041_v44 = vsel %vm689_vm3, 1, %v9270_v58 }
 0x18a   : > { %9283 = vst [vmem:[#allocation64_spill] sm:$0xff] %v5862_v62  ;;  %9284 = vst [vmem:[#allocation65_spill] sm:$0xff] %v5864_v60  ;;  %1632 = vperm.xlu1 %4592, %v1281_v57   ;;  %1629 = vperm.xlu0 %4591, %v1280_v22   ;;  %v934_v57 = vld [vmem:[%s5126_s16 + $0x54] sm:$0xf]  ;;  %v2217_v22 = vadd.f32 %v2216_v51, %v2085_v54  ;;  %v935_v51 = vld [vmem:[%s5126_s16 + $0x58] sm:$0xf] }
 0x18b   : > { %v5941_v54 = vsel %vm688_vm9, 1, %v9270_v58  ;;  %v1959_v2 = vsel %vm5895_vm11, %v934_v57, 0  ;;  %v1947_v57 = vsel %vm5882_vm7, %v922_v21, 0  ;;  %v1960_v60 = vsel %vm5906_vm13, %v935_v51, 0  ;;  %v947_v62 = vld [vmem:[%s5126_s16 + $0x88] sm:$0xf]  ;;  %vm5983_vm6 = vmpackc.low %vm1716_vm0, %vm1716_vm0 }
 0x18c   : > { %vm692_vm7 = vcmp.lt.s32.totalorder %v5257_v37, %v5716_v61  ;;  %v2201_v21 = vadd.f32 %v2200_v3, %v2074_v35  ;;  %vm5997_vm8 = vmpackc.low %vm1692_vm1, %vm1692_vm1  ;;  %v2087_v7 = vunpack.c.l.bf16 %v1959_v2  ;;  %v2075_v3 = vunpack.c.l.bf16 %v1947_v57  ;;  %v936_v2 = vld [vmem:[%s5126_s16 + $0x5c] sm:$0xf] }
 0x18d   : > { %v5910_v6 = vpop.permute.xlu1 %1452  ;;  %v5912_v56 = vpop.permute.xlu0 %1449  ;;  %vm1706_vm9 = vcmp.eq.s32.totalorder %v5546_v39, 1  ;;  %vm6016_vm11 = vmpackc.low %vm1705_vm5, %vm1705_vm5  ;;  %v1948_v23 = vsel %vm5997_vm8, %v923_v13, 0  ;;  %v6064_v39 = vsel %vm691_vm10, 1, %v9270_v58  ;;  %vm1694_vm0 = vcmp.eq.s32.totalorder %v5483_v50, 1  ;;  %v938_v50 = vld [vmem:[%s5126_s16 + $0x64] sm:$0xf] }
 0x18e   : > { %9293 = vst [vmem:[#allocation66_spill] sm:$0xff] %v5910_v6  ;;  %9294 = vst [vmem:[#allocation67_spill] sm:$0xff] %v5912_v56  ;;  %1638 = vperm.xlu1 %4592, %v1283_v26   ;;  %1635 = vperm.xlu0 %4591, %v1282_v17   ;;  %v946_v26 = vld [vmem:[%s5126_s16 + $0x84] sm:$0xf]  ;;  %v945_v17 = vld [vmem:[%s5126_s16 + $0x80] sm:$0xf]  ;;  %v5965_v6 = vrot.slane %v5855_v20, %v5176_v8  ;;  %v2218_v56 = vadd.f32 %v2217_v22, %v2086_v46 }
 0x18f   : > { %v1971_v51 = vsel %vm5932_vm15, %v946_v26, 0  ;;  %v1972_v26 = vsel %vm5983_vm6, %v947_v62, 0  ;;  %vm6027_vm13 = vmpackc.low %vm1693_vm4, %vm1693_vm4  ;;  %v2202_v62 = vadd.f32 %v2201_v21, %v2075_v3  ;;  %vm1718_vm15 = vcmp.eq.s32.totalorder %v5629_v55, 1  ;;  %v948_v21 = vld [vmem:[%s5126_s16 + $0x8c] sm:$0xf] }
 0x190   : > { %v745_v45 = vsub.s32 %v5965_v6, %v5180_v10  ;;  %v2099_v57 = vunpack.c.l.bf16 %v1971_v51  ;;  %vm6047_vm14 = vmpackc.low %vm1706_vm9, %vm1706_vm9  ;;  %v2100_v0 = vunpack.c.l.bf16 %v1972_v26  ;;  %v2076_v3 = vunpack.c.l.bf16 %v1948_v23  ;;  %v926_v13 = vld [vmem:[%s5126_s16 + $0x34] sm:$0xf] }
 0x191   : > { %v5987_v22 = vpop.permute.xlu1 %1458  ;;  %v5989_v46 = vpop.permute.xlu0 %1455  ;;  %vm6073_vm1 = vmpackc.low %vm1717_vm12, %vm1717_vm12  ;;  %vm1707_vm3 = vcmp.eq.s32.totalorder %v5544_v40, 1  ;;  %v1962_v11 = vsel %vm6047_vm14, %v937_v4, 0  ;;  %vm693_vm5 = vcmp.lt.s32.totalorder %v5279_v43, %v5716_v61  ;;  %vm1695_vm6 = vcmp.eq.s32.totalorder %v5481_v49, 1 }
 0x192   : > { %9301 = vst [vmem:[#allocation68_spill] sm:$0xff] %v5987_v22  ;;  %v1970_v22 = vsel %vm5957_vm2, %v945_v17, 0  ;;  %1644 = vperm.xlu1 %4592, %v5830_v41   ;;  %1641 = vperm.xlu0 %4591, %v5839_v1   ;;  %v2219_v41 = vadd.f32 %v2218_v56, %v2087_v7  ;;  %v2088_v1 = vunpack.c.l.bf16 %v1960_v60  ;;  %v924_v17 = vld [vmem:[%s5126_s16 + $0x2c] sm:$0xf]  ;;  %v6078_v7 = vrot.slane %v745_v45, %v5186_v12  ;;  %vm6091_vm4 = vmpackc.low %vm1718_vm15, %vm1718_vm15 }
 0x193   : > { %v2098_v56 = vunpack.c.l.bf16 %v1970_v22  ;;  %v6058_v22 = vsel %vm692_vm7, 1, %v9270_v58  ;;  %v1949_v51 = vsel %vm6027_vm13, %v924_v17, 0  ;;  %vm694_vm2 = vcmp.lt.s32.totalorder %v5272_v42, %v5716_v61  ;;  %v925_v17 = vld [vmem:[%s5126_s16 + $0x30] sm:$0xf]  ;;  %vm6106_vm7 = vmpackc.low %vm1694_vm0, %vm1694_vm0 }
 0x194   : > { %v1973_v23 = vsel %vm6073_vm1, %v948_v21, 0  ;;  %vm1708_vm8 = vcmp.eq.s32.totalorder %v5558_v52, 1  ;;  %vm786_vm9 = vcmp.lt.s32.totalorder %v5197_v16, %v6078_v7  ;;  %vm6121_vm10 = vmpackc.low %vm1707_vm3, %vm1707_vm3  ;;  %v1950_v40 = vsel %vm6106_vm7, %v925_v17, 0 }
 0x195   : > { %v6033_v60 = vpop.permute.xlu1 %1464  ;;  %v6035_v35 = vpop.permute.xlu0 %1461  ;;  %vm6132_vm12 = vmpackc.low %vm1695_vm6, %vm1695_vm6  ;;  %v2101_v21 = vunpack.c.l.bf16 %v1973_v23  ;;  %vm785_vm13 = vcmp.lt.s32.totalorder %v5169_v5, %v6078_v7  ;;  %vm1720_vm15 = vcmp.eq.s32.totalorder %v5647_v34, 1  ;;  %v6171_v52 = vsel %vm786_vm9, 1, %v9270_v58  ;;  %v927_v34 = vld [vmem:[%s5126_s16 + $0x38] sm:$0xf] }
 0x196   : > { %9308 = vst [vmem:[#allocation69_spill] sm:$0xff] %v6033_v60  ;;  %1650 = vperm.xlu1 %4592, %v5845_v9   ;;  %1647 = vperm.xlu0 %4591, %v5852_v27   ;;  %v1961_v9 = vsel %vm6016_vm11, %v936_v2, 0  ;;  %v2220_v60 = vadd.f32 %v2219_v41, %v2088_v1  ;;  %v2236_v2 = vadd.f32 %v2099_v57, %v2098_v56  ;;  %v2077_v57 = vunpack.c.l.bf16 %v1949_v51  ;;  %v939_v51 = vld [vmem:[%s5126_s16 + $0x68] sm:$0xf]  ;;  %vm6154_vm14 = vmpackc.low %vm1708_vm8, %vm1708_vm8 }
 0x197   : > { %v2203_v1 = vadd.f32 %v2202_v62, %v2076_v3  ;;  %v2089_v36 = vunpack.c.l.bf16 %v1961_v9  ;;  %vm1719_vm11 = vcmp.eq.s32.totalorder %v5627_v48, 1  ;;  %v2078_v17 = vunpack.c.l.bf16 %v1950_v40  ;;  %v9328_v48 = vld [vmem:[#allocation51_spill] sm:$0xff]  ;;  %vm6199_vm3 = vmpackc.low %vm1720_vm15, %vm1720_vm15 }
 0x198   : > { %v2237_v56 = vadd.f32 %v2236_v2, %v2100_v0  ;;  %v6146_v0 = vsel %vm694_vm2, 1, %v9270_v58  ;;  %v9325_v2 = vld [vmem:[#allocation50_spill] sm:$0xff]  ;;  %vm6180_vm1 = vmpackc.low %vm1719_vm11, %vm1719_vm11  ;;  %vm1709_vm2 = vcmp.eq.s32.totalorder %v9328_v48, 1  ;;  %v1964_v23 = vsel %vm6154_vm14, %v939_v51, 0  ;;  %v940_v51 = vld [vmem:[%s5126_s16 + $0x6c] sm:$0xf] }
 0x199   : > { %v6095_v26 = vpop.permute.xlu1 %1470  ;;  %v6097_v41 = vpop.permute.xlu0 %1467  ;;  %v2221_v4 = vadd.f32 %v2220_v60, %v2089_v36  ;;  %v2204_v49 = vadd.f32 %v2203_v1, %v2077_v57  ;;  %vm1696_vm0 = vcmp.eq.s32.totalorder %v9325_v2, 1  ;;  %v1951_v1 = vsel %vm6132_vm12, %v926_v13, 0  ;;  %v951_v57 = vld [vmem:[%s5126_s16 + $0x98] sm:$0xf]  ;;  %v953_v3 = vld [vmem:[%s5126_s16 + $0xa0] sm:$0xf] }
 0x19a   : > { %1656 = vperm.xlu1 %4592, %v5918_v31   ;;  %1653 = vperm.xlu0 %4591, %v5924_v30   ;;  %v2090_v31 = vunpack.c.l.bf16 %v1962_v11  ;;  %v1974_v30 = vsel %vm6091_vm4, %v949_v63, 0  ;;  %v6165_v11 = vsel %vm693_vm5, 1, %v9270_v58  ;;  %v950_v63 = vld [vmem:[%s5126_s16 + $0x94] sm:$0xf]  ;;  %v2238_v61 = vadd.f32 %v2237_v56, %v2101_v21  ;;  %vm6216_vm7 = vmpackc.low %vm1696_vm0, %vm1696_vm0  ;;  %v9336_v21 = vld [vmem:[#allocation53_spill] sm:$0xff] }
 0x19b   : > { %v2102_v45 = vunpack.c.l.bf16 %v1974_v30  ;;  %v6190_v36 = vsel %vm785_vm13, 1, %v9270_v58  ;;  %vm788_vm4 = vcmp.lt.s32.totalorder %v5194_v15, %v6078_v7  ;;  %vm787_vm5 = vcmp.lt.s32.totalorder %v5191_v14, %v6078_v7  ;;  %v9352_v56 = vld [vmem:[#allocation55_spill] sm:$0xff] }
 0x19c   : > { %v2222_v55 = vadd.f32 %v2221_v4, %v2090_v31  ;;  %v2205_v4 = vadd.f32 %v2204_v49, %v2078_v17  ;;  %v9333_v31 = vld [vmem:[#allocation49_spill] sm:$0xff]  ;;  %v1975_v9 = vsel %vm6180_vm1, %v950_v63, 0  ;;  %v2079_v40 = vunpack.c.l.bf16 %v1951_v1  ;;  %v928_v63 = vld [vmem:[%s5126_s16 + $0x3c] sm:$0xf] }
 0x19d   : > { %v6138_v60 = vpop.permute.xlu1 %1476  ;;  %v6140_v27 = vpop.permute.xlu0 %1473  ;;  %vm1697_vm6 = vcmp.eq.s32.totalorder %v9333_v31, 1  ;;  %vm1710_vm8 = vcmp.eq.s32.totalorder %v9336_v21, 1  ;;  %v2239_v49 = vadd.f32 %v2238_v61, %v2102_v45  ;;  %vm790_vm9 = vcmp.lt.s32.totalorder %v5203_v18, %v6078_v7  ;;  %v9346_v31 = vld [vmem:[#allocation58_spill] sm:$0xff] }
 0x19e   : > { %9321 = vst [vmem:[#allocation70_spill] sm:$0xff] %v6138_v60  ;;  %9322 = vst [vmem:[#allocation71_spill] sm:$0xff] %v6140_v27  ;;  %1662 = vperm.xlu1 %4592, %v5941_v54   ;;  %1659 = vperm.xlu0 %4591, %v5947_v53   ;;  %v1963_v54 = vsel %vm6121_vm10, %v938_v50, 0  ;;  %v1952_v61 = vsel %vm6216_vm7, %v927_v34, 0  ;;  %v2103_v45 = vunpack.c.l.bf16 %v1975_v9  ;;  %v711_v48 = vcombine.high %v5855_v20, %v5855_v20  ;;  %v952_v34 = vld [vmem:[%s5126_s16 + $0x9c] sm:$0xf] }
 0x19f   : > { %v2091_v13 = vunpack.c.l.bf16 %v1963_v54  ;;  %vm6231_vm10 = vmpackc.low %vm1709_vm2, %vm1709_vm2  ;;  %v9339_v54 = vld [vmem:[#allocation56_spill] sm:$0xff]  ;;  %vm1722_vm14 = vcmp.eq.s32.totalorder %v9346_v31, 1  ;;  %v6275_v20 = vsel %vm787_vm5, 1, %v9270_v58  ;;  %vm789_vm15 = vcmp.lt.s32.totalorder %v5206_v19, %v6078_v7  ;;  %v960_v27 = vld [vmem:[%s5126_s16 + $0xbc] sm:$0xf] }
 0x1a0   : > { %vm1721_vm11 = vcmp.eq.s32.totalorder %v9339_v54, 1  ;;  %vm6242_vm12 = vmpackc.low %vm1697_vm6, %vm1697_vm6  ;;  %vm792_vm1 = vcmp.lt.s32.totalorder %v5225_v24, %v6078_v7  ;;  %vm1712_vm5 = vcmp.eq.s32.totalorder %v9352_v56, 1 }
 0x1a1   : > { %v6203_v50 = vpop.permute.xlu1 %1482  ;;  %v6205_v62 = vpop.permute.xlu0 %1479  ;;  %v2223_v2 = vadd.f32 %v2222_v55, %v2091_v13  ;;  %v6256_v55 = vsel %vm788_vm4, 1, %v9270_v58  ;;  %vm6264_vm13 = vmpackc.low %vm1710_vm8, %vm1710_vm8  ;;  %v6293_v13 = vsel %vm790_vm9, 1, %v9270_v58  ;;  %v1953_v9 = vsel %vm6242_vm12, %v928_v63, 0 }
 0x1a2   : > { %9331 = vst [vmem:[#allocation50_spill] sm:$0xff] %v6203_v50  ;;  %9332 = vst [vmem:[#allocation51_spill] sm:$0xff] %v6205_v62  ;;  %1668 = vperm.xlu1 %4592, %v5973_v47   ;;  %1665 = vperm.xlu0 %4591, %v6041_v44   ;;  %v2092_v47 = vunpack.c.l.bf16 %v1964_v23  ;;  %v1976_v44 = vsel %vm6199_vm3, %v951_v57, 0  ;;  %v2206_v23 = vadd.f32 %v2205_v4, %v2079_v40  ;;  %v941_v57 = vld [vmem:[%s5126_s16 + $0x70] sm:$0xf]  ;;  %v1965_v4 = vsel %vm6231_vm10, %v940_v51, 0 }
 0x1a3   : > { %vm6285_vm0 = vmpackc.low %vm1721_vm11, %vm1721_vm11  ;;  %v2104_v30 = vunpack.c.l.bf16 %v1976_v44  ;;  %v2080_v40 = vunpack.c.l.bf16 %v1952_v61  ;;  %v9349_v51 = vld [vmem:[#allocation52_spill] sm:$0xff]  ;;  %v6321_v63 = vrot.slane %v711_v48, %v5176_v8  ;;  %v2093_v61 = vunpack.c.l.bf16 %v1965_v4 }
 0x1a4   : > { %v2224_v21 = vadd.f32 %v2223_v2, %v2092_v47  ;;  %vm1711_vm2 = vcmp.eq.s32.totalorder %v9349_v51, 1  ;;  %vm6306_vm3 = vmpackc.low %vm1722_vm14, %vm1722_vm14  ;;  %v6318_v47 = vsel %vm789_vm15, 1, %v9270_v58  ;;  %vm791_vm4 = vcmp.lt.s32.totalorder %v5228_v25, %v6078_v7  ;;  %v943_v51 = vld [vmem:[%s5126_s16 + $0x78] sm:$0xf] }
 0x1a5   : > { %v6248_v1 = vpop.permute.xlu1 %1488  ;;  %v6250_v17 = vpop.permute.xlu0 %1485  ;;  %v2207_v53 = vadd.f32 %v2206_v23, %v2080_v40  ;;  %v6334_v48 = vsel %vm792_vm1, 1, %v9270_v58  ;;  %v942_v23 = vld [vmem:[%s5126_s16 + $0x74] sm:$0xf]  ;;  %vm6340_vm6 = vmpackc.low %vm1711_vm2, %vm1711_vm2  ;;  %vm794_vm8 = vcmp.lt.s32.totalorder %v5237_v28, %v6078_v7  ;;  %vm793_vm9 = vcmp.lt.s32.totalorder %v5240_v29, %v6078_v7 }
 0x1a6   : > { %9342 = vst [vmem:[#allocation49_spill] sm:$0xff] %v6248_v1  ;;  %9343 = vst [vmem:[#allocation53_spill] sm:$0xff] %v6250_v17  ;;  %1674 = vperm.xlu1 %4592, %v6058_v22   ;;  %1671 = vperm.xlu0 %4591, %v6064_v39   ;;  %v2240_v39 = vadd.f32 %v2239_v49, %v2103_v45  ;;  %v1966_v49 = vsel %vm6264_vm13, %v941_v57, 0  ;;  %v1977_v45 = vsel %vm6285_vm0, %v952_v34, 0  ;;  %v2081_v57 = vunpack.c.l.bf16 %v1953_v9  ;;  %v9355_v34 = vld [vmem:[#allocation57_spill] sm:$0xff] }
 0x1a7   : > { %v2094_v4 = vunpack.c.l.bf16 %v1966_v49  ;;  %vm1723_vm7 = vcmp.eq.s32.totalorder %v9355_v34, 1  ;;  %v1978_v22 = vsel %vm6306_vm3, %v953_v3, 0  ;;  %v746_v40 = vsub.s32 %v6321_v63, %v5180_v10  ;;  %vm6361_vm10 = vmpackc.low %vm1712_vm5, %vm1712_vm5 }
 0x1a8   : > { %v2241_v31 = vadd.f32 %v2240_v39, %v2104_v30  ;;  %v2105_v39 = vunpack.c.l.bf16 %v1977_v45  ;;  %vm1724_vm11 = vcmp.eq.s32.totalorder %v5711_v59, 1  ;;  %v6372_v3 = vsel %vm791_vm4, 1, %v9270_v58  ;;  %vm6382_vm13 = vmpackc.low %vm1723_vm7, %vm1723_vm7 }
 0x1a9   : > { %v6310_v44 = vpop.permute.xlu1 %1494  ;;  %v6312_v2 = vpop.permute.xlu0 %1491  ;;  %vm796_vm12 = vcmp.lt.s32.totalorder %v5245_v32, %v6078_v7  ;;  %v1967_v54 = vsel %vm6340_vm6, %v942_v23, 0  ;;  %vm795_vm14 = vcmp.lt.s32.totalorder %v5252_v33, %v6078_v7  ;;  %v6398_v56 = vsel %vm793_vm9, 1, %v9270_v58  ;;  %vm6409_vm1 = vmpackc.low %vm1724_vm11, %vm1724_vm11 }
 0x1aa   : > { %1680 = vperm.xlu1 %4592, %v6146_v0   ;;  %1677 = vperm.xlu0 %4591, %v6165_v11   ;;  %v2225_v11 = vadd.f32 %v2224_v21, %v2093_v61  ;;  %v2208_v21 = vadd.f32 %v2207_v53, %v2081_v57  ;;  %v954_v53 = vld [vmem:[%s5126_s16 + $0xa4] sm:$0xf]  ;;  %v2106_v61 = vunpack.c.l.bf16 %v1978_v22  ;;  %v6392_v57 = vsel %vm794_vm8, 1, %v9270_v58  ;;  %v955_v0 = vld [vmem:[%s5126_s16 + $0xa8] sm:$0xf] }
 0x1ab   : > { %vm798_vm15 = vcmp.lt.s32.totalorder %v5257_v37, %v6078_v7  ;;  %v1968_v23 = vsel %vm6361_vm10, %v943_v51, 0  ;;  %v6421_v22 = vsel %vm796_vm12, 1, %v9270_v58  ;;  %v2095_v51 = vunpack.c.l.bf16 %v1967_v54 }
 0x1ac   : > { %v2226_v45 = vadd.f32 %v2225_v11, %v2094_v4  ;;  %v2209_v59 = vrot.slane %v2208_v21, 4  ;;  %v1979_v49 = vsel %vm6382_vm13, %v954_v53, 0  ;;  %v6434_v8 = vsel %vm795_vm14, 1, %v9270_v58 }
 0x1ad   : > { %v6347_v30 = vpop.permute.xlu1 %1500  ;;  %v6349_v9 = vpop.permute.xlu0 %1497  ;;  %vm797_vm2 = vcmp.lt.s32.totalorder %v5264_v38, %v6078_v7  ;;  %vm800_vm3 = vcmp.lt.s32.totalorder %v5272_v42, %v6078_v7  ;;  %v2096_v53 = vunpack.c.l.bf16 %v1968_v23  ;;  %vm799_vm6 = vcmp.lt.s32.totalorder %v5279_v43, %v6078_v7 }
 0x1ae   : > { %2520 = vperm.xlu1 %4592, %v6171_v52   ;;  %2517 = vperm.xlu0 %4591, %v6190_v36   ;;  %v2242_v36 = vadd.f32 %v2241_v31, %v2105_v39  ;;  %v9360_v31 = vld [vmem:[#allocation54_spill] sm:$0xff]  ;;  %v6424_v39 = vrot.slane %v746_v40, %v5186_v12  ;;  %v6440_v40 = vsel %vm798_vm15, 1, %v9270_v58  ;;  %v2227_v54 = vadd.f32 %v2226_v45, %v2095_v51  ;;  %v9366_v52 = vld [vmem:[#allocation59_spill] sm:$0xff] }
 0x1af   : > { %vm1713_vm0 = vcmp.eq.s32.totalorder %v9360_v31, 1  ;;  %vm1725_vm5 = vcmp.eq.s32.totalorder %v9366_v52, 1  ;;  %v2210_v45 = vadd.f32 %v2209_v59, %v2208_v21  ;;  %v9369_v31 = vld [vmem:[#allocation61_spill] sm:$0xff]  ;;  %v6494_v51 = vsel %vm800_vm3, 1, %v9270_v58 }
 0x1b0   : > { %v2243_v17 = vadd.f32 %v2242_v36, %v2106_v61  ;;  %vm6450_vm4 = vmpackc.low %vm1713_vm0, %vm1713_vm0  ;;  %v1980_v36 = vsel %vm6409_vm1, %v955_v0, 0  ;;  %v2107_v61 = vunpack.c.l.bf16 %v1979_v49  ;;  %vm802_vm7 = vcmp.lt.s32.totalorder %v5197_v16, %v6424_v39  ;;  %v956_v0 = vld [vmem:[%s5126_s16 + $0xac] sm:$0xf] }
 0x1b1   : > { %v6413_v4 = vpop.permute.xlu1 %1506  ;;  %v6415_v34 = vpop.permute.xlu0 %1503  ;;  %vm801_vm8 = vcmp.lt.s32.totalorder %v5169_v5, %v6424_v39  ;;  %vm1726_vm9 = vcmp.eq.s32.totalorder %v9369_v31, 1  ;;  %vm804_vm10 = vcmp.lt.s32.totalorder %v5194_v15, %v6424_v39  ;;  %vm803_vm11 = vcmp.lt.s32.totalorder %v5191_v14, %v6424_v39  ;;  %vm6480_vm12 = vmpackc.low %vm1725_vm5, %vm1725_vm5 }
 0x1b2   : > { %9363 = vst [vmem:[#allocation56_spill] sm:$0xff] %v6413_v4  ;;  %2526 = vperm.xlu1 %4592, %v6256_v55   ;;  %2523 = vperm.xlu0 %4591, %v6275_v20   ;;  %v944_v55 = vld [vmem:[%s5126_s16 + $0x7c] sm:$0xf]  ;;  %v2108_v11 = vunpack.c.l.bf16 %v1980_v36  ;;  %v2228_v59 = vadd.f32 %v2227_v54, %v2096_v53  ;;  %v6500_v49 = vsel %vm799_vm6, 1, %v9270_v58  ;;  %vm806_vm13 = vcmp.lt.s32.totalorder %v5203_v18, %v6424_v39  ;;  %vm6508_vm14 = vmpackc.low %vm1726_vm9, %vm1726_vm9 }
 0x1b3   : > { %v1969_v23 = vsel %vm6450_vm4, %v944_v55, 0  ;;  %v6520_v7 = vsel %vm802_vm7, 1, %v9270_v58  ;;  %v6526_v53 = vsel %vm801_vm8, 1, %v9270_v58  ;;  %v6532_v52 = vsel %vm804_vm10, 1, %v9270_v58 }
 0x1b4   : > { %v6538_v36 = vsel %vm803_vm11, 1, %v9270_v58  ;;  %v2097_v31 = vunpack.c.l.bf16 %v1969_v23  ;;  %v6551_v62 = vsel %vm806_vm13, 1, %v9270_v58  ;;  %vm805_vm0 = vcmp.lt.s32.totalorder %v5206_v19, %v6424_v39 }
 0x1b5   : > { %v6457_v1 = vpop.permute.xlu1 %1512  ;;  %v6459_v50 = vpop.permute.xlu0 %1509  ;;  %vm807_vm4 = vcmp.lt.s32.totalorder %v5228_v25, %v6424_v39  ;;  %vm810_vm5 = vcmp.lt.s32.totalorder %v5237_v28, %v6424_v39  ;;  %vm809_vm8 = vcmp.lt.s32.totalorder %v5240_v29, %v6424_v39  ;;  %vm812_vm9 = vcmp.lt.s32.totalorder %v5245_v32, %v6424_v39 }
 0x1b6   : > { %9367 = vst [vmem:[#allocation58_spill] sm:$0xff] %v6457_v1  ;;  %9368 = vst [vmem:[#allocation52_spill] sm:$0xff] %v6459_v50  ;;  %2532 = vperm.xlu1 %4592, %v6293_v13   ;;  %2529 = vperm.xlu0 %4591, %v6318_v47   ;;  %v2244_v13 = vadd.f32 %v2243_v17, %v2107_v61  ;;  %v6488_v47 = vsel %vm797_vm2, 1, %v9270_v58  ;;  %v957_v17 = vld [vmem:[%s5126_s16 + $0xb0] sm:$0xf]  ;;  %v2211_v61 = vrot.slane %v2210_v45, 2 }
 0x1b7   : > { %v9376_v50 = vld [vmem:[#allocation60_spill] sm:$0xff]  ;;  %v2229_v23 = vadd.f32 %v2228_v59, %v2097_v31  ;;  %vm808_vm2 = vcmp.lt.s32.totalorder %v5225_v24, %v6424_v39  ;;  %v6643_v4 = vsel %vm809_vm8, 1, %v9270_v58  ;;  %v6663_v60 = vsel %vm812_vm9, 1, %v9270_v58 }
 0x1b8   : > { %v2245_v1 = vadd.f32 %v2244_v13, %v2108_v11  ;;  %vm1727_vm15 = vcmp.eq.s32.totalorder %v9376_v50, 1  ;;  %v9378_v50 = vld [vmem:[#allocation65_spill] sm:$0xff]  ;;  %v9383_v11 = vld [vmem:[#allocation63_spill] sm:$0xff]  ;;  %v962_v31 = vld [vmem:[%s5126_s16 + $0xc4] sm:$0xf]  ;;  %vm1734_vm8 = vcmp.eq.s32.totalorder %v5989_v46, 1 }
 0x1b9   : > { %v6512_v20 = vpop.permute.xlu1 %1518  ;;  %v6514_v54 = vpop.permute.xlu0 %1515  ;;  %vm1730_vm3 = vcmp.eq.s32.totalorder %v9378_v50, 1  ;;  %vm6569_vm6 = vmpackc.low %vm1727_vm15, %vm1727_vm15  ;;  %vm1728_vm7 = vcmp.eq.s32.totalorder %v9383_v11, 1  ;;  %v6637_v11 = vsel %vm810_vm5, 1, %v9270_v58  ;;  %9394 = vst [vmem:[#allocation65_spill] sm:$0xff] %v6643_v4  ;;  %vm814_vm15 = vcmp.lt.s32.totalorder %v5257_v37, %v6424_v39  ;;  %v9399_v4 = vld [vmem:[#allocation62_spill] sm:$0xff] }
 0x1ba   : > { %9374 = vst [vmem:[#allocation55_spill] sm:$0xff] %v6512_v20  ;;  %9375 = vst [vmem:[#allocation57_spill] sm:$0xff] %v6514_v54  ;;  %v1981_v20 = vsel %vm6480_vm12, %v956_v0, 0  ;;  %2538 = vperm.xlu1 %4592, %v6334_v48   ;;  %2535 = vperm.xlu0 %4591, %v6372_v3   ;;  %v741_v54 = vcombine.high %v5965_v6, %v5965_v6  ;;  %v1982_v48 = vsel %vm6508_vm14, %v957_v17, 0  ;;  %v9377_v3 = vld [vmem:[#allocation64_spill] sm:$0xff] }
 0x1bb   : > { %vm1731_vm1 = vcmp.eq.s32.totalorder %v9377_v3, 1  ;;  %v2109_v6 = vunpack.c.l.bf16 %v1981_v20  ;;  %v958_v17 = vld [vmem:[%s5126_s16 + $0xb4] sm:$0xf]  ;;  %v2110_v20 = vunpack.c.l.bf16 %v1982_v48  ;;  %vm811_vm12 = vcmp.lt.s32.totalorder %v5252_v33, %v6424_v39  ;;  %vm6599_vm13 = vmpackc.low %vm1730_vm3, %vm1730_vm3  ;;  %9397 = vst [vmem:[#allocation63_spill] sm:$0xff] %v6663_v60 }
 0x1bc   : > { %v747_v59 = vsub.s32 %v741_v54, %v5180_v10  ;;  %vm6586_vm10 = vmpackc.low %vm1731_vm1, %vm1731_vm1  ;;  %v2230_v54 = vrot.slane %v2229_v23, 4  ;;  %v6607_v48 = vsel %vm805_vm0, 1, %v9270_v58  ;;  %v6669_v13 = vsel %vm811_vm12, 1, %v9270_v58 }
 0x1bd   : > { %v6561_v0 = vpop.permute.xlu1 %1524  ;;  %v6563_v21 = vpop.permute.xlu0 %1521  ;;  %v2246_v55 = vadd.f32 %v2245_v1, %v2109_v6  ;;  %vm6619_vm14 = vmpackc.low %vm1728_vm7, %vm1728_vm7  ;;  %vm813_vm1 = vcmp.lt.s32.totalorder %v5264_v38, %v6424_v39  ;;  %vm815_vm5 = vcmp.lt.s32.totalorder %v5279_v43, %v6424_v39 }
 0x1be   : > { %9379 = vst [vmem:[#allocation54_spill] sm:$0xff] %v6561_v0  ;;  %9380 = vst [vmem:[#allocation59_spill] sm:$0xff] %v6563_v21  ;;  %2544 = vperm.xlu1 %4592, %v6392_v57   ;;  %2541 = vperm.xlu0 %4591, %v6398_v56   ;;  %v9386_v56 = vld [vmem:[#allocation67_spill] sm:$0xff]  ;;  %v6593_v0 = vadd.f32 %v2211_v61, %v2210_v45  ;;  %v6613_v45 = vsel %vm808_vm2, 1, %v9270_v58  ;;  %v2231_v60 = vadd.f32 %v2230_v54, %v2229_v23 }
 0x1bf   : > { %vm1732_vm11 = vcmp.eq.s32.totalorder %v9386_v56, 1  ;;  %v961_v21 = vld [vmem:[%s5126_s16 + $0xc0] sm:$0xf]  ;;  %v959_v61 = vld [vmem:[%s5126_s16 + $0xb8] sm:$0xf]  ;;  %9398 = vst [vmem:[#allocation67_spill] sm:$0xff] %v6669_v13  ;;  %v2247_v56 = vadd.f32 %v2246_v55, %v2110_v20 }
 0x1c0   : > { %9387 = vst [vmem:[#allocation61_spill] sm:$0xff] %v6593_v0  ;;  %v6631_v0 = vsel %vm807_vm4, 1, %v9270_v58  ;;  %vm6653_vm0 = vmpackc.low %vm1732_vm11, %vm1732_vm11  ;;  %vm1729_vm2 = vcmp.eq.s32.totalorder %v9399_v4, 1  ;;  %v1984_v13 = vsel %vm6619_vm14, %v959_v61, 0  ;;  %v9400_v20 = vld [vmem:[#allocation66_spill] sm:$0xff]  ;;  %vm816_vm4 = vcmp.lt.s32.totalorder %v5272_v42, %v6424_v39 }
 0x1c1   : > { %v6623_v6 = vpop.permute.xlu1 %1530  ;;  %v6625_v50 = vpop.permute.xlu0 %1527  ;;  %vm1733_vm3 = vcmp.eq.s32.totalorder %v9400_v20, 1  ;;  %vm6708_vm7 = vmpackc.low %vm1729_vm2, %vm1729_vm2  ;;  %v2112_v3 = vunpack.c.l.bf16 %v1984_v13 }
 0x1c2   : > { %9392 = vst [vmem:[#allocation60_spill] sm:$0xff] %v6623_v6  ;;  %9393 = vst [vmem:[#allocation64_spill] sm:$0xff] %v6625_v50  ;;  %v1983_v50 = vsel %vm6569_vm6, %v958_v17, 0  ;;  %v963_v6 = vld [vmem:[%s5126_s16 + $0xc8] sm:$0xf]  ;;  %2550 = vperm.xlu1 %4592, %v6421_v22   ;;  %2547 = vperm.xlu0 %4591, %v6434_v8   ;;  %v6672_v17 = vrot.slane %v747_v59, %v5186_v12  ;;  %v1987_v22 = vsel %vm6586_vm10, %v962_v31, 0 }
 0x1c3   : > { %v1986_v8 = vsel %vm6599_vm13, %v961_v21, 0  ;;  %v6687_v59 = vsel %vm814_vm15, 1, %v9270_v58  ;;  %v2111_v55 = vunpack.c.l.bf16 %v1983_v50  ;;  %v1988_v21 = vsel %vm6653_vm0, %v963_v6, 0  ;;  %vm6719_vm10 = vmpackc.low %vm1733_vm3, %vm1733_vm3 }
 0x1c4   : > { %v2115_v57 = vunpack.c.l.bf16 %v1987_v22  ;;  %v2114_v54 = vunpack.c.l.bf16 %v1986_v8  ;;  %vm818_vm6 = vcmp.lt.s32.totalorder %v5197_v16, %v6672_v17  ;;  %vm817_vm9 = vcmp.lt.s32.totalorder %v5169_v5, %v6672_v17  ;;  %vm6761_vm13 = vmpackc.low %vm1734_vm8, %vm1734_vm8 }
 0x1c5   : > { %v6692_v31 = vpop.permute.xlu1 %1536  ;;  %v6694_v23 = vpop.permute.xlu0 %1533  ;;  %v2248_v61 = vadd.f32 %v2247_v56, %v2111_v55  ;;  %v2116_v6 = vunpack.c.l.bf16 %v1988_v21  ;;  %vm820_vm11 = vcmp.lt.s32.totalorder %v5194_v15, %v6672_v17  ;;  %vm819_vm12 = vcmp.lt.s32.totalorder %v5191_v14, %v6672_v17 }
 0x1c6   : > { %9401 = vst [vmem:[#allocation62_spill] sm:$0xff] %v6692_v31  ;;  %9402 = vst [vmem:[#allocation66_spill] sm:$0xff] %v6694_v23  ;;  %2556 = vperm.xlu1 %4592, %v6440_v40   ;;  %2553 = vperm.xlu0 %4591, %v6488_v47   ;;  %v2232_v40 = vrot.slane %v2231_v60, 2  ;;  %v964_v47 = vld [vmem:[%s5126_s16 + $0xcc] sm:$0xf]  ;;  %v6735_v56 = vsel %vm813_vm1, 1, %v9270_v58  ;;  %v2257_v21 = vadd.f32 %v2115_v57, %v2114_v54 }
 0x1c7   : > { %v6741_v22 = vsel %vm816_vm4, 1, %v9270_v58  ;;  %v6747_v8 = vsel %vm815_vm5, 1, %v9270_v58  ;;  %v6753_v55 = vsel %vm818_vm6, 1, %v9270_v58  ;;  %v1985_v20 = vsel %vm6708_vm7, %v960_v27, 0  ;;  %v965_v31 = vld [vmem:[%s5126_s16 + $0xd0] sm:$0xf] }
 0x1c8   : > { %v6771_v39 = vsel %vm817_vm9, 1, %v9270_v58  ;;  %v743_v57 = vcombine.high %v6321_v63, %v6321_v63  ;;  %v2249_v54 = vadd.f32 %v2248_v61, %v2112_v3  ;;  %v1989_v46 = vsel %vm6719_vm10, %v964_v47, 0  ;;  %v9410_v61 = vld [vmem:[#allocation68_spill] sm:$0xff] }
 0x1c9   : > { %v6727_v50 = vpop.permute.xlu1 %1542  ;;  %v6729_v13 = vpop.permute.xlu0 %1539  ;;  %v6789_v27 = vadd.f32 %v2232_v40, %v2231_v60  ;;  %v2258_v1 = vadd.f32 %v2257_v21, %v2116_v6  ;;  %vm822_vm14 = vcmp.lt.s32.totalorder %v5203_v18, %v6672_v17  ;;  %vm821_vm15 = vcmp.lt.s32.totalorder %v5206_v19, %v6672_v17 }
 0x1ca   : > { %2562 = vperm.xlu1 %4592, %v6494_v51   ;;  %2559 = vperm.xlu0 %4591, %v6500_v49   ;;  %v6781_v51 = vsel %vm820_vm11, 1, %v9270_v58  ;;  %v6787_v49 = vsel %vm819_vm12, 1, %v9270_v58  ;;  %v2113_v63 = vunpack.c.l.bf16 %v1985_v20  ;;  %vm1735_vm0 = vcmp.eq.s32.totalorder %v9410_v61, 1  ;;  %v967_v61 = vld [vmem:[%s5126_s16 + $0xd8] sm:$0xf] }
 0x1cb   : > { %9409 = vst [vmem:[#allocation72_spill] sm:$0xff] %v6789_v27  ;;  %v1990_v3 = vsel %vm6761_vm13, %v965_v31, 0  ;;  %vm824_vm1 = vcmp.lt.s32.totalorder %v5225_v24, %v6672_v17  ;;  %v2117_v60 = vunpack.c.l.bf16 %v1989_v46  ;;  %vm823_vm2 = vcmp.lt.s32.totalorder %v5228_v25, %v6672_v17  ;;  %vm6820_vm7 = vmpackc.low %vm1735_vm0, %vm1735_vm0 }
 0x1cc   : > { %vm826_vm3 = vcmp.lt.s32.totalorder %v5237_v28, %v6672_v17  ;;  %v748_v31 = vsub.s32 %v743_v57, %v5180_v10  ;;  %v2250_v23 = vadd.f32 %v2249_v54, %v2113_v63  ;;  %vm1736_vm4 = vcmp.eq.s32.totalorder %v6035_v35, 1 }
 0x1cd   : > { %v6798_v47 = vpop.permute.xlu1 %1548  ;;  %v6800_v4 = vpop.permute.xlu0 %1545  ;;  %vm825_vm5 = vcmp.lt.s32.totalorder %v5240_v29, %v6672_v17  ;;  %vm828_vm6 = vcmp.lt.s32.totalorder %v5245_v32, %v6672_v17  ;;  %v2259_v40 = vadd.f32 %v2258_v1, %v2117_v60  ;;  %v2118_v6 = vunpack.c.l.bf16 %v1990_v3  ;;  %vm6864_vm9 = vmpackc.low %vm1736_vm4, %vm1736_vm4  ;;  %v977_v3 = vld [vmem:[%s5126_s16 + $0x100] sm:$0xf] }
 0x1ce   : > { %2568 = vperm.xlu1 %4592, %v6520_v7   ;;  %2565 = vperm.xlu0 %4591, %v6526_v53   ;;  %v966_v7 = vld [vmem:[%s5126_s16 + $0xd4] sm:$0xf]  ;;  %v6828_v20 = vsel %vm822_vm14, 1, %v9270_v58  ;;  %vm827_vm8 = vcmp.lt.s32.totalorder %v5252_v33, %v6672_v17  ;;  %v6840_v54 = vsel %vm821_vm15, 1, %v9270_v58  ;;  %v6846_v46 = vsel %vm824_vm1, 1, %v9270_v58 }
 0x1cf   : > { %v6852_v1 = vsel %vm823_vm2, 1, %v9270_v58  ;;  %v6858_v63 = vsel %vm826_vm3, 1, %v9270_v58  ;;  %v6874_v60 = vsel %vm825_vm5, 1, %v9270_v58  ;;  %v6880_v35 = vsel %vm828_vm6, 1, %v9270_v58 }
 0x1d0   : > { %9415 = vst [vmem:[#allocation68_spill] sm:$0xff] %v6880_v35  ;;  %vm830_vm10 = vcmp.lt.s32.totalorder %v5257_v37, %v6672_v17  ;;  %v6885_v27 = vrot.slane %v748_v31, %v5186_v12  ;;  %vm1747_vm11 = vcmp.eq.s32.totalorder %v6310_v44, 1  ;;  %v6894_v10 = vsel %vm827_vm8, 1, %v9270_v58  ;;  %v9416_v31 = vld [vmem:[#allocation69_spill] sm:$0xff]  ;;  %v978_v12 = vld [vmem:[%s5126_s16 + $0x104] sm:$0xf] }
 0x1d1   : > { %v6832_v21 = vpop.permute.xlu1 %1554  ;;  %v6834_v57 = vpop.permute.xlu0 %1551  ;;  %v2260_v35 = vadd.f32 %v2259_v40, %v2118_v6  ;;  %vm1746_vm12 = vcmp.eq.s32.totalorder %v6312_v2, 1  ;;  %vm829_vm13 = vcmp.lt.s32.totalorder %v5264_v38, %v6672_v17  ;;  %vm832_vm14 = vcmp.lt.s32.totalorder %v5272_v42, %v6672_v17  ;;  %vm6914_vm1 = vmpackc.low %vm1747_vm11, %vm1747_vm11  ;;  %v979_v38 = vld [vmem:[%s5126_s16 + $0x108] sm:$0xf] }
 0x1d2   : > { %2574 = vperm.xlu1 %4592, %v6532_v52   ;;  %2571 = vperm.xlu0 %4591, %v6538_v36   ;;  %v2251_v52 = vrot.slane %v2250_v23, 4  ;;  %v1991_v36 = vsel %vm6820_vm7, %v966_v7, 0  ;;  %vm1737_vm15 = vcmp.eq.s32.totalorder %v9416_v31, 1  ;;  %v1992_v44 = vsel %vm6864_vm9, %v967_v61, 0  ;;  %vm6932_vm6 = vmpackc.low %vm1746_vm12, %vm1746_vm12 }
 0x1d3   : > { %v6909_v40 = vsel %vm830_vm10, 1, %v9270_v58  ;;  %vm831_vm0 = vcmp.lt.s32.totalorder %v5279_v43, %v6672_v17  ;;  %v2119_v6 = vunpack.c.l.bf16 %v1991_v36  ;;  %vm1748_vm2 = vcmp.eq.s32.totalorder %v6349_v9, 1  ;;  %vm6952_vm7 = vmpackc.low %vm1737_vm15, %vm1737_vm15 }
 0x1d4   : > { %vm834_vm3 = vcmp.lt.s32.totalorder %v5197_v16, %v6885_v27  ;;  %vm833_vm4 = vcmp.lt.s32.totalorder %v5169_v5, %v6885_v27  ;;  %v6925_v61 = vadd.f32 %v2251_v52, %v2250_v23  ;;  %vm1738_vm5 = vcmp.eq.s32.totalorder %v6097_v41, 1  ;;  %v968_v23 = vld [vmem:[%s5126_s16 + $0xdc] sm:$0xf]  ;;  %vm6967_vm9 = vmpackc.low %vm1748_vm2, %vm1748_vm2  ;;  %v9439_v41 = vld [vmem:[#allocation65_spill] sm:$0xff] }
 0x1d5   : > { %v6904_v7 = vpop.permute.xlu1 %1560  ;;  %v6906_v53 = vpop.permute.xlu0 %1557  ;;  %v2261_v52 = vadd.f32 %v2260_v35, %v2119_v6  ;;  %v2120_v33 = vunpack.c.l.bf16 %v1992_v44  ;;  %vm1763_vm8 = vcmp.eq.s32.totalorder %v6727_v50, 1  ;;  %v6961_v42 = vsel %vm831_vm0, 1, %v9270_v58  ;;  %v969_v6 = vld [vmem:[%s5126_s16 + $0xe0] sm:$0xf] }
 0x1d6   : > { %2580 = vperm.xlu1 %4592, %v6551_v62   ;;  %2577 = vperm.xlu0 %4591, %v6607_v48   ;;  %9419 = vst [vmem:[#allocation69_spill] sm:$0xff] %v6925_v61  ;;  %v6940_v62 = vsel %vm829_vm13, 1, %v9270_v58  ;;  %v6946_v48 = vsel %vm832_vm14, 1, %v9270_v58  ;;  %vm1762_vm10 = vcmp.eq.s32.totalorder %v6729_v13, 1  ;;  %v6980_v17 = vsel %vm834_vm3, 1, %v9270_v58  ;;  %vm6995_vm13 = vmpackc.low %vm1738_vm5, %vm1738_vm5  ;;  %v9444_v61 = vld [vmem:[#allocation71_spill] sm:$0xff] }
 0x1d7   : > { %9426 = vst [vmem:[#allocation73_spill] sm:$0xff] %v6980_v17  ;;  %v6986_v9 = vsel %vm833_vm4, 1, %v9270_v58  ;;  %vm836_vm11 = vcmp.lt.s32.totalorder %v5194_v15, %v6885_v27  ;;  %vm1739_vm12 = vcmp.eq.s32.totalorder %v6095_v26, 1  ;;  %v2003_v43 = vsel %vm6914_vm1, %v978_v12, 0  ;;  %v994_v17 = vld [vmem:[%s5126_s16 + $0x144] sm:$0xf]  ;;  %vm7014_vm15 = vmpackc.low %vm1763_vm8, %vm1763_vm8 }
 0x1d8   : > { %9427 = vst [vmem:[#allocation74_spill] sm:$0xff] %v6986_v9  ;;  %v2002_v5 = vsel %vm6932_vm6, %v977_v3, 0  ;;  %vm835_vm14 = vcmp.lt.s32.totalorder %v5191_v14, %v6885_v27  ;;  %v1993_v9 = vsel %vm6952_vm7, %v968_v23, 0  ;;  %vm1764_vm0 = vcmp.eq.s32.totalorder %v6800_v4, 1  ;;  %vm7028_vm3 = vmpackc.low %vm1762_vm10, %vm1762_vm10  ;;  %v9449_v50 = vld [vmem:[#allocation56_spill] sm:$0xff] }
 0x1d9   : > { %v6972_v35 = vpop.permute.xlu1 %1566  ;;  %v6974_v44 = vpop.permute.xlu0 %1563  ;;  %vm838_vm1 = vcmp.lt.s32.totalorder %v5203_v18, %v6885_v27  ;;  %v2262_v37 = vadd.f32 %v2261_v52, %v2120_v33  ;;  %vm1749_vm2 = vcmp.eq.s32.totalorder %v6347_v30, 1  ;;  %v7036_v3 = vsel %vm836_vm11, 1, %v9270_v58  ;;  %v970_v33 = vld [vmem:[%s5126_s16 + $0xe4] sm:$0xf]  ;;  %vm7042_vm4 = vmpackc.low %vm1739_vm12, %vm1739_vm12 }
 0x1da   : > { %2586 = vperm.xlu1 %4592, %v6613_v45   ;;  %2583 = vperm.xlu0 %4591, %v6631_v0   ;;  %v2004_v0 = vsel %vm6967_vm9, %v979_v38, 0  ;;  %v993_v45 = vld [vmem:[%s5126_s16 + $0x140] sm:$0xf]  ;;  %v2131_v13 = vunpack.c.l.bf16 %v2003_v43  ;;  %v2130_v36 = vunpack.c.l.bf16 %v2002_v5  ;;  %v7054_v52 = vsel %vm835_vm14, 1, %v9270_v58  ;;  %v995_v5 = vld [vmem:[%s5126_s16 + $0x148] sm:$0xf]  ;;  %vm7065_vm7 = vmpackc.low %vm1764_vm0, %vm1764_vm0 }
 0x1db   : > { %9436 = vst [vmem:[#allocation75_spill] sm:$0xff] %v7054_v52  ;;  %vm837_vm5 = vcmp.lt.s32.totalorder %v5206_v19, %v6885_v27  ;;  %v2121_v26 = vunpack.c.l.bf16 %v1993_v9  ;;  %v1994_v31 = vsel %vm6995_vm13, %v969_v6, 0  ;;  %vm1750_vm6 = vcmp.eq.s32.totalorder %v6415_v34, 1  ;;  %v9441_v9 = vld [vmem:[#allocation70_spill] sm:$0xff]  ;;  %v980_v6 = vld [vmem:[%s5126_s16 + $0x10c] sm:$0xf]  ;;  %vm7082_vm9 = vmpackc.low %vm1749_vm2, %vm1749_vm2 }
 0x1dc   : > { %v7075_v16 = vsel %vm838_vm1, 1, %v9270_v58  ;;  %vm1741_vm8 = vcmp.eq.s32.totalorder %v9441_v9, 1  ;;  %v2132_v14 = vunpack.c.l.bf16 %v2004_v0  ;;  %v1995_v18 = vsel %vm7042_vm4, %v970_v33, 0  ;;  %v981_v52 = vld [vmem:[%s5126_s16 + $0x110] sm:$0xf]  ;;  %vm7099_vm12 = vmpackc.low %vm1750_vm6, %vm1750_vm6 }
 0x1dd   : > { %v7046_v23 = vpop.permute.xlu1 %1572  ;;  %v7048_v2 = vpop.permute.xlu0 %1569  ;;  %9440 = vst [vmem:[#allocation65_spill] sm:$0xff] %v7075_v16  ;;  %v2263_v15 = vadd.f32 %v2262_v37, %v2121_v26  ;;  %vm1740_vm10 = vcmp.eq.s32.totalorder %v9444_v61, 1  ;;  %vm840_vm11 = vcmp.lt.s32.totalorder %v5225_v24, %v6885_v27  ;;  %v2122_v30 = vunpack.c.l.bf16 %v1994_v31  ;;  %vm7113_vm14 = vmpackc.low %vm1741_vm8, %vm1741_vm8  ;;  %v972_v26 = vld [vmem:[%s5126_s16 + $0xec] sm:$0xf]  ;;  %v997_v24 = vld [vmem:[%s5126_s16 + $0x150] sm:$0xf] }
 0x1de   : > { %2592 = vperm.xlu1 %4592, %v6637_v11   ;;  %2589 = vperm.xlu0 %4591, %v9439_v41   ;;  %v2019_v11 = vsel %vm7014_vm15, %v994_v17, 0  ;;  %v2018_v41 = vsel %vm7028_vm3, %v993_v45, 0  ;;  %v2278_v16 = vadd.f32 %v2131_v13, %v2130_v36  ;;  %vm1765_vm13 = vcmp.eq.s32.totalorder %v6798_v47, 1  ;;  %v9450_v13 = vld [vmem:[#allocation63_spill] sm:$0xff]  ;;  %vm7126_vm0 = vmpackc.low %vm1740_vm10, %vm1740_vm10  ;;  %v9466_v47 = vld [vmem:[#allocation58_spill] sm:$0xff] }
 0x1df   : > { %v2020_v12 = vsel %vm7065_vm7, %v995_v5, 0  ;;  %v2005_v45 = vsel %vm7082_vm9, %v980_v6, 0  ;;  %vm1751_vm15 = vcmp.eq.s32.totalorder %v9449_v50, 1  ;;  %v2147_v33 = vunpack.c.l.bf16 %v2019_v11  ;;  %v9451_v36 = vld [vmem:[#allocation67_spill] sm:$0xff]  ;;  %v996_v6 = vld [vmem:[%s5126_s16 + $0x14c] sm:$0xf]  ;;  %vm7145_vm3 = vmpackc.low %vm1765_vm13, %vm1765_vm13 }
 0x1e0   : > { %v2146_v38 = vunpack.c.l.bf16 %v2018_v41  ;;  %v2279_v5 = vadd.f32 %v2278_v16, %v2132_v14  ;;  %vm1766_vm1 = vcmp.eq.s32.totalorder %v6834_v57, 1  ;;  %v7135_v43 = vsel %vm837_vm5, 1, %v9270_v58  ;;  %v9456_v11 = vld [vmem:[#allocation51_spill] sm:$0xff]  ;;  %vm7160_vm5 = vmpackc.low %vm1751_vm15, %vm1751_vm15  ;;  %v982_v50 = vld [vmem:[%s5126_s16 + $0x114] sm:$0xf] }
 0x1e1   : > { %v7106_v37 = vpop.permute.xlu1 %1578  ;;  %v7108_v0 = vpop.permute.xlu0 %1575  ;;  %vm839_vm2 = vcmp.lt.s32.totalorder %v5228_v25, %v6885_v27  ;;  %v2123_v9 = vunpack.c.l.bf16 %v1995_v18  ;;  %v2006_v61 = vsel %vm7099_vm12, %v981_v52, 0  ;;  %v2148_v16 = vunpack.c.l.bf16 %v2020_v12  ;;  %v971_v18 = vld [vmem:[%s5126_s16 + $0xe8] sm:$0xf]  ;;  %vm7180_vm9 = vmpackc.low %vm1766_vm1, %vm1766_vm1  ;;  %v983_v34 = vld [vmem:[%s5126_s16 + $0x118] sm:$0xf] }
 0x1e2   : > { %2598 = vperm.xlu1 %4592, %v9450_v13   ;;  %2595 = vperm.xlu0 %4591, %v9451_v36   ;;  %v7153_v4 = vsel %vm840_vm11, 1, %v9270_v58  ;;  %vm1742_vm4 = vcmp.eq.s32.totalorder %v9456_v11, 1  ;;  %v2133_v52 = vunpack.c.l.bf16 %v2005_v45  ;;  %vm842_vm6 = vcmp.lt.s32.totalorder %v5237_v28, %v6885_v27  ;;  %v9459_v13 = vld [vmem:[#allocation52_spill] sm:$0xff] }
 0x1e3   : > { %vm841_vm7 = vcmp.lt.s32.totalorder %v5240_v29, %v6885_v27  ;;  %v2264_v12 = vadd.f32 %v2263_v15, %v2122_v30  ;;  %v1997_v45 = vsel %vm7113_vm14, %v972_v26, 0  ;;  %vm1752_vm8 = vcmp.eq.s32.totalorder %v9459_v13, 1  ;;  %vm7195_vm11 = vmpackc.low %vm1742_vm4, %vm1742_vm4  ;;  %v1009_v19 = vld [vmem:[%s5126_s16 + $0x180] sm:$0xf] }
 0x1e4   : > { %v2299_v36 = vadd.f32 %v2147_v33, %v2146_v38  ;;  %v2280_v15 = vadd.f32 %v2279_v5, %v2133_v52  ;;  %v2134_v30 = vunpack.c.l.bf16 %v2006_v61  ;;  %v2021_v26 = vsel %vm7145_vm3, %v996_v6, 0  ;;  %vm7219_vm12 = vmpackc.low %vm1752_vm8, %vm1752_vm8 }
 0x1e5   : > { %v7164_v41 = vpop.permute.xlu1 %1584  ;;  %v7166_v17 = vpop.permute.xlu0 %1581  ;;  %vm1767_vm10 = vcmp.eq.s32.totalorder %v6832_v21, 1  ;;  %v1996_v57 = vsel %vm7126_vm0, %v971_v18, 0  ;;  %v7204_v38 = vsel %vm839_vm2, 1, %v9270_v58  ;;  %v7210_v31 = vsel %vm842_vm6, 1, %v9270_v58 }
 0x1e6   : > { %2604 = vperm.xlu1 %4592, %v6687_v59   ;;  %2601 = vperm.xlu0 %4591, %v6735_v56   ;;  %v2300_v59 = vadd.f32 %v2299_v36, %v2148_v16  ;;  %v998_v56 = vld [vmem:[%s5126_s16 + $0x154] sm:$0xf]  ;;  %v7212_v5 = vunpack.c.l.bf16 %v1997_v45  ;;  %v2007_v61 = vsel %vm7160_vm5, %v982_v50, 0  ;;  %v2022_v14 = vsel %vm7180_vm9, %v997_v24, 0  ;;  %v1010_v16 = vld [vmem:[%s5126_s16 + $0x184] sm:$0xf]  ;;  %vm7236_vm14 = vmpackc.low %vm1767_vm10, %vm1767_vm10 }
 0x1e7   : > { %v7230_v52 = vsel %vm841_vm7, 1, %v9270_v58  ;;  %vm1753_vm13 = vcmp.eq.s32.totalorder %v9466_v47, 1  ;;  %v2149_v45 = vunpack.c.l.bf16 %v2021_v26  ;;  %v2265_v24 = vadd.f32 %v2264_v12, %v2123_v9  ;;  %v7249_v26 = vld [vmem:[%s5126_s16 + $0x11c] sm:$0xf]  ;;  %v1012_v47 = vld [vmem:[%s5126_s16 + $0x18c] sm:$0xf] }
 0x1e8   : > { %v2124_v13 = vunpack.c.l.bf16 %v1996_v57  ;;  %v2281_v36 = vadd.f32 %v2280_v15, %v2134_v30  ;;  %vm1768_vm1 = vcmp.eq.s32.totalorder %v6906_v53, 1  ;;  %v2135_v9 = vunpack.c.l.bf16 %v2007_v61  ;;  %vm7258_vm4 = vmpackc.low %vm1753_vm13, %vm1753_vm13  ;;  %v9473_v15 = vld [vmem:[#allocation57_spill] sm:$0xff] }
 0x1e9   : > { %v1591_v18 = vpop.permute.xlu1 %1590  ;;  %v1588_v11 = vpop.permute.xlu0 %1587  ;;  %vm1754_vm5 = vcmp.eq.s32.totalorder %v9473_v15, 1  ;;  %v2023_v30 = vsel %vm7236_vm14, %v998_v56, 0  ;;  %vm7269_vm6 = vmpackc.low %vm1768_vm1, %vm1768_vm1  ;;  %v9476_v56 = vld [vmem:[#allocation50_spill] sm:$0xff]  ;;  %vm1769_vm10 = vcmp.eq.s32.totalorder %v6904_v7, 1 }
 0x1ea   : > { %vm1779_vm15 = vcmp.eq.s32.totalorder %v1591_v18, 1  ;;  %vm1778_vm0 = vcmp.eq.s32.totalorder %v1588_v11, 1  ;;  %2610 = vperm.xlu1 %4592, %v6741_v22   ;;  %2607 = vperm.xlu0 %4591, %v6747_v8   ;;  %v2008_v18 = vsel %vm7219_vm12, %v983_v34, 0  ;;  %v2301_v11 = vadd.f32 %v2300_v59, %v2149_v45  ;;  %v999_v34 = vld [vmem:[%s5126_s16 + $0x158] sm:$0xf]  ;;  %vm7299_vm14 = vmpackc.low %vm1754_vm5, %vm1754_vm5 }
 0x1eb   : > { %vm7244_vm2 = vmpackc.low %vm1779_vm15, %vm1779_vm15  ;;  %v2150_v22 = vunpack.c.l.bf16 %v2022_v14  ;;  %v1011_v45 = vld [vmem:[%s5126_s16 + $0x188] sm:$0xf]  ;;  %vm1743_vm9 = vcmp.eq.s32.totalorder %v9476_v56, 1  ;;  %v2282_v53 = vadd.f32 %v2281_v36, %v2135_v9  ;;  %v2136_v50 = vunpack.c.l.bf16 %v2008_v18  ;;  %v7292_v36 = vld [vmem:[%s5163_s3] sm:$0xff] }
 0x1ec   : > { %v2035_v8 = vsel %vm7244_vm2, %v1010_v16, 0  ;;  %vm1906_vm3 = vmpackc.low %vm1778_vm0, %vm1778_vm0  ;;  %v7283_v21 = vadd.f32 %v2265_v24, %v2124_v13  ;;  %v696_v18 = vcombine.high %v7292_v36, %v7292_v36  ;;  %v2151_v13 = vunpack.c.l.bf16 %v2023_v30  ;;  %v1001_v56 = vld [vmem:[%s5126_s16 + $0x160] sm:$0xf] }
 0x1ed   : > { %v2034_v57 = vsel %vm1906_vm3, %v1009_v19, 0  ;;  %v1597_v59 = vpop.permute.xlu1 %1596  ;;  %v1594_v6 = vpop.permute.xlu0 %1593  ;;  %v2163_v14 = vunpack.c.l.bf16 %v2035_v8  ;;  %v7286_v8 = vld [vmem:[%s5126_s16 + $0xf0] sm:$0xf]  ;;  %v2024_v9 = vsel %vm7269_vm6, %v999_v34, 0  ;;  %vm7310_vm15 = vmpackc.low %vm1769_vm10, %vm1769_vm10  ;;  %v2283_v61 = vadd.f32 %v2282_v53, %v2136_v50  ;;  %v9521_v36 = vld [vmem:[#allocation68_spill] sm:$0xff] }
 0x1ee   : > { %v2162_v16 = vunpack.c.l.bf16 %v2034_v57  ;;  %vm1781_vm7 = vcmp.eq.s32.totalorder %v1597_v59, 1  ;;  %vm1780_vm8 = vcmp.eq.s32.totalorder %v1594_v6, 1  ;;  %2616 = vperm.xlu1 %4592, %v6753_v55   ;;  %2613 = vperm.xlu0 %4591, %v6771_v39   ;;  %v2009_v55 = vsel %vm7258_vm4, %v7249_v26, 0  ;;  %v1014_v59 = vld [vmem:[%s5126_s16 + $0x194] sm:$0xf]  ;;  %v9483_v6 = vld [vmem:[#allocation49_spill] sm:$0xff] }
 0x1ef   : > { %vm7279_vm12 = vmpackc.low %vm1781_vm7, %vm1781_vm7  ;;  %v2302_v39 = vadd.f32 %v2301_v11, %v2150_v22  ;;  %v1013_v34 = vld [vmem:[%s5126_s16 + $0x190] sm:$0xf]  ;;  %v1998_v7 = vsel %vm7195_vm11, %v7286_v8, 0  ;;  %vm1745_vm2 = vcmp.eq.s32.totalorder %v9483_v6, 1  ;;  %vm1770_vm3 = vcmp.eq.s32.totalorder %v6974_v44, 1 }
 0x1f0   : > { %vm1908_vm13 = vmpackc.low %vm1780_vm8, %vm1780_vm8  ;;  %v2037_v26 = vsel %vm7279_vm12, %v1012_v47, 0  ;;  %v2320_v57 = vadd.f32 %v2163_v14, %v2162_v16  ;;  %v985_v47 = vld [vmem:[%s5126_s16 + $0x120] sm:$0xf]  ;;  %vm844_vm5 = vcmp.lt.s32.totalorder %v5245_v32, %v6885_v27  ;;  %v2152_v16 = vunpack.c.l.bf16 %v2024_v9  ;;  %v9488_v50 = vld [vmem:[#allocation53_spill] sm:$0xff] }
 0x1f1   : > { %v2036_v11 = vsel %vm1908_vm13, %v1011_v45, 0  ;;  %v1603_v22 = vpop.permute.xlu1 %1602  ;;  %v1600_v12 = vpop.permute.xlu0 %1599  ;;  %v2165_v45 = vunpack.c.l.bf16 %v2037_v26  ;;  %vm7334_vm7 = vmpackc.low %vm1743_vm9, %vm1743_vm9  ;;  %vm1744_vm8 = vcmp.eq.s32.totalorder %v9488_v50, 1  ;;  %v2010_v26 = vsel %vm7299_vm14, %v985_v47, 0  ;;  %v1016_v44 = vld [vmem:[%s5126_s16 + $0x19c] sm:$0xf] }
 0x1f2   : > { %v2164_v30 = vunpack.c.l.bf16 %v2036_v11  ;;  %vm1783_vm0 = vcmp.eq.s32.totalorder %v1603_v22, 1  ;;  %vm1782_vm1 = vcmp.eq.s32.totalorder %v1600_v12, 1  ;;  %2622 = vperm.xlu1 %4592, %v6781_v51   ;;  %2619 = vperm.xlu0 %4591, %v6787_v49   ;;  %v1000_v51 = vld [vmem:[%s5126_s16 + $0x15c] sm:$0xf]  ;;  %v2303_v49 = vadd.f32 %v2302_v39, %v2151_v13  ;;  %vm7347_vm9 = vmpackc.low %vm1770_vm3, %vm1770_vm3  ;;  %v974_v14 = vld [vmem:[%s5126_s16 + $0xf4] sm:$0xf] }
 0x1f3   : > { %vm7324_vm4 = vmpackc.low %vm1783_vm0, %vm1783_vm0  ;;  %v2137_v11 = vunpack.c.l.bf16 %v2009_v55  ;;  %vm1771_vm0 = vcmp.eq.s32.totalorder %v6972_v35, 1  ;;  %v2138_v15 = vunpack.c.l.bf16 %v2010_v26  ;;  %v1017_v50 = vld [vmem:[%s5126_s16 + $0x1a0] sm:$0xf]  ;;  %v2267_v12 = vadd.f32 %v7283_v21, %v7212_v5  ;;  %v9505_v5 = vld [vmem:[#allocation54_spill] sm:$0xff] }
 0x1f4   : > { %v2321_v19 = vadd.f32 %v2320_v57, %v2164_v30  ;;  %vm1910_vm6 = vmpackc.low %vm1782_vm1, %vm1782_vm1  ;;  %v2039_v22 = vsel %vm7324_vm4, %v1014_v59, 0  ;;  %v1015_v30 = vld [vmem:[%s5126_s16 + $0x198] sm:$0xf]  ;;  %v2126_v35 = vunpack.c.l.bf16 %v1998_v7  ;;  %v987_v21 = vld [vmem:[%s5126_s16 + $0x128] sm:$0xf] }
 0x1f5   : > { %v2038_v39 = vsel %vm1910_vm6, %v1013_v34, 0  ;;  %v1609_v13 = vpop.permute.xlu1 %1608  ;;  %v1606_v9 = vpop.permute.xlu0 %1605  ;;  %v9491_v59 = vld [vmem:[#allocation55_spill] sm:$0xff]  ;;  %v2284_v24 = vadd.f32 %v2283_v61, %v2137_v11  ;;  %v2025_v34 = vsel %vm7310_vm15, %v1000_v51, 0  ;;  %vm7367_vm3 = vmpackc.low %vm1745_vm2, %vm1745_vm2  ;;  %v2026_v51 = vsel %vm7347_vm9, %v1001_v56, 0 }
 0x1f6   : > { %v2322_v55 = vadd.f32 %v2321_v19, %v2165_v45  ;;  %v2166_v57 = vunpack.c.l.bf16 %v2038_v39  ;;  %vm1785_vm10 = vcmp.eq.s32.totalorder %v1609_v13, 1  ;;  %2628 = vperm.xlu1 %4592, %v6828_v20   ;;  %2625 = vperm.xlu0 %4591, %v6840_v54   ;;  %vm1755_vm12 = vcmp.eq.s32.totalorder %v9491_v59, 1  ;;  %v9496_v61 = vld [vmem:[#allocation59_spill] sm:$0xff]  ;;  %vm7377_vm4 = vmpackc.low %vm1744_vm8, %vm1744_vm8  ;;  %v9520_v59 = vld [vmem:[#allocation64_spill] sm:$0xff] }
 0x1f7   : > { %vm7358_vm13 = vmpackc.low %vm1785_vm10, %vm1785_vm10  ;;  %vm1784_vm14 = vcmp.eq.s32.totalorder %v1606_v9, 1  ;;  %v2304_v45 = vadd.f32 %v2303_v49, %v2152_v16  ;;  %v2167_v19 = vunpack.c.l.bf16 %v2039_v22  ;;  %vm1756_vm15 = vcmp.eq.s32.totalorder %v9496_v61, 1  ;;  %v1018_v61 = vld [vmem:[%s5126_s16 + $0x1a4] sm:$0xf] }
 0x1f8   : > { %v2323_v20 = vadd.f32 %v2322_v55, %v2166_v57  ;;  %vm1912_vm1 = vmpackc.low %vm1784_vm14, %vm1784_vm14  ;;  %v2153_v39 = vunpack.c.l.bf16 %v2025_v34  ;;  %v2041_v13 = vsel %vm7358_vm13, %v1016_v44, 0  ;;  %v1999_v56 = vsel %vm7334_vm7, %v974_v14, 0  ;;  %v986_v55 = vld [vmem:[%s5126_s16 + $0x124] sm:$0xf]  ;;  %v1004_v34 = vld [vmem:[%s5126_s16 + $0x16c] sm:$0xf] }
 0x1f9   : > { %v2040_v49 = vsel %vm1912_vm1, %v1015_v30, 0  ;;  %v1615_v16 = vpop.permute.xlu1 %1614  ;;  %v1612_v11 = vpop.permute.xlu0 %1611  ;;  %vm7384_vm2 = vmpackc.low %vm1755_vm12, %vm1755_vm12  ;;  %vm1772_vm8 = vcmp.eq.s32.totalorder %v7048_v2, 1  ;;  %v2154_v30 = vunpack.c.l.bf16 %v2026_v51  ;;  %vm1757_vm12 = vcmp.eq.s32.totalorder %v9505_v5, 1 }
 0x1fa   : > { %v2324_v9 = vadd.f32 %v2323_v20, %v2167_v19  ;;  %v2168_v26 = vunpack.c.l.bf16 %v2040_v49  ;;  %2634 = vperm.xlu1 %4592, %v6846_v46   ;;  %2631 = vperm.xlu0 %4591, %v6852_v1   ;;  %vm7401_vm6 = vmpackc.low %vm1771_vm0, %vm1771_vm0  ;;  %vm1786_vm9 = vcmp.eq.s32.totalorder %v1612_v11, 1  ;;  %v1002_v46 = vld [vmem:[%s5126_s16 + $0x164] sm:$0xf]  ;;  %v2305_v1 = vadd.f32 %v2304_v45, %v2153_v39  ;;  %v1003_v45 = vld [vmem:[%s5126_s16 + $0x168] sm:$0xf] }
 0x1fb   : > { %vm1787_vm7 = vcmp.eq.s32.totalorder %v1615_v16, 1  ;;  %vm7407_vm10 = vmpackc.low %vm1786_vm9, %vm1786_vm9  ;;  %v2169_v44 = vunpack.c.l.bf16 %v2041_v13  ;;  %v2011_v7 = vsel %vm7384_vm2, %v986_v55, 0  ;;  %v2285_v14 = vadd.f32 %v2284_v24, %v2138_v15  ;;  %v976_v24 = vld [vmem:[%s5126_s16 + $0xfc] sm:$0xf]  ;;  %v9510_v15 = vld [vmem:[#allocation60_spill] sm:$0xff] }
 0x1fc   : > { %v2325_v53 = vadd.f32 %v2324_v9, %v2168_v26  ;;  %vm7420_vm13 = vmpackc.low %vm1756_vm15, %vm1756_vm15  ;;  %v2042_v47 = vsel %vm7407_vm10, %v1017_v50, 0  ;;  %v7444_v20 = vsel %vm844_vm5, 1, %v9270_v58  ;;  %vm1759_vm0 = vcmp.eq.s32.totalorder %v9510_v15, 1  ;;  %v975_v13 = vld [vmem:[%s5126_s16 + $0xf8] sm:$0xf] }
 0x1fd   : > { %v7426_v33 = vpop.permute.xlu1 %1620  ;;  %v1618_v8 = vpop.permute.xlu0 %1617  ;;  %vm7434_vm11 = vmpackc.low %vm1772_vm8, %vm1772_vm8  ;;  %v2027_v2 = vsel %vm7401_vm6, %v1002_v46, 0  ;;  %v2170_v51 = vunpack.c.l.bf16 %v2042_v47  ;;  %v2127_v49 = vunpack.c.l.bf16 %v1999_v56  ;;  %v2012_v22 = vsel %vm7420_vm13, %v987_v21, 0  ;;  %v1019_v50 = vld [vmem:[%s5126_s16 + $0x1a8] sm:$0xf]  ;;  %v9517_v46 = vld [vmem:[#allocation35_spill] sm:$0xff] }
 0x1fe   : > { %vm1788_vm14 = vcmp.eq.s32.totalorder %v1618_v8, 1  ;;  %2640 = vperm.xlu1 %4592, %v6858_v63   ;;  %2637 = vperm.xlu0 %4591, %v6874_v60   ;;  %vm7453_vm1 = vmpackc.low %vm1787_vm7, %vm1787_vm7  ;;  %v2326_v60 = vadd.f32 %v2325_v53, %v2169_v44  ;;  %v2306_v16 = vadd.f32 %v2305_v1, %v2154_v30  ;;  %vm1773_vm15 = vcmp.eq.s32.totalorder %v7046_v23, 1  ;;  %v988_v30 = vld [vmem:[%s5126_s16 + $0x12c] sm:$0xf]  ;;  %v990_v21 = vld [vmem:[%s5126_s16 + $0x134] sm:$0xf] }
 0x1ff   : > { %vm7460_vm5 = vmpackc.low %vm1757_vm12, %vm1757_vm12  ;;  %v2268_v39 = vadd.f32 %v2267_v12, %v2126_v35  ;;  %v2139_v9 = vunpack.c.l.bf16 %v2011_v7  ;;  %v2028_v26 = vsel %vm7434_vm11, %v1003_v45, 0  ;;  %v7483_v12 = vrot.slane %v696_v18, %v9517_v46  ;;  %v989_v45 = vld [vmem:[%s5126_s16 + $0x130] sm:$0xf]  ;;  %v1006_v56 = vld [vmem:[%s5126_s16 + $0x174] sm:$0xf] }
 0x200   : > { %vm7473_vm2 = vmpackc.low %vm1788_vm14, %vm1788_vm14  ;;  %v2001_v1 = vsel %vm7367_vm3, %v976_v24, 0  ;;  %vm1758_vm8 = vcmp.eq.s32.totalorder %v9520_v59, 1  ;;  %v2155_v35 = vunpack.c.l.bf16 %v2027_v2  ;;  %v2043_v5 = vsel %vm7453_vm1, %v1018_v61, 0  ;;  %v9526_v24 = vld [vmem:[#allocation66_spill] sm:$0xff]  ;;  %v992_v44 = vld [vmem:[%s5126_s16 + $0x13c] sm:$0xf] }
 0x201   : > { %v7477_v55 = vpop.permute.xlu1 %1626  ;;  %v1624_v57 = vpop.permute.xlu0 %1623  ;;  %vm7491_vm6 = vmpackc.low %vm1759_vm0, %vm1759_vm0  ;;  %v2286_v18 = vadd.f32 %v2285_v14, %v2139_v9  ;;  %v2140_v54 = vunpack.c.l.bf16 %v2012_v22  ;;  %vm1774_vm9 = vcmp.eq.s32.totalorder %v7108_v0, 1  ;;  %v2327_v47 = vadd.f32 %v2326_v60, %v2170_v51  ;;  %v1005_v51 = vld [vmem:[%s5126_s16 + $0x170] sm:$0xf]  ;;  %v1028_v22 = vld [vmem:[%s5126_s16 + $0x1cc] sm:$0xf] }
 0x202   : > { %2646 = vperm.xlu1 %4592, %v9521_v36   ;;  %2643 = vperm.xlu0 %4591, %v6894_v10   ;;  %vm7505_vm3 = vmpackc.low %vm1773_vm15, %vm1773_vm15  ;;  %v2307_v8 = vadd.f32 %v2306_v16, %v2155_v35  ;;  %v2156_v7 = vunpack.c.l.bf16 %v2028_v26  ;;  %vm1789_vm7 = vcmp.eq.s32.totalorder %v7426_v33, 1  ;;  %v2044_v10 = vsel %vm7473_vm2, %v1019_v50, 0  ;;  %v1020_v16 = vld [vmem:[%s5126_s16 + $0x1ac] sm:$0xf]  ;;  %v1021_v53 = vld [vmem:[%s5126_s16 + $0x1b0] sm:$0xf] }
 0x203   : > { %v7513_v14 = vunpack.c.l.bf16 %v2001_v1  ;;  %v2000_v23 = vsel %vm7377_vm4, %v975_v13, 0  ;;  %vm7521_vm10 = vmpackc.low %vm1758_vm8, %vm1758_vm8  ;;  %vm1760_vm12 = vcmp.eq.s32.totalorder %v9526_v24, 1  ;;  %v2171_v15 = vunpack.c.l.bf16 %v2043_v5  ;;  %v1026_v35 = vld [vmem:[%s5126_s16 + $0x1c4] sm:$0xf]  ;;  %v1022_v24 = vld [vmem:[%s5126_s16 + $0x1b4] sm:$0xf] }
 0x204   : > { %v2013_v6 = vsel %vm7460_vm5, %v988_v30, 0  ;;  %v2015_v63 = vsel %vm7491_vm6, %v990_v21, 0  ;;  %v2029_v60 = vsel %vm7505_vm3, %v1004_v34, 0  ;;  %vm7540_vm4 = vmpackc.low %vm1774_vm9, %vm1774_vm9  ;;  %vm1790_vm13 = vcmp.eq.s32.totalorder %v1624_v57, 1  ;;  %v9544_v0 = vld [vmem:[#allocation74_spill] sm:$0xff] }
 0x205   : > { %v7526_v2 = vpop.permute.xlu1 %1632  ;;  %v7528_v61 = vpop.permute.xlu0 %1629  ;;  %v2287_v11 = vadd.f32 %v2286_v18, %v2140_v54  ;;  %vm1775_vm11 = vcmp.eq.s32.totalorder %v7106_v37, 1  ;;  %vm7551_vm14 = vmpackc.low %vm1789_vm7, %vm1789_vm7  ;;  %v2328_v13 = vadd.f32 %v2327_v47, %v2171_v15  ;;  %v2172_v9 = vunpack.c.l.bf16 %v2044_v10  ;;  %v1025_v54 = vld [vmem:[%s5126_s16 + $0x1c0] sm:$0xf]  ;;  %v991_v47 = vld [vmem:[%s5126_s16 + $0x138] sm:$0xf] }
 0x206   : > { %2652 = vperm.xlu1 %4592, %v6909_v40   ;;  %2649 = vperm.xlu0 %4591, %v6940_v62   ;;  %v7555_v26 = vadd.f32 %v2268_v39, %v2127_v49  ;;  %v7557_v40 = vunpack.c.l.bf16 %v2000_v23  ;;  %v2014_v62 = vsel %vm7521_vm10, %v989_v45, 0  ;;  %vm7564_vm0 = vmpackc.low %vm1760_vm12, %vm1760_vm12  ;;  %v2308_v50 = vadd.f32 %v2307_v8, %v2156_v7  ;;  %v1007_v10 = vld [vmem:[%s5126_s16 + $0x178] sm:$0xf] }
 0x207   : > { %v2141_v1 = vunpack.c.l.bf16 %v2013_v6  ;;  %v7569_v30 = vunpack.c.l.bf16 %v2015_v63  ;;  %v2157_v49 = vunpack.c.l.bf16 %v2029_v60  ;;  %v2030_v39 = vsel %vm7540_vm4, %v1005_v51, 0  ;;  %vm7576_vm1 = vmpackc.low %vm1790_vm13, %vm1790_vm13  ;;  %v1023_v59 = vld [vmem:[%s5126_s16 + $0x1b8] sm:$0xf] }
 0x208   : > { %vm7584_vm5 = vmpackc.low %vm1775_vm11, %vm1775_vm11  ;;  %vm1776_vm15 = vcmp.eq.s32.totalorder %v7166_v17, 1  ;;  %v2045_v57 = vsel %vm7551_vm14, %v1020_v16, 0  ;;  %v2142_v21 = vunpack.c.l.bf16 %v2014_v62  ;;  %v2329_v34 = vadd.f32 %v2328_v13, %v2172_v9  ;;  %v9543_v16 = vld [vmem:[#allocation73_spill] sm:$0xff]  ;;  %v9545_v9 = vld [vmem:[#allocation62_spill] sm:$0xff] }
 0x209   : > { %v1639_v5 = vpop.permute.xlu1 %1638  ;;  %v1636_v36 = vpop.permute.xlu0 %1635  ;;  %v2288_v37 = vadd.f32 %v2287_v11, %v2141_v1  ;;  %vm1791_vm8 = vcmp.eq.s32.totalorder %v7477_v55, 1  ;;  %v2309_v8 = vadd.f32 %v2308_v50, %v2157_v49  ;;  %v2158_v7 = vunpack.c.l.bf16 %v2030_v39  ;;  %vm7610_vm7 = vmpackc.low %vm1776_vm15, %vm1776_vm15  ;;  %v1027_v11 = vld [vmem:[%s5126_s16 + $0x1c8] sm:$0xf] }
 0x20a   : > { %vm1795_vm2 = vcmp.eq.s32.totalorder %v1639_v5, 1  ;;  %vm1794_vm6 = vcmp.eq.s32.totalorder %v1636_v36, 1  ;;  %2658 = vperm.xlu1 %4592, %v6946_v48   ;;  %2655 = vperm.xlu0 %4591, %v6961_v42   ;;  %v2046_v48 = vsel %vm7576_vm1, %v1021_v53, 0  ;;  %v2031_v23 = vsel %vm7584_vm5, %v1006_v56, 0  ;;  %vm7619_vm12 = vmpackc.low %vm1791_vm8, %vm1791_vm8 }
 0x20b   : > { %vm7595_vm3 = vmpackc.low %vm1795_vm2, %vm1795_vm2  ;;  %v2173_v19 = vunpack.c.l.bf16 %v2045_v57  ;;  %vm1792_vm10 = vcmp.eq.s32.totalorder %v7528_v61, 1  ;;  %v2289_v13 = vadd.f32 %v2288_v37, %v2142_v21  ;;  %vm1761_vm11 = vcmp.eq.s32.totalorder %v9545_v9, 1  ;;  %v1030_v37 = vld [vmem:[%s5126_s16 + $0x1d4] sm:$0xf]  ;;  %v1029_v21 = vld [vmem:[%s5126_s16 + $0x1d0] sm:$0xf] }
 0x20c   : > { %v2051_v42 = vsel %vm7595_vm3, %v1026_v35, 0  ;;  %vm1922_vm9 = vmpackc.low %vm1794_vm6, %vm1794_vm6  ;;  %v2174_v62 = vunpack.c.l.bf16 %v2046_v48  ;;  %v2016_v56 = vsel %vm7564_vm0, %v991_v47, 0  ;;  %v2159_v1 = vunpack.c.l.bf16 %v2031_v23  ;;  %v9561_v9 = vld [vmem:[#allocation65_spill] sm:$0xff]  ;;  %v1034_v57 = vld [vmem:[%s5126_s16 + $0x1e4] sm:$0xf] }
 0x20d   : > { %v2050_v15 = vsel %vm1922_vm9, %v1025_v54, 0  ;;  %v1645_v6 = vpop.permute.xlu1 %1644  ;;  %v1642_v63 = vpop.permute.xlu0 %1641  ;;  %v2179_v17 = vunpack.c.l.bf16 %v2051_v42  ;;  %v2330_v55 = vadd.f32 %v2329_v34, %v2173_v19  ;;  %v2310_v49 = vadd.f32 %v2309_v8, %v2158_v7  ;;  %vm7643_vm15 = vmpackc.low %vm1792_vm10, %vm1792_vm10  ;;  %v9552_v34 = vld [vmem:[#allocation75_spill] sm:$0xff]  ;;  %v1036_v19 = vld [vmem:[%s5126_s16 + $0x1ec] sm:$0xf] }
 0x20e   : > { %v2178_v51 = vunpack.c.l.bf16 %v2050_v15  ;;  %vm1797_vm4 = vcmp.eq.s32.totalorder %v1645_v6, 1  ;;  %vm1796_vm13 = vcmp.eq.s32.totalorder %v1642_v63, 1  ;;  %2664 = vperm.xlu1 %4592, %v9543_v16   ;;  %2661 = vperm.xlu0 %4591, %v9544_v0   ;;  %vm1777_vm1 = vcmp.eq.s32.totalorder %v7164_v41, 1  ;;  %vm7652_vm0 = vmpackc.low %vm1761_vm11, %vm1761_vm11  ;;  %v1032_v0 = vld [vmem:[%s5126_s16 + $0x1dc] sm:$0xf] }
 0x20f   : > { %vm7628_vm14 = vmpackc.low %vm1797_vm4, %vm1797_vm4  ;;  %v2032_v39 = vsel %vm7610_vm7, %v1007_v10, 0  ;;  %v2047_v53 = vsel %vm7619_vm12, %v1022_v24, 0  ;;  %v2290_v47 = vadd.f32 %v2289_v13, %v7569_v30  ;;  %v2144_v8 = vunpack.c.l.bf16 %v2016_v56  ;;  %v1008_v30 = vld [vmem:[%s5126_s16 + $0x17c] sm:$0xf]  ;;  %v1031_v13 = vld [vmem:[%s5126_s16 + $0x1d8] sm:$0xf] }
 0x210   : > { %vm1924_vm5 = vmpackc.low %vm1796_vm13, %vm1796_vm13  ;;  %v2053_v35 = vsel %vm7628_vm14, %v1028_v22, 0  ;;  %v2341_v54 = vadd.f32 %v2179_v17, %v2178_v51  ;;  %v2331_v7 = vadd.f32 %v2330_v55, %v2174_v62  ;;  %vm1793_vm8 = vcmp.eq.s32.totalorder %v7526_v2, 1  ;;  %v9558_v51 = vld [vmem:[#allocation45_spill] sm:$0xff]  ;;  %v1024_v62 = vld [vmem:[%s5126_s16 + $0x1bc] sm:$0xf] }
 0x211   : > { %v2052_v5 = vsel %vm1924_vm5, %v1027_v11, 0  ;;  %v1651_v36 = vpop.permute.xlu1 %1650  ;;  %v1648_v18 = vpop.permute.xlu0 %1647  ;;  %v2311_v48 = vadd.f32 %v2310_v49, %v2159_v1  ;;  %v2048_v42 = vsel %vm7643_vm15, %v1023_v59, 0  ;;  %v2181_v23 = vunpack.c.l.bf16 %v2053_v35  ;;  %vm7675_vm10 = vmpackc.low %vm1777_vm1, %vm1777_vm1  ;;  %v1037_v56 = vld [vmem:[%s5126_s16 + $0x1f0] sm:$0xf] }
 0x212   : > { %v2180_v61 = vunpack.c.l.bf16 %v2052_v5  ;;  %vm1799_vm2 = vcmp.eq.s32.totalorder %v1651_v36, 1  ;;  %vm1798_vm6 = vcmp.eq.s32.totalorder %v1648_v18, 1  ;;  %2670 = vperm.xlu1 %4592, %v7036_v3   ;;  %2667 = vperm.xlu0 %4591, %v9552_v34   ;;  %v9555_v3 = vld [vmem:[#allocation44_spill] sm:$0xff]  ;;  %v2160_v24 = vunpack.c.l.bf16 %v2032_v39  ;;  %vm7688_vm4 = vmpackc.low %vm1793_vm8, %vm1793_vm8 }
 0x213   : > { %vm7663_vm3 = vmpackc.low %vm1799_vm2, %vm1799_vm2  ;;  %vm843_vm7 = vcmp.lt.s32.totalorder %v9555_v3, %v6885_v27  ;;  %v2175_v15 = vunpack.c.l.bf16 %v2047_v53  ;;  %vm846_vm12 = vcmp.lt.s32.totalorder %v9558_v51, %v6885_v27  ;;  %v2017_v41 = vsel %vm7652_vm0, %v992_v44, 0 }
 0x214   : > { %v2342_v45 = vadd.f32 %v2341_v54, %v2180_v61  ;;  %vm1926_vm9 = vmpackc.low %vm1798_vm6, %vm1798_vm6  ;;  %v2055_v6 = vsel %vm7663_vm3, %v1030_v37, 0  ;;  %v2270_v55 = vadd.f32 %v7555_v26, %v7557_v40  ;;  %v2176_v2 = vunpack.c.l.bf16 %v2048_v42  ;;  %v1033_v54 = vld [vmem:[%s5126_s16 + $0x1e0] sm:$0xf] }
 0x215   : > { %v2054_v63 = vsel %vm1926_vm9, %v1029_v21, 0  ;;  %v1657_v60 = vpop.permute.xlu1 %1656  ;;  %v1654_v17 = vpop.permute.xlu0 %1653  ;;  %v2332_v50 = vadd.f32 %v2331_v7, %v2175_v15  ;;  %v2291_v1 = vadd.f32 %v2290_v47, %v2144_v8  ;;  %v2033_v49 = vsel %vm7675_vm10, %v1008_v30, 0  ;;  %v1040_v21 = vld [vmem:[%s5126_s16 + $0x1fc] sm:$0xf] }
 0x216   : > { %v2343_v11 = vadd.f32 %v2342_v45, %v2181_v23  ;;  %v2182_v16 = vunpack.c.l.bf16 %v2054_v63  ;;  %vm1801_vm13 = vcmp.eq.s32.totalorder %v1657_v60, 1  ;;  %2676 = vperm.xlu1 %4592, %v9561_v9   ;;  %2673 = vperm.xlu0 %4591, %v7135_v43   ;;  %vm1800_vm14 = vcmp.eq.s32.totalorder %v1654_v17, 1  ;;  %v9568_v63 = vld [vmem:[#allocation46_spill] sm:$0xff]  ;;  %v9569_v60 = vld [vmem:[#allocation36_spill] sm:$0xff] }
 0x217   : > { %vm7699_vm11 = vmpackc.low %vm1801_vm13, %vm1801_vm13  ;;  %v2183_v39 = vunpack.c.l.bf16 %v2055_v6  ;;  %v2145_v43 = vunpack.c.l.bf16 %v2017_v41  ;;  %v2312_v59 = vadd.f32 %v2311_v48, %v2160_v24  ;;  %v2049_v5 = vsel %vm7688_vm4, %v1024_v62, 0  ;;  %v1035_v24 = vld [vmem:[%s5126_s16 + $0x1e8] sm:$0xf] }
 0x218   : > { %v2344_v53 = vadd.f32 %v2343_v11, %v2182_v16  ;;  %vm1928_vm1 = vmpackc.low %vm1800_vm14, %vm1800_vm14  ;;  %v2057_v26 = vsel %vm7699_vm11, %v1032_v0, 0  ;;  %v2161_v61 = vunpack.c.l.bf16 %v2033_v49  ;;  %v2333_v37 = vadd.f32 %v2332_v50, %v2176_v2  ;;  %v1038_v2 = vld [vmem:[%s5126_s16 + $0x1f4] sm:$0xf] }
 0x219   : > { %v2056_v40 = vsel %vm1928_vm1, %v1031_v13, 0  ;;  %v1663_v33 = vpop.permute.xlu1 %1662  ;;  %v1660_v35 = vpop.permute.xlu0 %1659  ;;  %v7719_v34 = vrot.slane %v7483_v12, %v9517_v46  ;;  %v2271_v44 = vadd.f32 %v2270_v55, %v7513_v14  ;;  %v2292_v47 = vadd.f32 %v2291_v1, %v2145_v43  ;;  %v9573_v43 = vld [vmem:[#allocation37_spill] sm:$0xff] }
 0x21a   : > { %v2345_v36 = vadd.f32 %v2344_v53, %v2183_v39  ;;  %v2184_v18 = vunpack.c.l.bf16 %v2056_v40  ;;  %vm1803_vm5 = vcmp.eq.s32.totalorder %v1663_v33, 1  ;;  %2682 = vperm.xlu1 %4592, %v7153_v4   ;;  %2679 = vperm.xlu0 %4591, %v7204_v38   ;;  %vm1802_vm0 = vcmp.eq.s32.totalorder %v1660_v35, 1  ;;  %v9572_v53 = vld [vmem:[#allocation47_spill] sm:$0xff]  ;;  %v9574_v33 = vld [vmem:[#allocation48_spill] sm:$0xff] }
 0x21b   : > { %vm7713_vm15 = vmpackc.low %vm1803_vm5, %vm1803_vm5  ;;  %v2185_v8 = vunpack.c.l.bf16 %v2057_v26  ;;  %v2313_v38 = vadd.f32 %v2312_v59, %v2161_v61  ;;  %v2177_v7 = vunpack.c.l.bf16 %v2049_v5  ;;  %v2446_v6 = vsel %vm843_vm7, 1, %v9270_v58 }
 0x21c   : > { %v2346_v4 = vadd.f32 %v2345_v36, %v2184_v18  ;;  %vm1930_vm2 = vmpackc.low %vm1802_vm0, %vm1802_vm0  ;;  %v2059_v10 = vsel %vm7713_vm15, %v1034_v57, 0  ;;  %vm845_vm9 = vcmp.lt.s32.totalorder %v9568_v63, %v6885_v27  ;;  %v749_v17 = vsub.s32 %v7719_v34, %v9569_v60 }
 0x21d   : > { %v2058_v48 = vsel %vm1930_vm2, %v1033_v54, 0  ;;  %v1669_v42 = vpop.permute.xlu1 %1668  ;;  %v1666_v23 = vpop.permute.xlu0 %1665  ;;  %v2334_v14 = vadd.f32 %v2333_v37, %v2177_v7  ;;  %v2449_v22 = vsel %vm846_vm12, 1, %v9270_v58  ;;  %v2293_v11 = vrot.slane %v2292_v47, 4  ;;  %v9577_v7 = vld [vmem:[#allocation40_spill] sm:$0xff] }
 0x21e   : > { %v2347_v45 = vadd.f32 %v2346_v4, %v2185_v8  ;;  %v2186_v30 = vunpack.c.l.bf16 %v2058_v48  ;;  %vm1805_vm6 = vcmp.eq.s32.totalorder %v1669_v42, 1  ;;  %vm1804_vm8 = vcmp.eq.s32.totalorder %v1666_v23, 1  ;;  %2688 = vperm.xlu1 %4592, %v7210_v31   ;;  %2685 = vperm.xlu0 %4591, %v7230_v52   ;;  %v1039_v8 = vld [vmem:[%s5126_s16 + $0x1f8] sm:$0xf] }
 0x21f   : > { %vm7728_vm3 = vmpackc.low %vm1805_vm6, %vm1805_vm6  ;;  %v2272_v31 = vrot.slane %v2271_v44, 4  ;;  %v2187_v52 = vunpack.c.l.bf16 %v2059_v10  ;;  %v2314_v16 = vrot.slane %v2313_v38, 4  ;;  %v2335_v1 = vrot.slane %v2334_v14, 4  ;;  %v9578_v23 = vld [vmem:[#allocation34_spill] sm:$0xff] }
 0x220   : > { %v2348_v41 = vadd.f32 %v2347_v45, %v2186_v30  ;;  %vm1932_vm10 = vmpackc.low %vm1804_vm8, %vm1804_vm8  ;;  %v2061_v0 = vsel %vm7728_vm3, %v1036_v19, 0  ;;  %v2448_v39 = vsel %vm845_vm9, 1, %v9270_v58  ;;  %vm848_vm12 = vcmp.lt.s32.totalorder %v9572_v53, %v6885_v27  ;;  %v9579_v45 = vld [vmem:[#allocation69_spill] sm:$0xff] }
 0x221   : > { %v2060_v13 = vsel %vm1932_vm10, %v1035_v24, 0  ;;  %v1675_v9 = vpop.permute.xlu1 %1674  ;;  %v1672_v55 = vpop.permute.xlu0 %1671  ;;  %v7760_v59 = vrot.slane %v749_v17, %v9573_v43  ;;  %v2189_v26 = vunpack.c.l.bf16 %v2061_v0  ;;  %vm847_vm14 = vcmp.lt.s32.totalorder %v9574_v33, %v6885_v27  ;;  %v9581_v17 = vld [vmem:[#allocation72_spill] sm:$0xff] }
 0x222   : > { %v2349_v62 = vadd.f32 %v2348_v41, %v2187_v52  ;;  %v2188_v50 = vunpack.c.l.bf16 %v2060_v13  ;;  %vm1807_vm7 = vcmp.eq.s32.totalorder %v1675_v9, 1  ;;  %vm1806_vm4 = vcmp.eq.s32.totalorder %v1672_v55, 1  ;;  %2694 = vperm.xlu1 %4592, %v7444_v20   ;;  %2691 = vperm.xlu0 %4591, %v2446_v6   ;;  %v9582_v13 = vld [vmem:[#allocation39_spill] sm:$0xff] }
 0x223   : > { %vm7749_vm13 = vmpackc.low %vm1807_vm7, %vm1807_vm7  ;;  %v2273_v20 = vadd.f32 %v2272_v31, %v2271_v44  ;;  %v2294_v35 = vadd.f32 %v2293_v11, %v2292_v47  ;;  %v2315_v5 = vadd.f32 %v2314_v16, %v2313_v38  ;;  %v2336_v44 = vadd.f32 %v2335_v1, %v2334_v14 }
 0x224   : > { %v2350_v40 = vadd.f32 %v2349_v62, %v2188_v50  ;;  %vm1934_vm11 = vmpackc.low %vm1806_vm4, %vm1806_vm4  ;;  %v2063_v36 = vsel %vm7749_vm13, %v1038_v2, 0  ;;  %v2451_v47 = vsel %vm848_vm12, 1, %v9270_v58  ;;  %v2450_v38 = vsel %vm847_vm14, 1, %v9270_v58  ;;  %v9583_v50 = vld [vmem:[#allocation38_spill] sm:$0xff]  ;;  %v9584_v2 = vld [vmem:[#allocation61_spill] sm:$0xff] }
 0x225   : > { %v2062_v18 = vsel %vm1934_vm11, %v1037_v56, 0  ;;  %v1681_v57 = vpop.permute.xlu1 %1680  ;;  %v1678_v54 = vpop.permute.xlu0 %1677  ;;  %vm850_vm0 = vcmp.lt.s32.totalorder %v9577_v7, %v7760_v59  ;;  %v2274_v10 = vrot.slane %v2273_v20, 2  ;;  %v2191_v48 = vunpack.c.l.bf16 %v2063_v36 }
 0x226   : > { %v2351_v61 = vadd.f32 %v2350_v40, %v2189_v26  ;;  %v2190_v37 = vunpack.c.l.bf16 %v2062_v18  ;;  %vm1809_vm1 = vcmp.eq.s32.totalorder %v1681_v57, 1  ;;  %vm1808_vm5 = vcmp.eq.s32.totalorder %v1678_v54, 1  ;;  %2700 = vperm.xlu1 %4592, %v2449_v22   ;;  %2697 = vperm.xlu0 %4591, %v2448_v39  }
 0x227   : > { %vm7768_vm15 = vmpackc.low %vm1809_vm1, %vm1809_vm1  ;;  %vm849_vm6 = vcmp.lt.s32.totalorder %v9578_v23, %v7760_v59  ;;  %v9580_v30 = vrot.slane %v9579_v45, 2  ;;  %v2295_v24 = vrot.slane %v2294_v35, 2  ;;  %v2234_v31 = vrot.slane %v9581_v17, 1 }
 0x228   : > { %v2352_v42 = vadd.f32 %v2351_v61, %v2190_v37  ;;  %vm1936_vm2 = vmpackc.low %vm1808_vm5, %vm1808_vm5  ;;  %v2065_v14 = vsel %vm7768_vm15, %v1040_v21, 0  ;;  %v2316_v52 = vrot.slane %v2315_v5, 2  ;;  %v2337_v11 = vrot.slane %v2336_v44, 2  ;;  %v9585_v37 = vld [vmem:[#allocation41_spill] sm:$0xff] }
 0x229   : > { %v2254_v19 = vadd.f32 %v9580_v30, %v9579_v45  ;;  %v2064_v27 = vsel %vm1936_vm2, %v1039_v8, 0  ;;  %v7789_v15 = vpop.permute.xlu1 %2520  ;;  %v7791_v6 = vpop.permute.xlu0 %2517  ;;  %v2453_v16 = vsel %vm850_vm0, 1, %v9270_v58  ;;  %v2452_v0 = vsel %vm849_vm6, 1, %v9270_v58 }
 0x22a   : > { %v2353_v41 = vadd.f32 %v2352_v42, %v2191_v48  ;;  %v2192_v22 = vunpack.c.l.bf16 %v2064_v27  ;;  %2706 = vperm.xlu1 %4592, %v2451_v47   ;;  %2703 = vperm.xlu0 %4591, %v2450_v38   ;;  %vm852_vm8 = vcmp.lt.s32.totalorder %v9582_v13, %v7760_v59  ;;  %v2275_v9 = vadd.f32 %v2274_v10, %v2273_v20 }
 0x22b   : > { %v2193_v55 = vunpack.c.l.bf16 %v2065_v14  ;;  %vm851_vm3 = vcmp.lt.s32.totalorder %v9583_v50, %v7760_v59  ;;  %v2213_v56 = vrot.slane %v9584_v2, 1  ;;  %v2255_v1 = vrot.slane %v2254_v19, 1 }
 0x22c   : > { %v2354_v62 = vadd.f32 %v2353_v41, %v2192_v22  ;;  %v2296_v49 = vadd.f32 %v2295_v24, %v2294_v35  ;;  %vm2370_vm9 = vcmask 1041409   ;;  %v2317_v40 = vadd.f32 %v2316_v52, %v2315_v5  ;;  %v9586_v5 = vld [vmem:[#allocation42_spill] sm:$0xff] }
 0x22d   : > { %v7804_v39 = vpop.permute.xlu1 %2526  ;;  %v7806_v26 = vpop.permute.xlu0 %2523  ;;  %v2235_v20 = vadd.f32 %v2234_v31, %v9581_v17  ;;  %v2338_v18 = vadd.f32 %v2337_v11, %v2336_v44  ;;  %v2455_v57 = vsel %vm852_vm8, 1, %v9270_v58  ;;  %v2454_v54 = vsel %vm851_vm3, 1, %v9270_v58 }
 0x22e   : > { %v2355_v36 = vadd.f32 %v2354_v62, %v2193_v55  ;;  %2712 = vperm.xlu1 %4592, %v2453_v16   ;;  %2709 = vperm.xlu0 %4591, %v2452_v0   ;;  %v2276_v35 = vrot.slane %v2275_v9, 1  ;;  %vm854_vm10 = vcmp.lt.s32.totalorder %v9585_v37, %v7760_v59  ;;  %vm853_vm7 = vcmp.lt.s32.totalorder %v9586_v5, %v7760_v59 }
 0x22f   : > { %v2214_v21 = vadd.f32 %v2213_v56, %v9584_v2  ;;  %v2256_v8 = vadd.f32 %v2255_v1, %v2254_v19  ;;  %v2297_v4 = vrot.slane %v2296_v49, 1  ;;  %vm2372_vm4 = vcmask 1042434   ;;  %v9587_v19 = vld [vmem:[#allocation43_spill] sm:$0xff] }
 0x230   : > { %v2356_v61 = vrot.slane %v2355_v36, 4  ;;  %v2318_v38 = vrot.slane %v2317_v40, 1  ;;  %v2339_v42 = vrot.slane %v2338_v18, 1  ;;  %v2457_v45 = vsel %vm854_vm10, 1, %v9270_v58 }
 0x231   : > { %v7819_v44 = vpop.permute.xlu1 %2532  ;;  %v7821_v47 = vpop.permute.xlu0 %2529  ;;  %v2371_v48 = vsel %vm2370_vm9, %v2235_v20, %v2214_v21  ;;  %v2456_v30 = vsel %vm853_vm7, 1, %v9270_v58  ;;  %v2277_v24 = vadd.f32 %v2276_v35, %v2275_v9  ;;  %vm856_vm13 = vcmp.lt.s32.totalorder %v9587_v19, %v7760_v59 }
 0x232   : > { %v2357_v10 = vadd.f32 %v2356_v61, %v2355_v36  ;;  %2718 = vperm.xlu1 %4592, %v2455_v57   ;;  %2715 = vperm.xlu0 %4591, %v2454_v54   ;;  %vm855_vm12 = vcmp.lt.s32.totalorder %v5228_v25, %v7760_v59  ;;  %v2373_v27 = vsel %vm2372_vm4, %v2256_v8, %v2371_v48  ;;  %vm2374_vm11 = vcmask 1043459   ;;  %v1169_v36 = vld [vmem:[#allocation2] sm:$0xff] }
 0x233   : > { %vm2376_vm14 = vcmask 1044484   ;;  %v2298_v17 = vadd.f32 %v2297_v4, %v2296_v49  ;;  %vm2378_vm1 = vcmask 1045509   ;;  %v2319_v41 = vadd.f32 %v2318_v38, %v2317_v40  ;;  %v1041_v38 = vld [vmem:[%s5134_s17] sm:$0xf] }
 0x234   : > { %v2358_v14 = vrot.slane %v2357_v10, 2  ;;  %v712_v11 = vcombine.high %v7483_v12, %v7483_v12  ;;  %v2340_v16 = vadd.f32 %v2339_v42, %v2338_v18  ;;  %v2459_v0 = vsel %vm856_vm13, 1, %v9270_v58 }
 0x235   : > { %v7831_v31 = vpop.permute.xlu1 %2538  ;;  %v7833_v52 = vpop.permute.xlu0 %2535  ;;  %v2458_v9 = vsel %vm855_vm12, 1, %v9270_v58  ;;  %vm2380_vm5 = vcmask 1046534   ;;  %v2375_v55 = vsel %vm2374_vm11, %v2277_v24, %v2373_v27  ;;  %vm858_vm15 = vcmp.lt.s32.totalorder %v5237_v28, %v7760_v59 }
 0x236   : > { %v2359_v22 = vadd.f32 %v2358_v14, %v2357_v10  ;;  %2724 = vperm.xlu1 %4592, %v2457_v45   ;;  %2721 = vperm.xlu0 %4591, %v2456_v30   ;;  %vm857_vm0 = vcmp.lt.s32.totalorder %v5240_v29, %v7760_v59  ;;  %v2377_v2 = vsel %vm2376_vm14, %v2298_v17, %v2375_v55  ;;  %vm9186_vm2 = vcmask 1047559   ;;  %v1043_v45 = vld [vmem:[%s5134_s17 + $0x8] sm:$0xf] }
 0x237   : > { %v2379_v1 = vsel %vm2378_vm1, %v2319_v41, %v2377_v2  ;;  %v7851_v40 = vrot.slane %v712_v11, %v9517_v46  ;;  %v2461_v20 = vsel %vm858_vm15, 1, %v9270_v58  ;;  %v2460_v18 = vsel %vm857_vm0, 1, %v9270_v58  ;;  %v1045_v2 = vld [vmem:[%s5134_s17 + $0x10] sm:$0xf] }
 0x238   : > { %v2360_v62 = vrot.slane %v2359_v22, 1  ;;  %v2381_v57 = vsel %vm2380_vm5, %v2340_v16, %v2379_v1  ;;  %vm860_vm6 = vcmp.lt.s32.totalorder %v5245_v32, %v7760_v59  ;;  %vm859_vm8 = vcmp.lt.s32.totalorder %v9555_v3, %v7760_v59  ;;  %v1058_v1 = vld [vmem:[%s5134_s17 + $0x44] sm:$0xf] }
 0x239   : > { %v7845_v56 = vpop.permute.xlu1 %2544  ;;  %v7847_v12 = vpop.permute.xlu0 %2541  ;;  %vm2901_vm3 = vcmp.eq.s32.totalorder %v7789_v15, 1  ;;  %vm2900_vm10 = vcmp.eq.s32.totalorder %v7791_v6, 1  ;;  %v750_v21 = vsub.s32 %v7851_v40, %v9569_v60  ;;  %v2463_v8 = vsel %vm860_vm6, 1, %v9270_v58  ;;  %v1042_v6 = vld [vmem:[%s5134_s17 + $0x4] sm:$0xf] }
 0x23a   : > { %v2361_v49 = vadd.f32 %v2360_v62, %v2359_v22  ;;  %2730 = vperm.xlu1 %4592, %v2459_v0   ;;  %2727 = vperm.xlu0 %4591, %v2458_v9   ;;  %v2462_v4 = vsel %vm859_vm8, 1, %v9270_v58  ;;  %vm7871_vm7 = vmpackc.low %vm2901_vm3, %vm2901_vm3  ;;  %vm2902_vm13 = vcmp.eq.s32.totalorder %v7806_v26, 1  ;;  %vm862_vm12 = vcmp.lt.s32.totalorder %v9558_v51, %v7760_v59 }
 0x23b   : > { %vm861_vm15 = vcmp.lt.s32.totalorder %v9568_v63, %v7760_v59  ;;  %vm7882_vm0 = vmpackc.low %vm2900_vm10, %vm2900_vm10  ;;  %vm864_vm6 = vcmp.lt.s32.totalorder %v9572_v53, %v7760_v59  ;;  %v7893_v26 = vrot.slane %v750_v21, %v9573_v43  ;;  %v2465_v24 = vsel %vm862_vm12, 1, %v9270_v58 }
 0x23c   : > { %v2383_v54 = vsel %vm9186_vm2, %v2361_v49, %v2381_v57  ;;  %vm7896_vm8 = vmpackc.low %vm2902_vm13, %vm2902_vm13  ;;  %v2464_v14 = vsel %vm861_vm15, 1, %v9270_v58  ;;  %vm863_vm3 = vcmp.lt.s32.totalorder %v9574_v33, %v7760_v59  ;;  %v3157_v27 = vsel %vm7871_vm7, %v1042_v6, 0 }
 0x23d   : > { %v7862_v46 = vpop.permute.xlu1 %2550  ;;  %v7864_v35 = vpop.permute.xlu0 %2547  ;;  %v2385_v61 = vadd.f32 %v2383_v54, %v1169_v36  ;;  %v3156_v17 = vsel %vm7882_vm0, %v1041_v38, 0  ;;  %v2467_v11 = vsel %vm864_vm6, 1, %v9270_v58  ;;  %vm2903_vm10 = vcmp.eq.s32.totalorder %v7804_v39, 1  ;;  %v1044_v39 = vld [vmem:[%s5134_s17 + $0xc] sm:$0xf] }
 0x23e   : > { %2736 = vperm.xlu1 %4592, %v2461_v20   ;;  %2733 = vperm.xlu0 %4591, %v2460_v18   ;;  %v3158_v59 = vsel %vm7896_vm8, %v1043_v45, 0  ;;  %v2466_v16 = vsel %vm863_vm3, 1, %v9270_v58  ;;  %vm866_vm7 = vcmp.lt.s32.totalorder %v9577_v7, %v7893_v26  ;;  %v3285_v0 = vunpack.c.l.bf16 %v3157_v27  ;;  %vm7927_vm6 = vmpackc.low %vm2903_vm10, %vm2903_vm10  ;;  %v1057_v20 = vld [vmem:[%s5134_s17 + $0x40] sm:$0xf]  ;;  %v1059_v27 = vld [vmem:[%s5134_s17 + $0x48] sm:$0xf] }
 0x23f   : > { %2386 = vst [vmem:[#allocation2] sm:$0xff] %v2385_v61  ;;  %v3284_v9 = vunpack.c.l.bf16 %v3156_v17  ;;  %vm2904_vm13 = vcmp.eq.s32.totalorder %v7821_v47, 1  ;;  %vm865_vm12 = vcmp.lt.s32.totalorder %v9578_v23, %v7893_v26  ;;  %vm868_vm15 = vcmp.lt.s32.totalorder %v9582_v13, %v7893_v26  ;;  %v1049_v47 = vld [vmem:[%s5134_s17 + $0x20] sm:$0xf] }
 0x240   : > { %vm867_vm0 = vcmp.lt.s32.totalorder %v9583_v50, %v7893_v26  ;;  %v3286_v62 = vunpack.c.l.bf16 %v3158_v59  ;;  %vm7933_vm8 = vmpackc.low %vm2904_vm13, %vm2904_vm13  ;;  %v2469_v18 = vsel %vm866_vm7, 1, %v9270_v58  ;;  %v2468_v57 = vsel %vm865_vm12, 1, %v9270_v58 }
 0x241   : > { %v7886_v48 = vpop.permute.xlu1 %2556  ;;  %v7888_v42 = vpop.permute.xlu0 %2553  ;;  %v3412_v54 = vadd.f32 %v3285_v0, %v3284_v9  ;;  %v2471_v61 = vsel %vm868_vm15, 1, %v9270_v58  ;;  %v2470_v21 = vsel %vm867_vm0, 1, %v9270_v58  ;;  %vm870_vm7 = vcmp.lt.s32.totalorder %v9585_v37, %v7893_v26  ;;  %v1046_v9 = vld [vmem:[%s5134_s17 + $0x14] sm:$0xf] }
 0x242   : > { %2742 = vperm.xlu1 %4592, %v2463_v8   ;;  %2739 = vperm.xlu0 %4591, %v2462_v4   ;;  %v3159_v8 = vsel %vm7927_vm6, %v1044_v39, 0  ;;  %vm869_vm12 = vcmp.lt.s32.totalorder %v9586_v5, %v7893_v26  ;;  %vm872_vm15 = vcmp.lt.s32.totalorder %v9587_v19, %v7893_v26  ;;  %v3160_v6 = vsel %vm7933_vm8, %v1045_v2, 0 }
 0x243   : > { %v3413_v15 = vadd.f32 %v3412_v54, %v3286_v62  ;;  %v3287_v17 = vunpack.c.l.bf16 %v3159_v8  ;;  %vm2906_vm6 = vcmp.eq.s32.totalorder %v7833_v52, 1  ;;  %v2473_v59 = vsel %vm870_vm7, 1, %v9270_v58  ;;  %v1047_v54 = vld [vmem:[%s5134_s17 + $0x18] sm:$0xf] }
 0x244   : > { %v7984_v0 = vsel %vm872_vm15, 1, %v9270_v58  ;;  %vm874_vm7 = vcmp.lt.s32.totalorder %v5237_v28, %v7893_v26  ;;  %v3288_v62 = vunpack.c.l.bf16 %v3160_v6  ;;  %vm8005_vm15 = vmpackc.low %vm2906_vm6, %vm2906_vm6  ;;  %vm876_vm6 = vcmp.lt.s32.totalorder %v5245_v32, %v7893_v26 }
 0x245   : > { %v7908_v41 = vpop.permute.xlu1 %2562  ;;  %v7910_v22 = vpop.permute.xlu0 %2559  ;;  %v3414_v55 = vadd.f32 %v3413_v15, %v3287_v17 }
 0x246   : > { %2748 = vperm.xlu1 %4592, %v2465_v24   ;;  %2745 = vperm.xlu0 %4591, %v2464_v14   ;;  %v1060_v14 = vld [vmem:[%s5134_s17 + $0x4c] sm:$0xf] }
 0x249   : > { %v2569_v49 = vpop.permute.xlu1 %2568  ;;  %v2566_v36 = vpop.permute.xlu0 %2565 }
 0x24a   : > { %vm2917_vm3 = vcmp.eq.s32.totalorder %v2569_v49, 1  ;;  %vm2916_vm2 = vcmp.eq.s32.totalorder %v2566_v36, 1  ;;  %2754 = vperm.xlu1 %4592, %v2467_v11   ;;  %2751 = vperm.xlu0 %4591, %v2466_v16   ;;  %v2472_v16 = vsel %vm869_vm12, 1, %v9270_v58  ;;  %v1064_v11 = vld [vmem:[%s5134_s17 + $0x5c] sm:$0xf] }
 0x24b   : > { %vm3045_vm10 = vmpackc.low %vm2917_vm3, %vm2917_vm3  ;;  %vm2905_vm3 = vcmp.eq.s32.totalorder %v7819_v44, 1 }
 0x24c   : > { %v3173_v4 = vsel %vm3045_vm10, %v1058_v1, 0  ;;  %vm3044_vm13 = vmpackc.low %vm2916_vm2, %vm2916_vm2 }
 0x24d   : > { %v3172_v38 = vsel %vm3044_vm13, %v1057_v20, 0  ;;  %v2575_v10 = vpop.permute.xlu1 %2574  ;;  %v2572_v45 = vpop.permute.xlu0 %2571  ;;  %v3301_v30 = vunpack.c.l.bf16 %v3173_v4  ;;  %vm871_vm13 = vcmp.lt.s32.totalorder %v5228_v25, %v7893_v26  ;;  %vm7996_vm12 = vmpackc.low %vm2905_vm3, %vm2905_vm3  ;;  %v8024_v4 = vsel %vm874_vm7, 1, %v9270_v58 }
 0x24e   : > { %v3300_v24 = vunpack.c.l.bf16 %v3172_v38  ;;  %vm2919_vm2 = vcmp.eq.s32.totalorder %v2575_v10, 1  ;;  %vm2918_vm0 = vcmp.eq.s32.totalorder %v2572_v45, 1  ;;  %2760 = vperm.xlu1 %4592, %v2469_v18   ;;  %2757 = vperm.xlu0 %4591, %v2468_v57   ;;  %v1062_v18 = vld [vmem:[%s5134_s17 + $0x54] sm:$0xf]  ;;  %v1061_v57 = vld [vmem:[%s5134_s17 + $0x50] sm:$0xf]  ;;  %v3415_v38 = vadd.f32 %v3414_v55, %v3288_v62 }
 0x24f   : > { %vm7968_vm10 = vmpackc.low %vm2919_vm2, %vm2919_vm2  ;;  %vm873_vm2 = vcmp.lt.s32.totalorder %v5240_v29, %v7893_v26  ;;  %v2474_v52 = vsel %vm871_vm13, 1, %v9270_v58  ;;  %vm875_vm13 = vcmp.lt.s32.totalorder %v9555_v3, %v7893_v26  ;;  %vm2907_vm7 = vcmp.eq.s32.totalorder %v7831_v31, 1  ;;  %v1068_v55 = vld [vmem:[%s5134_s17 + $0x6c] sm:$0xf] }
 0x250   : > { %vm3046_vm8 = vmpackc.low %vm2918_vm0, %vm2918_vm0  ;;  %v3175_v2 = vsel %vm7968_vm10, %v1060_v14, 0  ;;  %v3433_v44 = vadd.f32 %v3301_v30, %v3300_v24  ;;  %v3162_v14 = vsel %vm8005_vm15, %v1047_v54, 0  ;;  %v742_v62 = vcombine.high %v7719_v34, %v7719_v34 }
 0x251   : > { %v3174_v1 = vsel %vm3046_vm8, %v1059_v27, 0  ;;  %v2581_v49 = vpop.permute.xlu1 %2580  ;;  %v2578_v36 = vpop.permute.xlu0 %2577  ;;  %v3303_v15 = vunpack.c.l.bf16 %v3175_v2 }
 0x252   : > { %v3302_v20 = vunpack.c.l.bf16 %v3174_v1  ;;  %vm2921_vm3 = vcmp.eq.s32.totalorder %v2581_v49, 1  ;;  %vm2920_vm0 = vcmp.eq.s32.totalorder %v2578_v36, 1  ;;  %2766 = vperm.xlu1 %4592, %v2471_v61   ;;  %2763 = vperm.xlu0 %4591, %v2470_v21   ;;  %v8030_v61 = vsel %vm873_vm2, 1, %v9270_v58 }
 0x253   : > { %vm8012_vm10 = vmpackc.low %vm2921_vm3, %vm2921_vm3  ;;  %v3161_v21 = vsel %vm7996_vm12, %v1046_v9, 0  ;;  %v1063_v9 = vld [vmem:[%s5134_s17 + $0x58] sm:$0xf]  ;;  %vm2908_vm12 = vcmp.eq.s32.totalorder %v7847_v12, 1  ;;  %v3290_v36 = vunpack.c.l.bf16 %v3162_v14  ;;  %v1069_v12 = vld [vmem:[%s5134_s17 + $0x70] sm:$0xf] }
 0x254   : > { %v3434_v6 = vadd.f32 %v3433_v44, %v3302_v20  ;;  %vm3048_vm8 = vmpackc.low %vm2920_vm0, %vm2920_vm0  ;;  %v3177_v10 = vsel %vm8012_vm10, %v1062_v18, 0  ;;  %v3289_v39 = vunpack.c.l.bf16 %v3161_v21  ;;  %vm878_vm10 = vcmp.lt.s32.totalorder %v9558_v51, %v7893_v26  ;;  %v1066_v21 = vld [vmem:[%s5134_s17 + $0x64] sm:$0xf] }
 0x255   : > { %v3176_v45 = vsel %vm3048_vm8, %v1061_v57, 0  ;;  %v2587_v30 = vpop.permute.xlu1 %2586  ;;  %v2584_v24 = vpop.permute.xlu0 %2583  ;;  %v3305_v2 = vunpack.c.l.bf16 %v3177_v10  ;;  %vm8064_vm8 = vmpackc.low %vm2907_vm7, %vm2907_vm7 }
 0x256   : > { %v3435_v27 = vadd.f32 %v3434_v6, %v3303_v15  ;;  %v3304_v17 = vunpack.c.l.bf16 %v3176_v45  ;;  %vm2923_vm2 = vcmp.eq.s32.totalorder %v2587_v30, 1  ;;  %2772 = vperm.xlu1 %4592, %v2473_v59   ;;  %2769 = vperm.xlu0 %4591, %v2472_v16   ;;  %vm2922_vm0 = vcmp.eq.s32.totalorder %v2584_v24, 1  ;;  %v1048_v16 = vld [vmem:[%s5134_s17 + $0x1c] sm:$0xf]  ;;  %v1065_v15 = vld [vmem:[%s5134_s17 + $0x60] sm:$0xf] }
 0x257   : > { %vm8046_vm3 = vmpackc.low %vm2923_vm2, %vm2923_vm2  ;;  %v8056_v59 = vsel %vm876_vm6, 1, %v9270_v58  ;;  %v3416_v49 = vadd.f32 %v3415_v38, %v3289_v39  ;;  %v2478_v6 = vsel %vm875_vm13, 1, %v9270_v58  ;;  %v8093_v38 = vsel %vm878_vm10, 1, %v9270_v58 }
 0x258   : > { %v3436_v1 = vadd.f32 %v3435_v27, %v3304_v17  ;;  %vm3050_vm15 = vmpackc.low %vm2922_vm0, %vm2922_vm0  ;;  %v3179_v44 = vsel %vm8046_vm3, %v1064_v11, 0  ;;  %vm877_vm3 = vcmp.lt.s32.totalorder %v9568_v63, %v7893_v26  ;;  %vm2909_vm13 = vcmp.eq.s32.totalorder %v7845_v56, 1 }
 0x259   : > { %v3178_v20 = vsel %vm3050_vm15, %v1063_v9, 0  ;;  %v2593_v18 = vpop.permute.xlu1 %2592  ;;  %v2590_v57 = vpop.permute.xlu0 %2589  ;;  %vm8074_vm6 = vmpackc.low %vm2908_vm12, %vm2908_vm12  ;;  %v3307_v10 = vunpack.c.l.bf16 %v3179_v44  ;;  %v3417_v30 = vadd.f32 %v3416_v49, %v3290_v36 }
 0x25a   : > { %v3437_v31 = vadd.f32 %v3436_v1, %v3305_v2  ;;  %v3306_v8 = vunpack.c.l.bf16 %v3178_v20  ;;  %vm2925_vm7 = vcmp.eq.s32.totalorder %v2593_v18, 1  ;;  %2778 = vperm.xlu1 %4592, %v7984_v0   ;;  %2775 = vperm.xlu0 %4591, %v2474_v52   ;;  %vm2924_vm12 = vcmp.eq.s32.totalorder %v2590_v57, 1  ;;  %v1051_v20 = vld [vmem:[%s5134_s17 + $0x28] sm:$0xf] }
 0x25b   : > { %vm8085_vm2 = vmpackc.low %vm2925_vm7, %vm2925_vm7  ;;  %v751_v0 = vsub.s32 %v742_v62, %v9569_v60  ;;  %v3163_v52 = vsel %vm8064_vm8, %v1048_v16, 0  ;;  %v3164_v24 = vsel %vm8074_vm6, %v1049_v47, 0  ;;  %v1067_v62 = vld [vmem:[%s5134_s17 + $0x68] sm:$0xf]  ;;  %vm2910_vm8 = vcmp.eq.s32.totalorder %v7864_v35, 1 }
 0x25c   : > { %v3438_v45 = vadd.f32 %v3437_v31, %v3306_v8  ;;  %vm3052_vm0 = vmpackc.low %vm2924_vm12, %vm2924_vm12  ;;  %v3181_v14 = vsel %vm8085_vm2, %v1066_v21, 0  ;;  %v3291_v2 = vunpack.c.l.bf16 %v3163_v52  ;;  %v2480_v16 = vsel %vm877_vm3, 1, %v9270_v58 }
 0x25d   : > { %v3180_v27 = vsel %vm3052_vm0, %v1065_v15, 0  ;;  %v2599_v17 = vpop.permute.xlu1 %2598  ;;  %v2596_v11 = vpop.permute.xlu0 %2595  ;;  %v8119_v34 = vrot.slane %v751_v0, %v9573_v43  ;;  %v3309_v49 = vunpack.c.l.bf16 %v3181_v14  ;;  %vm880_vm2 = vcmp.lt.s32.totalorder %v9572_v53, %v7893_v26  ;;  %vm8129_vm0 = vmpackc.low %vm2909_vm13, %vm2909_vm13  ;;  %v1070_v15 = vld [vmem:[%s5134_s17 + $0x74] sm:$0xf] }
 0x25e   : > { %v3439_v9 = vadd.f32 %v3438_v45, %v3307_v10  ;;  %v3308_v39 = vunpack.c.l.bf16 %v3180_v27  ;;  %vm2927_vm15 = vcmp.eq.s32.totalorder %v2599_v17, 1  ;;  %vm2926_vm10 = vcmp.eq.s32.totalorder %v2596_v11, 1  ;;  %2784 = vperm.xlu1 %4592, %v8024_v4   ;;  %2781 = vperm.xlu0 %4591, %v8030_v61   ;;  %v1050_v61 = vld [vmem:[%s5134_s17 + $0x24] sm:$0xf]  ;;  %vm8139_vm3 = vmpackc.low %vm2910_vm8, %vm2910_vm8 }
 0x25f   : > { %vm8110_vm6 = vmpackc.low %vm2927_vm15, %vm2927_vm15  ;;  %vm879_vm12 = vcmp.lt.s32.totalorder %v9574_v33, %v7893_v26  ;;  %v3418_v47 = vadd.f32 %v3417_v30, %v3291_v2  ;;  %v3292_v44 = vunpack.c.l.bf16 %v3164_v24  ;;  %v2483_v35 = vsel %vm880_vm2, 1, %v9270_v58 }
 0x260   : > { %v3440_v4 = vadd.f32 %v3439_v9, %v3308_v39  ;;  %vm3054_vm7 = vmpackc.low %vm2926_vm10, %vm2926_vm10  ;;  %v3183_v18 = vsel %vm8110_vm6, %v1068_v55, 0  ;;  %vm2911_vm10 = vcmp.eq.s32.totalorder %v7862_v46, 1  ;;  %vm882_vm8 = vcmp.lt.s32.totalorder %v9577_v7, %v8119_v34  ;;  %v1072_v39 = vld [vmem:[%s5134_s17 + $0x7c] sm:$0xf]  ;;  %v1071_v55 = vld [vmem:[%s5134_s17 + $0x78] sm:$0xf] }
 0x261   : > { %v3182_v57 = vsel %vm3054_vm7, %v1067_v62, 0  ;;  %v2605_v54 = vpop.permute.xlu1 %2604  ;;  %v2602_v31 = vpop.permute.xlu0 %2601  ;;  %v744_v52 = vcombine.high %v7851_v40, %v7851_v40  ;;  %v3419_v45 = vadd.f32 %v3418_v47, %v3292_v44  ;;  %v3166_v30 = vsel %vm8139_vm3, %v1051_v20, 0  ;;  %vm8170_vm2 = vmpackc.low %vm2911_vm10, %vm2911_vm10  ;;  %v1074_v44 = vld [vmem:[%s5134_s17 + $0x84] sm:$0xf] }
 0x262   : > { %v3441_v56 = vadd.f32 %v3440_v4, %v3309_v49  ;;  %v3310_v21 = vunpack.c.l.bf16 %v3182_v57  ;;  %vm2929_vm13 = vcmp.eq.s32.totalorder %v2605_v54, 1  ;;  %vm2928_vm15 = vcmp.eq.s32.totalorder %v2602_v31, 1  ;;  %2790 = vperm.xlu1 %4592, %v8056_v59   ;;  %2787 = vperm.xlu0 %4591, %v2478_v6   ;;  %v1052_v49 = vld [vmem:[%s5134_s17 + $0x2c] sm:$0xf]  ;;  %v1053_v57 = vld [vmem:[%s5134_s17 + $0x30] sm:$0xf] }
 0x263   : > { %vm8147_vm6 = vmpackc.low %vm2929_vm13, %vm2929_vm13  ;;  %v3165_v59 = vsel %vm8129_vm0, %v1050_v61, 0  ;;  %v3311_v6 = vunpack.c.l.bf16 %v3183_v18  ;;  %vm881_vm13 = vcmp.lt.s32.totalorder %v9578_v23, %v8119_v34  ;;  %v2482_v2 = vsel %vm879_vm12, 1, %v9270_v58 }
 0x264   : > { %v3442_v10 = vadd.f32 %v3441_v56, %v3310_v21  ;;  %vm3056_vm7 = vmpackc.low %vm2928_vm15, %vm2928_vm15  ;;  %v3185_v24 = vsel %vm8147_vm6, %v1070_v15, 0  ;;  %v3293_v62 = vunpack.c.l.bf16 %v3165_v59  ;;  %vm2912_vm15 = vcmp.eq.s32.totalorder %v7888_v42, 1  ;;  %v1073_v56 = vld [vmem:[%s5134_s17 + $0x80] sm:$0xf] }
 0x265   : > { %v3184_v14 = vsel %vm3056_vm7, %v1069_v12, 0  ;;  %v2611_v27 = vpop.permute.xlu1 %2610  ;;  %v2608_v40 = vpop.permute.xlu0 %2607  ;;  %v752_v1 = vsub.s32 %v744_v52, %v9569_v60  ;;  %v3313_v4 = vunpack.c.l.bf16 %v3185_v24  ;;  %v2484_v61 = vsel %vm881_vm13, 1, %v9270_v58  ;;  %vm8203_vm12 = vmpackc.low %vm2912_vm15, %vm2912_vm15 }
 0x266   : > { %v3443_v11 = vadd.f32 %v3442_v10, %v3311_v6  ;;  %v3312_v9 = vunpack.c.l.bf16 %v3184_v14  ;;  %vm2931_vm0 = vcmp.eq.s32.totalorder %v2611_v27, 1  ;;  %vm2930_vm3 = vcmp.eq.s32.totalorder %v2608_v40, 1  ;;  %2796 = vperm.xlu1 %4592, %v8093_v38   ;;  %2793 = vperm.xlu0 %4591, %v2480_v16   ;;  %v1075_v14 = vld [vmem:[%s5134_s17 + $0x88] sm:$0xf] }
 0x267   : > { %vm8178_vm6 = vmpackc.low %vm2931_vm0, %vm2931_vm0  ;;  %v2485_v16 = vsel %vm882_vm8, 1, %v9270_v58  ;;  %v3420_v26 = vadd.f32 %v3419_v45, %v3293_v62  ;;  %v3294_v36 = vunpack.c.l.bf16 %v3166_v30  ;;  %v3167_v21 = vsel %vm8170_vm2, %v1052_v49, 0 }
 0x268   : > { %v3444_v38 = vadd.f32 %v3443_v11, %v3312_v9  ;;  %vm3058_vm10 = vmpackc.low %vm2930_vm3, %vm2930_vm3  ;;  %v3187_v60 = vsel %vm8178_vm6, %v1072_v39, 0  ;;  %vm884_vm0 = vcmp.lt.s32.totalorder %v9582_v13, %v8119_v34  ;;  %vm883_vm3 = vcmp.lt.s32.totalorder %v9583_v50, %v8119_v34  ;;  %v1054_v39 = vld [vmem:[%s5134_s17 + $0x34] sm:$0xf] }
 0x269   : > { %v3186_v47 = vsel %vm3058_vm10, %v1071_v55, 0  ;;  %v2617_v20 = vpop.permute.xlu1 %2616  ;;  %v2614_v18 = vpop.permute.xlu0 %2613  ;;  %v8215_v42 = vrot.slane %v752_v1, %v9573_v43  ;;  %vm2913_vm15 = vcmp.eq.s32.totalorder %v7886_v48, 1  ;;  %v3315_v15 = vunpack.c.l.bf16 %v3187_v60  ;;  %v1076_v43 = vld [vmem:[%s5134_s17 + $0x8c] sm:$0xf] }
 0x26a   : > { %v3445_v31 = vadd.f32 %v3444_v38, %v3313_v4  ;;  %v3314_v8 = vunpack.c.l.bf16 %v3186_v47  ;;  %vm2933_vm8 = vcmp.eq.s32.totalorder %v2617_v20, 1  ;;  %vm2932_vm7 = vcmp.eq.s32.totalorder %v2614_v18, 1  ;;  %2802 = vperm.xlu1 %4592, %v2483_v35   ;;  %2799 = vperm.xlu0 %4591, %v2482_v2  }
 0x26b   : > { %vm3061_vm13 = vmpackc.low %vm2933_vm8, %vm2933_vm8  ;;  %v3421_v35 = vadd.f32 %v3420_v26, %v3294_v36  ;;  %v3168_v52 = vsel %vm8203_vm12, %v1053_v57, 0  ;;  %v3295_v27 = vunpack.c.l.bf16 %v3167_v21  ;;  %vm2914_vm8 = vcmp.eq.s32.totalorder %v7910_v22, 1  ;;  %v1055_v26 = vld [vmem:[%s5134_s17 + $0x38] sm:$0xf]  ;;  %v1080_v21 = vld [vmem:[%s5134_s17 + $0x9c] sm:$0xf] }
 0x26c   : > { %v3446_v12 = vadd.f32 %v3445_v31, %v3314_v8  ;;  %v3189_v0 = vsel %vm3061_vm13, %v1074_v44, 0  ;;  %vm3060_vm6 = vmpackc.low %vm2932_vm7, %vm2932_vm7  ;;  %v2487_v17 = vsel %vm884_vm0, 1, %v9270_v58  ;;  %v2486_v11 = vsel %vm883_vm3, 1, %v9270_v58 }
 0x26d   : > { %v3317_v59 = vunpack.c.l.bf16 %v3189_v0  ;;  %v3188_v6 = vsel %vm3060_vm6, %v1073_v56, 0  ;;  %v2623_v10 = vpop.permute.xlu1 %2622  ;;  %v2620_v45 = vpop.permute.xlu0 %2619  ;;  %vm898_vm13 = vcmp.lt.s32.totalorder %v9577_v7, %v8215_v42  ;;  %vm897_vm6 = vcmp.lt.s32.totalorder %v9578_v23, %v8215_v42  ;;  %vm8245_vm0 = vmpackc.low %vm2913_vm15, %vm2913_vm15 }
 0x26e   : > { %v8220_v30 = vadd.f32 %v3446_v12, %v3315_v15  ;;  %v3316_v24 = vunpack.c.l.bf16 %v3188_v6  ;;  %vm2935_vm2 = vcmp.eq.s32.totalorder %v2623_v10, 1  ;;  %vm2934_vm10 = vcmp.eq.s32.totalorder %v2620_v45, 1  ;;  %2808 = vperm.xlu1 %4592, %v2485_v16   ;;  %2805 = vperm.xlu0 %4591, %v2484_v61   ;;  %vm8254_vm3 = vmpackc.low %vm2914_vm8, %vm2914_vm8  ;;  %v1078_v16 = vld [vmem:[%s5134_s17 + $0x94] sm:$0xf]  ;;  %v1077_v61 = vld [vmem:[%s5134_s17 + $0x90] sm:$0xf] }
 0x26f   : > { %vm8225_vm7 = vmpackc.low %vm2935_vm2, %vm2935_vm2  ;;  %v3422_v62 = vadd.f32 %v3421_v35, %v3295_v27  ;;  %v3296_v46 = vunpack.c.l.bf16 %v3168_v52  ;;  %v2501_v22 = vsel %vm898_vm13, 1, %v9270_v58  ;;  %v2500_v60 = vsel %vm897_vm6, 1, %v9270_v58  ;;  %v1079_v15 = vld [vmem:[%s5134_s17 + $0x98] sm:$0xf]  ;;  %v1056_v10 = vld [vmem:[%s5134_s17 + $0x3c] sm:$0xf] }
 0x270   : > { %v3454_v9 = vadd.f32 %v3317_v59, %v3316_v24  ;;  %vm3062_vm12 = vmpackc.low %vm2934_vm10, %vm2934_vm10  ;;  %v3191_v2 = vsel %vm8225_vm7, %v1076_v43, 0  ;;  %vm900_vm8 = vcmp.lt.s32.totalorder %v9582_v13, %v8215_v42  ;;  %v3169_v47 = vsel %vm8245_vm0, %v1054_v39, 0 }
 0x271   : > { %v3190_v1 = vsel %vm3062_vm12, %v1075_v14, 0  ;;  %v2629_v49 = vpop.permute.xlu1 %2628  ;;  %v2626_v4 = vpop.permute.xlu0 %2625  ;;  %v3319_v44 = vunpack.c.l.bf16 %v3191_v2  ;;  %vm899_vm12 = vcmp.lt.s32.totalorder %v9583_v50, %v8215_v42  ;;  %v3423_v7 = vadd.f32 %v3422_v62, %v3296_v46 }
 0x272   : > { %v3318_v48 = vunpack.c.l.bf16 %v3190_v1  ;;  %vm2937_vm15 = vcmp.eq.s32.totalorder %v2629_v49, 1  ;;  %vm2936_vm2 = vcmp.eq.s32.totalorder %v2626_v4, 1  ;;  %2814 = vperm.xlu1 %4592, %v2487_v17   ;;  %2811 = vperm.xlu0 %4591, %v2486_v11   ;;  %vm2915_vm13 = vcmp.eq.s32.totalorder %v7908_v41, 1  ;;  %v1082_v11 = vld [vmem:[%s5134_s17 + $0xa4] sm:$0xf] }
 0x273   : > { %vm8261_vm10 = vmpackc.low %vm2937_vm15, %vm2937_vm15  ;;  %v3170_v31 = vsel %vm8254_vm3, %v1055_v26, 0  ;;  %v3297_v12 = vunpack.c.l.bf16 %v3169_v47  ;;  %v2503_v35 = vsel %vm900_vm8, 1, %v9270_v58  ;;  %v2502_v52 = vsel %vm899_vm12, 1, %v9270_v58  ;;  %v1083_v26 = vld [vmem:[%s5134_s17 + $0xa8] sm:$0xf] }
 0x274   : > { %v3455_v20 = vadd.f32 %v3454_v9, %v3318_v48  ;;  %vm3064_vm7 = vmpackc.low %vm2936_vm2, %vm2936_vm2  ;;  %v3193_v23 = vsel %vm8261_vm10, %v1078_v16, 0  ;;  %vm901_vm2 = vcmp.lt.s32.totalorder %v9586_v5, %v8215_v42  ;;  %vm885_vm10 = vcmp.lt.s32.totalorder %v9586_v5, %v8119_v34  ;;  %v1081_v9 = vld [vmem:[%s5134_s17 + $0xa0] sm:$0xf] }
 0x275   : > { %v3192_v18 = vsel %vm3064_vm7, %v1077_v61, 0  ;;  %v2635_v57 = vpop.permute.xlu1 %2634  ;;  %v2632_v54 = vpop.permute.xlu0 %2631  ;;  %v3321_v59 = vunpack.c.l.bf16 %v3193_v23  ;;  %vm8306_vm8 = vmpackc.low %vm2915_vm13, %vm2915_vm13  ;;  %v3424_v50 = vadd.f32 %v3423_v7, %v3297_v12  ;;  %v3298_v45 = vunpack.c.l.bf16 %v3170_v31  ;;  %v1084_v61 = vld [vmem:[%s5134_s17 + $0xac] sm:$0xf] }
 0x276   : > { %v3456_v8 = vadd.f32 %v3455_v20, %v3319_v44  ;;  %v3320_v56 = vunpack.c.l.bf16 %v3192_v18  ;;  %vm2939_vm6 = vcmp.eq.s32.totalorder %v2635_v57, 1  ;;  %2856 = vperm.xlu1 %4592, %v2501_v22   ;;  %2853 = vperm.xlu0 %4591, %v2500_v60   ;;  %vm2938_vm15 = vcmp.eq.s32.totalorder %v2632_v54, 1 }
 0x277   : > { %vm8286_vm0 = vmpackc.low %vm2939_vm6, %vm2939_vm6  ;;  %v2504_v39 = vsel %vm901_vm2, 1, %v9270_v58  ;;  %v2488_v55 = vsel %vm885_vm10, 1, %v9270_v58  ;;  %vm902_vm6 = vcmp.lt.s32.totalorder %v9585_v37, %v8215_v42  ;;  %v3171_v62 = vsel %vm8306_vm8, %v1056_v10, 0 }
 0x278   : > { %v3457_v6 = vadd.f32 %v3456_v8, %v3320_v56  ;;  %vm3066_vm3 = vmpackc.low %vm2938_vm15, %vm2938_vm15  ;;  %v3195_v24 = vsel %vm8286_vm0, %v1080_v21, 0  ;;  %vm886_vm15 = vcmp.lt.s32.totalorder %v9585_v37, %v8119_v34  ;;  %v3425_v1 = vadd.f32 %v3424_v50, %v3298_v45  ;;  %v1086_v8 = vld [vmem:[%s5134_s17 + $0xb4] sm:$0xf]  ;;  %v1085_v56 = vld [vmem:[%s5134_s17 + $0xb0] sm:$0xf] }
 0x279   : > { %v3194_v43 = vsel %vm3066_vm3, %v1079_v15, 0  ;;  %v2641_v14 = vpop.permute.xlu1 %2640  ;;  %v2638_v27 = vpop.permute.xlu0 %2637  ;;  %v3323_v46 = vunpack.c.l.bf16 %v3195_v24  ;;  %v3299_v36 = vunpack.c.l.bf16 %v3171_v62  ;;  %v2505_v60 = vsel %vm902_vm6, 1, %v9270_v58  ;;  %v1088_v24 = vld [vmem:[%s5134_s17 + $0xbc] sm:$0xf] }
 0x27a   : > { %v3458_v40 = vadd.f32 %v3457_v6, %v3321_v59  ;;  %v3322_v17 = vunpack.c.l.bf16 %v3194_v43  ;;  %vm2941_vm7 = vcmp.eq.s32.totalorder %v2641_v14, 1  ;;  %2862 = vperm.xlu1 %4592, %v2503_v35   ;;  %2859 = vperm.xlu0 %4591, %v2502_v52   ;;  %vm2940_vm13 = vcmp.eq.s32.totalorder %v2638_v27, 1  ;;  %v1087_v43 = vld [vmem:[%s5134_s17 + $0xb8] sm:$0xf] }
 0x27b   : > { %vm8314_vm12 = vmpackc.low %vm2941_vm7, %vm2941_vm7  ;;  %v2489_v47 = vsel %vm886_vm15, 1, %v9270_v58  ;;  %vm903_vm7 = vcmp.lt.s32.totalorder %v5228_v25, %v8215_v42  ;;  %v3426_v7 = vadd.f32 %v3425_v1, %v3299_v36  ;;  %v3448_v21 = vrot.slane %v8220_v30, 4  ;;  %v1089_v1 = vld [vmem:[%s5134_s17 + $0xc0] sm:$0xf] }
 0x27c   : > { %v3459_v2 = vadd.f32 %v3458_v40, %v3322_v17  ;;  %vm3068_vm0 = vmpackc.low %vm2940_vm13, %vm2940_vm13  ;;  %v3197_v49 = vsel %vm8314_vm12, %v1082_v11, 0  ;;  %vm887_vm12 = vcmp.lt.s32.totalorder %v5228_v25, %v8119_v34  ;;  %v2506_v12 = vsel %vm903_vm7, 1, %v9270_v58 }
 0x27d   : > { %v3196_v4 = vsel %vm3068_vm0, %v1081_v9, 0  ;;  %v2647_v5 = vpop.permute.xlu1 %2646  ;;  %v2644_v38 = vpop.permute.xlu0 %2643  ;;  %v3325_v44 = vunpack.c.l.bf16 %v3197_v49  ;;  %v2490_v0 = vsel %vm887_vm12, 1, %v9270_v58  ;;  %v3427_v59 = vrot.slane %v3426_v7, 4 }
 0x27e   : > { %v3460_v48 = vadd.f32 %v3459_v2, %v3323_v46  ;;  %v3324_v16 = vunpack.c.l.bf16 %v3196_v4  ;;  %vm2943_vm3 = vcmp.eq.s32.totalorder %v2647_v5, 1  ;;  %vm2942_vm2 = vcmp.eq.s32.totalorder %v2644_v38, 1  ;;  %2865 = vperm.xlu1 %4592, %v2504_v39   ;;  %2817 = vperm.xlu0 %4591, %v2488_v55   ;;  %v1090_v55 = vld [vmem:[%s5134_s17 + $0xc4] sm:$0xf] }
 0x27f   : > { %vm8336_vm10 = vmpackc.low %vm2943_vm3, %vm2943_vm3  ;;  %vm904_vm3 = vcmp.lt.s32.totalorder %v9587_v19, %v8215_v42  ;;  %v3449_v14 = vadd.f32 %v3448_v21, %v8220_v30  ;;  %v3428_v30 = vadd.f32 %v3427_v59, %v3426_v7  ;;  %v1102_v59 = vld [vmem:[%s5134_s17 + $0xf4] sm:$0xf] }
 0x280   : > { %v3461_v20 = vadd.f32 %v3460_v48, %v3324_v16  ;;  %vm3070_vm8 = vmpackc.low %vm2942_vm2, %vm2942_vm2  ;;  %v3199_v23 = vsel %vm8336_vm10, %v1084_v61, 0  ;;  %vm888_vm2 = vcmp.lt.s32.totalorder %v9587_v19, %v8119_v34  ;;  %v2507_v40 = vsel %vm904_vm3, 1, %v9270_v58 }
 0x281   : > { %v3198_v18 = vsel %vm3070_vm8, %v1083_v26, 0  ;;  %v2653_v57 = vpop.permute.xlu1 %2652  ;;  %v2650_v54 = vpop.permute.xlu0 %2649  ;;  %v3327_v35 = vunpack.c.l.bf16 %v3199_v23  ;;  %v2491_v17 = vsel %vm888_vm2, 1, %v9270_v58  ;;  %v3450_v49 = vrot.slane %v3449_v14, 2 }
 0x282   : > { %v3462_v31 = vadd.f32 %v3461_v20, %v3325_v44  ;;  %v3326_v37 = vunpack.c.l.bf16 %v3198_v18  ;;  %vm2945_vm13 = vcmp.eq.s32.totalorder %v2653_v57, 1  ;;  %vm2944_vm6 = vcmp.eq.s32.totalorder %v2650_v54, 1  ;;  %2868 = vperm.xlu1 %4592, %v2505_v60   ;;  %2820 = vperm.xlu0 %4591, %v2489_v47   ;;  %v1091_v20 = vld [vmem:[%s5134_s17 + $0xc8] sm:$0xf] }
 0x283   : > { %vm8357_vm0 = vmpackc.low %vm2945_vm13, %vm2945_vm13  ;;  %vm905_vm13 = vcmp.lt.s32.totalorder %v5240_v29, %v8215_v42  ;;  %vm906_vm2 = vcmp.lt.s32.totalorder %v5237_v28, %v8215_v42  ;;  %v3429_v61 = vrot.slane %v3428_v30, 2  ;;  %v3451_v7 = vadd.f32 %v3450_v49, %v3449_v14 }
 0x284   : > { %v3463_v52 = vadd.f32 %v3462_v31, %v3326_v37  ;;  %vm3072_vm15 = vmpackc.low %vm2944_vm6, %vm2944_vm6  ;;  %v3201_v6 = vsel %vm8357_vm0, %v1086_v8, 0  ;;  %vm889_vm6 = vcmp.lt.s32.totalorder %v5240_v29, %v8119_v34  ;;  %v2508_v4 = vsel %vm905_vm13, 1, %v9270_v58  ;;  %v1092_v29 = vld [vmem:[%s5134_s17 + $0xcc] sm:$0xf] }
 0x285   : > { %v3200_v10 = vsel %vm3072_vm15, %v1085_v56, 0  ;;  %v2659_v13 = vpop.permute.xlu1 %2658  ;;  %v2656_v50 = vpop.permute.xlu0 %2655  ;;  %v3329_v11 = vunpack.c.l.bf16 %v3201_v6  ;;  %v2492_v5 = vsel %vm889_vm6, 1, %v9270_v58  ;;  %v2509_v18 = vsel %vm906_vm2, 1, %v9270_v58 }
 0x286   : > { %v3464_v45 = vadd.f32 %v3463_v52, %v3327_v35  ;;  %v3328_v25 = vunpack.c.l.bf16 %v3200_v10  ;;  %vm2947_vm10 = vcmp.eq.s32.totalorder %v2659_v13, 1  ;;  %vm2946_vm8 = vcmp.eq.s32.totalorder %v2656_v50, 1  ;;  %2871 = vperm.xlu1 %4592, %v2506_v12   ;;  %2823 = vperm.xlu0 %4591, %v2490_v0   ;;  %v1094_v0 = vld [vmem:[%s5134_s17 + $0xd4] sm:$0xf]  ;;  %v1093_v35 = vld [vmem:[%s5134_s17 + $0xd0] sm:$0xf] }
 0x287   : > { %vm8378_vm7 = vmpackc.low %vm2947_vm10, %vm2947_vm10  ;;  %v3430_v37 = vadd.f32 %v3429_v61, %v3428_v30  ;;  %v3452_v52 = vrot.slane %v3451_v7, 1  ;;  %v1098_v61 = vld [vmem:[%s5134_s17 + $0xe4] sm:$0xf] }
 0x288   : > { %v3465_v9 = vadd.f32 %v3464_v45, %v3328_v25  ;;  %vm3074_vm12 = vmpackc.low %vm2946_vm8, %vm2946_vm8  ;;  %v3203_v41 = vsel %vm8378_vm7, %v1088_v24, 0  ;;  %vm890_vm8 = vcmp.lt.s32.totalorder %v5237_v28, %v8119_v34 }
 0x289   : > { %v3202_v39 = vsel %vm3074_vm12, %v1087_v43, 0  ;;  %v2665_v62 = vpop.permute.xlu1 %2664  ;;  %v2662_v46 = vpop.permute.xlu0 %2661  ;;  %v3331_v38 = vunpack.c.l.bf16 %v3203_v41  ;;  %v2493_v57 = vsel %vm890_vm8, 1, %v9270_v58  ;;  %vm908_vm8 = vcmp.lt.s32.totalorder %v5245_v32, %v8215_v42 }
 0x28a   : > { %v3466_v19 = vadd.f32 %v3465_v9, %v3329_v11  ;;  %v3330_v2 = vunpack.c.l.bf16 %v3202_v39  ;;  %vm2949_vm0 = vcmp.eq.s32.totalorder %v2665_v62, 1  ;;  %vm2948_vm15 = vcmp.eq.s32.totalorder %v2662_v46, 1  ;;  %2874 = vperm.xlu1 %4592, %v2507_v40   ;;  %2826 = vperm.xlu0 %4591, %v2491_v17   ;;  %v1096_v11 = vld [vmem:[%s5134_s17 + $0xdc] sm:$0xf]  ;;  %v1095_v9 = vld [vmem:[%s5134_s17 + $0xd8] sm:$0xf] }
 0x28b   : > { %vm3077_vm3 = vmpackc.low %vm2949_vm0, %vm2949_vm0  ;;  %vm907_vm0 = vcmp.lt.s32.totalorder %v9555_v3, %v8215_v42  ;;  %v3431_v25 = vrot.slane %v3430_v37, 1  ;;  %v3453_v30 = vadd.f32 %v3452_v52, %v3451_v7  ;;  %v2511_v39 = vsel %vm908_vm8, 1, %v9270_v58 }
 0x28c   : > { %v3467_v48 = vadd.f32 %v3466_v19, %v3330_v2  ;;  %v3205_v16 = vsel %vm3077_vm3, %v1090_v55, 0  ;;  %vm3076_vm10 = vmpackc.low %vm2948_vm15, %vm2948_vm15  ;;  %vm891_vm15 = vcmp.lt.s32.totalorder %v9555_v3, %v8119_v34  ;;  %v2510_v6 = vsel %vm907_vm0, 1, %v9270_v58 }
 0x28d   : > { %v3333_v26 = vunpack.c.l.bf16 %v3205_v16  ;;  %v3204_v36 = vsel %vm3076_vm10, %v1089_v1, 0  ;;  %v2671_v22 = vpop.permute.xlu1 %2670  ;;  %v2668_v60 = vpop.permute.xlu0 %2667  ;;  %v2494_v10 = vsel %vm891_vm15, 1, %v9270_v58  ;;  %v3432_v2 = vadd.f32 %v3431_v25, %v3430_v37 }
 0x28e   : > { %v3468_v47 = vadd.f32 %v3467_v48, %v3331_v38  ;;  %v3332_v44 = vunpack.c.l.bf16 %v3204_v36  ;;  %vm2951_vm7 = vcmp.eq.s32.totalorder %v2671_v22, 1  ;;  %vm2950_vm12 = vcmp.eq.s32.totalorder %v2668_v60, 1  ;;  %2877 = vperm.xlu1 %4592, %v2508_v4   ;;  %2829 = vperm.xlu0 %4591, %v2492_v5  }
 0x28f   : > { %vm8412_vm13 = vmpackc.low %vm2951_vm7, %vm2951_vm7  ;;  %v3588_v36 = vsel %vm2370_vm9, %v3453_v30, %v3432_v2 }
 0x290   : > { %v3469_v54 = vrot.slane %v3468_v47, 4  ;;  %v3475_v31 = vadd.f32 %v3333_v26, %v3332_v44  ;;  %vm3078_vm6 = vmpackc.low %vm2950_vm12, %vm2950_vm12  ;;  %v3207_v8 = vsel %vm8412_vm13, %v1092_v29, 0  ;;  %vm892_vm12 = vcmp.lt.s32.totalorder %v5245_v32, %v8119_v34  ;;  %v1097_v26 = vld [vmem:[%s5134_s17 + $0xe0] sm:$0xf] }
 0x291   : > { %v3206_v56 = vsel %vm3078_vm6, %v1091_v20, 0  ;;  %v2677_v21 = vpop.permute.xlu1 %2676  ;;  %v2674_v15 = vpop.permute.xlu0 %2673  ;;  %v3335_v50 = vunpack.c.l.bf16 %v3207_v8  ;;  %vm909_vm13 = vcmp.lt.s32.totalorder %v9568_v63, %v8215_v42  ;;  %v2495_v55 = vsel %vm892_vm12, 1, %v9270_v58 }
 0x292   : > { %v3470_v12 = vadd.f32 %v3469_v54, %v3468_v47  ;;  %v3334_v28 = vunpack.c.l.bf16 %v3206_v56  ;;  %vm2953_vm3 = vcmp.eq.s32.totalorder %v2677_v21, 1  ;;  %vm2952_vm2 = vcmp.eq.s32.totalorder %v2674_v15, 1  ;;  %2880 = vperm.xlu1 %4592, %v2509_v18   ;;  %2832 = vperm.xlu0 %4591, %v2493_v57   ;;  %v1100_v54 = vld [vmem:[%s5134_s17 + $0xec] sm:$0xf] }
 0x293   : > { %vm8432_vm10 = vmpackc.low %vm2953_vm3, %vm2953_vm3  ;;  %v2512_v32 = vsel %vm909_vm13, 1, %v9270_v58  ;;  %vm910_vm12 = vcmp.lt.s32.totalorder %v9558_v51, %v8215_v42  ;;  %vm894_vm13 = vcmp.lt.s32.totalorder %v9558_v51, %v8119_v34 }
 0x294   : > { %v3471_v13 = vrot.slane %v3470_v12, 2  ;;  %v3476_v45 = vadd.f32 %v3475_v31, %v3334_v28  ;;  %vm3080_vm7 = vmpackc.low %vm2952_vm2, %vm2952_vm2  ;;  %v3209_v24 = vsel %vm8432_vm10, %v1094_v0, 0  ;;  %vm893_vm2 = vcmp.lt.s32.totalorder %v9568_v63, %v8119_v34  ;;  %v1099_v31 = vld [vmem:[%s5134_s17 + $0xe8] sm:$0xf] }
 0x295   : > { %v3208_v43 = vsel %vm3080_vm7, %v1093_v35, 0  ;;  %v2683_v14 = vpop.permute.xlu1 %2682  ;;  %v2680_v3 = vpop.permute.xlu0 %2679  ;;  %v3337_v46 = vunpack.c.l.bf16 %v3209_v24  ;;  %v2496_v60 = vsel %vm893_vm2, 1, %v9270_v58  ;;  %v2513_v8 = vsel %vm910_vm12, 1, %v9270_v58 }
 0x296   : > { %v3472_v27 = vadd.f32 %v3471_v13, %v3470_v12  ;;  %v3477_v40 = vadd.f32 %v3476_v45, %v3335_v50  ;;  %v3336_v17 = vunpack.c.l.bf16 %v3208_v43  ;;  %vm2955_vm6 = vcmp.eq.s32.totalorder %v2683_v14, 1  ;;  %2883 = vperm.xlu1 %4592, %v2510_v6   ;;  %2835 = vperm.xlu0 %4591, %v2494_v10   ;;  %v1101_v6 = vld [vmem:[%s5134_s17 + $0xf0] sm:$0xf] }
 0x297   : > { %vm8454_vm0 = vmpackc.low %vm2955_vm6, %vm2955_vm6  ;;  %vm2954_vm15 = vcmp.eq.s32.totalorder %v2680_v3, 1  ;;  %v2497_v56 = vsel %vm894_vm13, 1, %v9270_v58  ;;  %vm895_vm2 = vcmp.lt.s32.totalorder %v9574_v33, %v8119_v34  ;;  %vm896_vm13 = vcmp.lt.s32.totalorder %v9572_v53, %v8119_v34 }
 0x298   : > { %v3473_v62 = vrot.slane %v3472_v27, 1  ;;  %v3478_v19 = vadd.f32 %v3477_v40, %v3336_v17  ;;  %vm3082_vm3 = vmpackc.low %vm2954_vm15, %vm2954_vm15  ;;  %v3211_v1 = vsel %vm8454_vm0, %v1096_v11, 0  ;;  %v2498_v50 = vsel %vm895_vm2, 1, %v9270_v58  ;;  %v1104_v40 = vld [vmem:[%s5134_s17 + $0xfc] sm:$0xf] }
 0x299   : > { %v3210_v49 = vsel %vm3082_vm3, %v1095_v9, 0  ;;  %v2689_v4 = vpop.permute.xlu1 %2688  ;;  %v2686_v5 = vpop.permute.xlu0 %2685  ;;  %v3339_v44 = vunpack.c.l.bf16 %v3211_v1  ;;  %vm911_vm3 = vcmp.lt.s32.totalorder %v9574_v33, %v8215_v42  ;;  %v1103_v17 = vld [vmem:[%s5134_s17 + $0xf8] sm:$0xf]  ;;  %v2499_v9 = vsel %vm896_vm13, 1, %v9270_v58 }
 0x29a   : > { %v3474_v38 = vadd.f32 %v3473_v62, %v3472_v27  ;;  %v3479_v48 = vadd.f32 %v3478_v19, %v3337_v46  ;;  %v3338_v16 = vunpack.c.l.bf16 %v3210_v49  ;;  %vm2957_vm10 = vcmp.eq.s32.totalorder %v2689_v4, 1  ;;  %2886 = vperm.xlu1 %4592, %v2511_v39   ;;  %2838 = vperm.xlu0 %4591, %v2495_v55   ;;  %v1106_v62 = vld [vmem:[%s5134_s17 + $0x104] sm:$0xf]  ;;  %v1105_v49 = vld [vmem:[%s5134_s17 + $0x100] sm:$0xf] }
 0x29b   : > { %vm8477_vm8 = vmpackc.low %vm2957_vm10, %vm2957_vm10  ;;  %vm2956_vm7 = vcmp.eq.s32.totalorder %v2686_v5, 1  ;;  %v2514_v13 = vsel %vm911_vm3, 1, %v9270_v58 }
 0x29c   : > { %v8488_v47 = vsel %vm2372_vm4, %v3474_v38, %v3588_v36  ;;  %v3480_v29 = vadd.f32 %v3479_v48, %v3338_v16  ;;  %vm3084_vm9 = vmpackc.low %vm2956_vm7, %vm2956_vm7  ;;  %v3213_v20 = vsel %vm8477_vm8, %v1098_v61, 0  ;;  %v1108_v61 = vld [vmem:[%s5134_s17 + $0x10c] sm:$0xf] }
 0x29d   : > { %v3212_v7 = vsel %vm3084_vm9, %v1097_v26, 0  ;;  %v2695_v23 = vpop.permute.xlu1 %2694  ;;  %v2692_v63 = vpop.permute.xlu0 %2691  ;;  %v3341_v21 = vunpack.c.l.bf16 %v3213_v20  ;;  %vm912_vm9 = vcmp.lt.s32.totalorder %v9572_v53, %v8215_v42  ;;  %v1107_v26 = vld [vmem:[%s5134_s17 + $0x108] sm:$0xf] }
 0x29e   : > { %v3481_v18 = vadd.f32 %v3480_v29, %v3339_v44  ;;  %v3340_v57 = vunpack.c.l.bf16 %v3212_v7  ;;  %vm2959_vm6 = vcmp.eq.s32.totalorder %v2695_v23, 1  ;;  %vm2958_vm0 = vcmp.eq.s32.totalorder %v2692_v63, 1  ;;  %2889 = vperm.xlu1 %4592, %v2512_v32   ;;  %2841 = vperm.xlu0 %4591, %v2496_v60  }
 0x29f   : > { %vm8496_vm4 = vmpackc.low %vm2959_vm6, %vm2959_vm6  ;;  %v2515_v34 = vsel %vm912_vm9, 1, %v9270_v58 }
 0x2a0   : > { %v3482_v15 = vadd.f32 %v3481_v18, %v3340_v57  ;;  %vm3086_vm15 = vmpackc.low %vm2958_vm0, %vm2958_vm0  ;;  %v3215_v12 = vsel %vm8496_vm4, %v1100_v54, 0  ;;  %v1110_v18 = vld [vmem:[%s5134_s17 + $0x114] sm:$0xf]  ;;  %v1109_v57 = vld [vmem:[%s5134_s17 + $0x110] sm:$0xf] }
 0x2a1   : > { %v3214_v28 = vsel %vm3086_vm15, %v1099_v31, 0  ;;  %v2701_v0 = vpop.permute.xlu1 %2700  ;;  %v2698_v35 = vpop.permute.xlu0 %2697  ;;  %v3343_v45 = vunpack.c.l.bf16 %v3215_v12 }
 0x2a2   : > { %v3483_v51 = vadd.f32 %v3482_v15, %v3341_v21  ;;  %v3342_v52 = vunpack.c.l.bf16 %v3214_v28  ;;  %vm2961_vm10 = vcmp.eq.s32.totalorder %v2701_v0, 1  ;;  %vm2960_vm8 = vcmp.eq.s32.totalorder %v2698_v35, 1  ;;  %2892 = vperm.xlu1 %4592, %v2513_v8   ;;  %2844 = vperm.xlu0 %4591, %v2497_v56  }
 0x2a3   : > { %vm8513_vm7 = vmpackc.low %vm2961_vm10, %vm2961_vm10 }
 0x2a4   : > { %v3484_v25 = vadd.f32 %v3483_v51, %v3342_v52  ;;  %vm3088_vm12 = vmpackc.low %vm2960_vm8, %vm2960_vm8  ;;  %v3217_v24 = vsel %vm8513_vm7, %v1102_v59, 0  ;;  %v1112_v51 = vld [vmem:[%s5134_s17 + $0x11c] sm:$0xf]  ;;  %v1111_v52 = vld [vmem:[%s5134_s17 + $0x118] sm:$0xf] }
 0x2a5   : > { %v3216_v43 = vsel %vm3088_vm12, %v1101_v6, 0  ;;  %v2707_v14 = vpop.permute.xlu1 %2706  ;;  %v2704_v3 = vpop.permute.xlu0 %2703  ;;  %v3345_v30 = vunpack.c.l.bf16 %v3217_v24 }
 0x2a6   : > { %v3485_v33 = vadd.f32 %v3484_v25, %v3343_v45  ;;  %v3344_v27 = vunpack.c.l.bf16 %v3216_v43  ;;  %vm2963_vm6 = vcmp.eq.s32.totalorder %v2707_v14, 1  ;;  %vm2962_vm0 = vcmp.eq.s32.totalorder %v2704_v3, 1  ;;  %2895 = vperm.xlu1 %4592, %v2514_v13   ;;  %2847 = vperm.xlu0 %4591, %v2498_v50  }
 0x2a7   : > { %vm8530_vm4 = vmpackc.low %vm2963_vm6, %vm2963_vm6 }
 0x2a8   : > { %v3486_v41 = vadd.f32 %v3485_v33, %v3344_v27  ;;  %vm3090_vm15 = vmpackc.low %vm2962_vm0, %vm2962_vm0  ;;  %v3219_v39 = vsel %vm8530_vm4, %v1104_v40, 0  ;;  %v1114_v33 = vld [vmem:[%s5134_s17 + $0x124] sm:$0xf]  ;;  %v1113_v27 = vld [vmem:[%s5134_s17 + $0x120] sm:$0xf] }
 0x2a9   : > { %v3218_v55 = vsel %vm3090_vm15, %v1103_v17, 0  ;;  %v2713_v46 = vpop.permute.xlu1 %2712  ;;  %v2710_v19 = vpop.permute.xlu0 %2709  ;;  %v3347_v58 = vunpack.c.l.bf16 %v3219_v39 }
 0x2aa   : > { %v3487_v2 = vadd.f32 %v3486_v41, %v3345_v30  ;;  %v3346_v1 = vunpack.c.l.bf16 %v3218_v55  ;;  %vm2965_vm3 = vcmp.eq.s32.totalorder %v2713_v46, 1  ;;  %vm2964_vm2 = vcmp.eq.s32.totalorder %v2710_v19, 1  ;;  %2898 = vperm.xlu1 %4592, %v2515_v34   ;;  %2850 = vperm.xlu0 %4591, %v2499_v9   ;;  %v1116_v46 = vld [vmem:[%s5134_s17 + $0x12c] sm:$0xf]  ;;  %v1115_v19 = vld [vmem:[%s5134_s17 + $0x128] sm:$0xf] }
 0x2ab   : > { %vm3093_vm10 = vmpackc.low %vm2965_vm3, %vm2965_vm3 }
 0x2ac   : > { %v3488_v53 = vadd.f32 %v3487_v2, %v3346_v1  ;;  %v3221_v42 = vsel %vm3093_vm10, %v1106_v62, 0  ;;  %vm3092_vm8 = vmpackc.low %vm2964_vm2, %vm2964_vm2 }
 0x2ad   : > { %v3349_v4 = vunpack.c.l.bf16 %v3221_v42  ;;  %v3220_v5 = vsel %vm3092_vm8, %v1105_v49, 0  ;;  %v2719_v32 = vpop.permute.xlu1 %2718  ;;  %v2716_v38 = vpop.permute.xlu0 %2715 }
 0x2ae   : > { %v3489_v48 = vadd.f32 %v3488_v53, %v3347_v58  ;;  %v3348_v16 = vunpack.c.l.bf16 %v3220_v5  ;;  %vm2967_vm7 = vcmp.eq.s32.totalorder %v2719_v32, 1  ;;  %vm2966_vm12 = vcmp.eq.s32.totalorder %v2716_v38, 1  ;;  %v1118_v32 = vld [vmem:[%s5134_s17 + $0x134] sm:$0xf]  ;;  %v1117_v38 = vld [vmem:[%s5134_s17 + $0x130] sm:$0xf] }
 0x2af   : > { %vm8545_vm9 = vmpackc.low %vm2967_vm7, %vm2967_vm7 }
 0x2b0   : > { %v3490_v22 = vrot.slane %v3489_v48, 4  ;;  %v3496_v60 = vadd.f32 %v3349_v4, %v3348_v16  ;;  %vm3094_vm13 = vmpackc.low %vm2966_vm12, %vm2966_vm12  ;;  %v3223_v44 = vsel %vm8545_vm9, %v1108_v61, 0 }
 0x2b1   : > { %v3222_v29 = vsel %vm3094_vm13, %v1107_v26, 0  ;;  %v2725_v20 = vpop.permute.xlu1 %2724  ;;  %v2722_v7 = vpop.permute.xlu0 %2721  ;;  %v3351_v37 = vunpack.c.l.bf16 %v3223_v44 }
 0x2b2   : > { %v3491_v23 = vadd.f32 %v3490_v22, %v3489_v48  ;;  %v3350_v63 = vunpack.c.l.bf16 %v3222_v29  ;;  %vm2969_vm6 = vcmp.eq.s32.totalorder %v2725_v20, 1  ;;  %vm2968_vm0 = vcmp.eq.s32.totalorder %v2722_v7, 1  ;;  %v1120_v20 = vld [vmem:[%s5134_s17 + $0x13c] sm:$0xf]  ;;  %v1119_v7 = vld [vmem:[%s5134_s17 + $0x138] sm:$0xf] }
 0x2b3   : > { %vm8553_vm4 = vmpackc.low %vm2969_vm6, %vm2969_vm6 }
 0x2b4   : > { %v3492_v31 = vrot.slane %v3491_v23, 2  ;;  %v3497_v8 = vadd.f32 %v3496_v60, %v3350_v63  ;;  %vm3096_vm15 = vmpackc.low %vm2968_vm0, %vm2968_vm0  ;;  %v3225_v56 = vsel %vm8553_vm4, %v1110_v18, 0 }
 0x2b5   : > { %v3224_v21 = vsel %vm3096_vm15, %v1109_v57, 0  ;;  %v2731_v15 = vpop.permute.xlu1 %2730  ;;  %v2728_v12 = vpop.permute.xlu0 %2727  ;;  %v3353_v10 = vunpack.c.l.bf16 %v3225_v56 }
 0x2b6   : > { %v3493_v28 = vadd.f32 %v3492_v31, %v3491_v23  ;;  %v3498_v0 = vadd.f32 %v3497_v8, %v3351_v37  ;;  %v3352_v35 = vunpack.c.l.bf16 %v3224_v21  ;;  %vm2971_vm3 = vcmp.eq.s32.totalorder %v2731_v15, 1 }
 0x2b7   : > { %vm8561_vm2 = vmpackc.low %vm2971_vm3, %vm2971_vm3  ;;  %vm2970_vm10 = vcmp.eq.s32.totalorder %v2728_v12, 1 }
 0x2b8   : > { %v3494_v6 = vrot.slane %v3493_v28, 1  ;;  %v3499_v13 = vadd.f32 %v3498_v0, %v3352_v35  ;;  %vm3098_vm8 = vmpackc.low %vm2970_vm10, %vm2970_vm10  ;;  %v3227_v50 = vsel %vm8561_vm2, %v1112_v51, 0 }
 0x2b9   : > { %v3226_v45 = vsel %vm3098_vm8, %v1111_v52, 0  ;;  %v2737_v25 = vpop.permute.xlu1 %2736  ;;  %v2734_v24 = vpop.permute.xlu0 %2733  ;;  %v3355_v11 = vunpack.c.l.bf16 %v3227_v50 }
 0x2ba   : > { %v3495_v43 = vadd.f32 %v3494_v6, %v3493_v28  ;;  %v3500_v14 = vadd.f32 %v3499_v13, %v3353_v10  ;;  %v3354_v3 = vunpack.c.l.bf16 %v3226_v45  ;;  %vm2973_vm7 = vcmp.eq.s32.totalorder %v2737_v25, 1  ;;  %v1122_v25 = vld [vmem:[%s5134_s17 + $0x144] sm:$0xf] }
 0x2bb   : > { %vm8569_vm12 = vmpackc.low %vm2973_vm7, %vm2973_vm7  ;;  %vm2972_vm9 = vcmp.eq.s32.totalorder %v2734_v24, 1  ;;  %v1121_v24 = vld [vmem:[%s5134_s17 + $0x140] sm:$0xf] }
 0x2bc   : > { %v8575_v17 = vsel %vm2374_vm11, %v3495_v43, %v8488_v47  ;;  %v3501_v34 = vadd.f32 %v3500_v14, %v3354_v3  ;;  %vm3100_vm13 = vmpackc.low %vm2972_vm9, %vm2972_vm9  ;;  %v3229_v9 = vsel %vm8569_vm12, %v1114_v33, 0  ;;  %v1123_v33 = vld [vmem:[%s5134_s17 + $0x148] sm:$0xf] }
 0x2bd   : > { %v3228_v30 = vsel %vm3100_vm13, %v1113_v27, 0  ;;  %v2743_v41 = vpop.permute.xlu1 %2742  ;;  %v2740_v39 = vpop.permute.xlu0 %2739  ;;  %v3357_v2 = vunpack.c.l.bf16 %v3229_v9 }
 0x2be   : > { %v3502_v55 = vadd.f32 %v3501_v34, %v3355_v11  ;;  %v3356_v62 = vunpack.c.l.bf16 %v3228_v30  ;;  %vm2975_vm6 = vcmp.eq.s32.totalorder %v2743_v41, 1  ;;  %vm2974_vm0 = vcmp.eq.s32.totalorder %v2740_v39, 1 }
 0x2bf   : > { %vm8581_vm4 = vmpackc.low %vm2975_vm6, %vm2975_vm6 }
 0x2c0   : > { %v3503_v1 = vadd.f32 %v3502_v55, %v3356_v62  ;;  %vm3102_vm11 = vmpackc.low %vm2974_vm0, %vm2974_vm0  ;;  %v3231_v49 = vsel %vm8581_vm4, %v1116_v46, 0  ;;  %v1124_v55 = vld [vmem:[%s5134_s17 + $0x14c] sm:$0xf] }
 0x2c1   : > { %v3230_v58 = vsel %vm3102_vm11, %v1115_v19, 0  ;;  %v2749_v53 = vpop.permute.xlu1 %2748  ;;  %v2746_v42 = vpop.permute.xlu0 %2745  ;;  %v3359_v16 = vunpack.c.l.bf16 %v3231_v49 }
 0x2c2   : > { %v3504_v4 = vadd.f32 %v3503_v1, %v3357_v2  ;;  %v3358_v5 = vunpack.c.l.bf16 %v3230_v58  ;;  %vm2977_vm15 = vcmp.eq.s32.totalorder %v2749_v53, 1  ;;  %vm2976_vm3 = vcmp.eq.s32.totalorder %v2746_v42, 1  ;;  %v1125_v2 = vld [vmem:[%s5134_s17 + $0x150] sm:$0xf] }
 0x2c3   : > { %vm8589_vm2 = vmpackc.low %vm2977_vm15, %vm2977_vm15 }
 0x2c4   : > { %v3505_v61 = vadd.f32 %v3504_v4, %v3358_v5  ;;  %vm3104_vm10 = vmpackc.low %vm2976_vm3, %vm2976_vm3  ;;  %v3233_v26 = vsel %vm8589_vm2, %v1118_v32, 0  ;;  %v1126_v4 = vld [vmem:[%s5134_s17 + $0x154] sm:$0xf] }
 0x2c5   : > { %v3232_v36 = vsel %vm3104_vm10, %v1117_v38, 0  ;;  %v2755_v22 = vpop.permute.xlu1 %2754  ;;  %v2752_v60 = vpop.permute.xlu0 %2751  ;;  %v3361_v23 = vunpack.c.l.bf16 %v3233_v26 }
 0x2c6   : > { %v3506_v44 = vadd.f32 %v3505_v61, %v3359_v16  ;;  %v3360_v29 = vunpack.c.l.bf16 %v3232_v36  ;;  %vm2979_vm8 = vcmp.eq.s32.totalorder %v2755_v22, 1  ;;  %vm2978_vm7 = vcmp.eq.s32.totalorder %v2752_v60, 1  ;;  %v1127_v16 = vld [vmem:[%s5134_s17 + $0x158] sm:$0xf] }
 0x2c7   : > { %vm3107_vm12 = vmpackc.low %vm2979_vm8, %vm2979_vm8 }
 0x2c8   : > { %v3507_v63 = vadd.f32 %v3506_v44, %v3360_v29  ;;  %vm3106_vm9 = vmpackc.low %vm2978_vm7, %vm2978_vm7  ;;  %v3235_v18 = vsel %vm3107_vm12, %v1120_v20, 0  ;;  %v1128_v29 = vld [vmem:[%s5134_s17 + $0x15c] sm:$0xf] }
 0x2c9   : > { %v3234_v57 = vsel %vm3106_vm9, %v1119_v7, 0  ;;  %v2761_v54 = vpop.permute.xlu1 %2760  ;;  %v2758_v31 = vpop.permute.xlu0 %2757  ;;  %v3363_v56 = vunpack.c.l.bf16 %v3235_v18  ;;  %v1129_v18 = vld [vmem:[%s5134_s17 + $0x160] sm:$0xf] }
 0x2ca   : > { %v3508_v37 = vadd.f32 %v3507_v63, %v3361_v23  ;;  %v3362_v8 = vunpack.c.l.bf16 %v3234_v57  ;;  %vm2981_vm13 = vcmp.eq.s32.totalorder %v2761_v54, 1  ;;  %vm2980_vm6 = vcmp.eq.s32.totalorder %v2758_v31, 1 }
 0x2cb   : > { %vm8597_vm0 = vmpackc.low %vm2981_vm13, %vm2981_vm13 }
 0x2cc   : > { %v3509_v21 = vadd.f32 %v3508_v37, %v3362_v8  ;;  %vm3108_vm11 = vmpackc.low %vm2980_vm6, %vm2980_vm6  ;;  %v3237_v27 = vsel %vm8597_vm0, %v1122_v25, 0 }
 0x2cd   : > { %v2767_v15 = vpop.permute.xlu1 %2766  ;;  %v2764_v12 = vpop.permute.xlu0 %2763  ;;  %v3236_v40 = vsel %vm3108_vm11, %v1121_v24, 0  ;;  %v3365_v41 = vunpack.c.l.bf16 %v3237_v27 }
 0x2ce   : > { %v3510_v28 = vadd.f32 %v3509_v21, %v3363_v56  ;;  %vm2982_vm4 = vcmp.eq.s32.totalorder %v2764_v12, 1  ;;  %vm2983_vm3 = vcmp.eq.s32.totalorder %v2767_v15, 1  ;;  %v3364_v39 = vunpack.c.l.bf16 %v3236_v40  ;;  %v1130_v21 = vld [vmem:[%s5134_s17 + $0x164] sm:$0xf] }
 0x2cf   : > { %vm3110_vm15 = vmpackc.low %vm2982_vm4, %vm2982_vm4 }
 0x2d0   : > { %v3511_v0 = vrot.slane %v3510_v28, 4  ;;  %v3238_v34 = vsel %vm3110_vm15, %v1123_v33, 0  ;;  %vm3111_vm10 = vmpackc.low %vm2983_vm3, %vm2983_vm3  ;;  %v3517_v47 = vadd.f32 %v3365_v41, %v3364_v39  ;;  %v1132_v33 = vld [vmem:[%s5134_s17 + $0x16c] sm:$0xf] }
 0x2d1   : > { %v2773_v35 = vpop.permute.xlu1 %2772  ;;  %v2770_v51 = vpop.permute.xlu0 %2769  ;;  %v3366_v62 = vunpack.c.l.bf16 %v3238_v34 }
 0x2d2   : > { %v3512_v52 = vadd.f32 %v3511_v0, %v3510_v28  ;;  %vm2984_vm2 = vcmp.eq.s32.totalorder %v2770_v51, 1  ;;  %vm2985_vm8 = vcmp.eq.s32.totalorder %v2773_v35, 1  ;;  %v1131_v51 = vld [vmem:[%s5134_s17 + $0x168] sm:$0xf] }
 0x2d3   : > { %v3518_v1 = vadd.f32 %v3517_v47, %v3366_v62  ;;  %vm3113_vm12 = vmpackc.low %vm2985_vm8, %vm2985_vm8  ;;  %v1137_v62 = vld [vmem:[%s5134_s17 + $0x180] sm:$0xf] }
 0x2d4   : > { %v3513_v59 = vrot.slane %v3512_v52, 2  ;;  %v3241_v61 = vsel %vm3113_vm12, %v1126_v4, 0 }
 0x2d5   : > { %v2779_v6 = vpop.permute.xlu1 %2778  ;;  %v2776_v10 = vpop.permute.xlu0 %2775  ;;  %v3369_v44 = vunpack.c.l.bf16 %v3241_v61 }
 0x2d6   : > { %v3514_v13 = vadd.f32 %v3513_v59, %v3512_v52  ;;  %vm2986_vm7 = vcmp.eq.s32.totalorder %v2776_v10, 1  ;;  %vm2987_vm13 = vcmp.eq.s32.totalorder %v2779_v6, 1  ;;  %v1141_v10 = vld [vmem:[%s5134_s17 + $0x190] sm:$0xf] }
 0x2d7   : > { %vm3114_vm9 = vmpackc.low %vm2986_vm7, %vm2986_vm7 }
 0x2d8   : > { %v3515_v45 = vrot.slane %v3514_v13, 1  ;;  %v3242_v36 = vsel %vm3114_vm9, %v1127_v16, 0  ;;  %vm3115_vm0 = vmpackc.low %vm2987_vm13, %vm2987_vm13 }
 0x2d9   : > { %v8603_v43 = vpop.permute.xlu1 %2784  ;;  %v2782_v14 = vpop.permute.xlu0 %2781  ;;  %v3370_v7 = vunpack.c.l.bf16 %v3242_v36  ;;  %v3243_v57 = vsel %vm3115_vm0, %v1128_v29, 0 }
 0x2da   : > { %v3516_v3 = vadd.f32 %v3515_v45, %v3514_v13  ;;  %vm2988_vm6 = vcmp.eq.s32.totalorder %v2782_v14, 1  ;;  %vm2989_vm11 = vcmp.eq.s32.totalorder %v8603_v43, 1  ;;  %v3371_v56 = vunpack.c.l.bf16 %v3243_v57  ;;  %v1154_v43 = vld [vmem:[%s5134_s17 + $0x1c4] sm:$0xf]  ;;  %v1153_v14 = vld [vmem:[%s5134_s17 + $0x1c0] sm:$0xf] }
 0x2db   : > { %vm3116_vm4 = vmpackc.low %vm2988_vm6, %vm2988_vm6 }
 0x2dc   : > { %v8610_v11 = vsel %vm2376_vm14, %v3516_v3, %v8575_v17  ;;  %vm3112_vm14 = vmpackc.low %vm2984_vm2, %vm2984_vm2  ;;  %v3239_v17 = vsel %vm3111_vm10, %v1124_v55, 0  ;;  %v3244_v31 = vsel %vm3116_vm4, %v1129_v18, 0 }
 0x2dd   : > { %v8612_v9 = vpop.permute.xlu1 %2790  ;;  %v2788_v30 = vpop.permute.xlu0 %2787  ;;  %v3240_v49 = vsel %vm3112_vm14, %v1125_v2, 0  ;;  %v3367_v42 = vunpack.c.l.bf16 %v3239_v17  ;;  %vm8638_vm3 = vmpackc.low %vm2989_vm11, %vm2989_vm11  ;;  %v3372_v28 = vunpack.c.l.bf16 %v3244_v31 }
 0x2de   : > { %v3368_v32 = vunpack.c.l.bf16 %v3240_v49  ;;  %vm2990_vm15 = vcmp.eq.s32.totalorder %v2788_v30, 1  ;;  %vm2991_vm2 = vcmp.eq.s32.totalorder %v8612_v9, 1  ;;  %v3245_v59 = vsel %vm8638_vm3, %v1130_v21, 0  ;;  %v1138_v9 = vld [vmem:[%s5134_s17 + $0x184] sm:$0xf] }
 0x2df   : > { %v3519_v5 = vadd.f32 %v3518_v1, %v3367_v42  ;;  %vm8648_vm10 = vmpackc.low %vm2990_vm15, %vm2990_vm15  ;;  %v3373_v25 = vunpack.c.l.bf16 %v3245_v59  ;;  %v1155_v30 = vld [vmem:[%s5134_s17 + $0x1c8] sm:$0xf]  ;;  %v1133_v1 = vld [vmem:[%s5134_s17 + $0x170] sm:$0xf] }
 0x2e0   : > { %vm8654_vm7 = vmpackc.low %vm2991_vm2, %vm2991_vm2  ;;  %v3246_v13 = vsel %vm8648_vm10, %v1131_v51, 0  ;;  %v1139_v42 = vld [vmem:[%s5134_s17 + $0x188] sm:$0xf]  ;;  %v1157_v21 = vld [vmem:[%s5134_s17 + $0x1d0] sm:$0xf] }
 0x2e1   : > { %v8615_v46 = vpop.permute.xlu1 %2796  ;;  %v8617_v19 = vpop.permute.xlu0 %2793  ;;  %v3520_v26 = vadd.f32 %v3519_v5, %v3368_v32  ;;  %v3374_v40 = vunpack.c.l.bf16 %v3246_v13  ;;  %v3247_v17 = vsel %vm8654_vm7, %v1132_v33, 0  ;;  %v1134_v32 = vld [vmem:[%s5134_s17 + $0x174] sm:$0xf]  ;;  %v1135_v51 = vld [vmem:[%s5134_s17 + $0x178] sm:$0xf] }
 0x2e2   : > { %vm2992_vm4 = vcmp.eq.s32.totalorder %v8617_v19, 1  ;;  %vm2993_vm2 = vcmp.eq.s32.totalorder %v8615_v46, 1 }
 0x2e3   : > { %v3521_v20 = vadd.f32 %v3520_v26, %v3369_v44  ;;  %vm8725_vm7 = vmpackc.low %vm2993_vm2, %vm2993_vm2  ;;  %v3375_v44 = vunpack.c.l.bf16 %v3247_v17  ;;  %v1143_v17 = vld [vmem:[%s5134_s17 + $0x198] sm:$0xf] }
 0x2e4   : > { %v3249_v18 = vsel %vm8725_vm7, %v1134_v32, 0  ;;  %v1144_v32 = vld [vmem:[%s5134_s17 + $0x19c] sm:$0xf] }
 0x2e5   : > { %v8620_v58 = vpop.permute.xlu1 %2802  ;;  %v8622_v53 = vpop.permute.xlu0 %2799  ;;  %v3522_v54 = vadd.f32 %v3521_v20, %v3370_v7  ;;  %v1156_v7 = vld [vmem:[%s5134_s17 + $0x1cc] sm:$0xf]  ;;  %v3377_v13 = vunpack.c.l.bf16 %v3249_v18 }
 0x2e7   : > { %v3523_v12 = vadd.f32 %v3522_v54, %v3371_v56 }
 0x2e9   : > { %v2809_v38 = vpop.permute.xlu1 %2808  ;;  %v8625_v48 = vpop.permute.xlu0 %2805  ;;  %v3524_v6 = vadd.f32 %v3523_v12, %v3372_v28 }
 0x2ea   : > { %vm2997_vm12 = vcmp.eq.s32.totalorder %v2809_v38, 1  ;;  %vm2996_vm6 = vcmp.eq.s32.totalorder %v8625_v48, 1 }
 0x2eb   : > { %v3525_v27 = vadd.f32 %v3524_v6, %v3373_v25  ;;  %vm8677_vm11 = vmpackc.low %vm2997_vm12, %vm2997_vm12 }
 0x2ec   : > { %vm8697_vm10 = vmpackc.low %vm2996_vm6, %vm2996_vm6  ;;  %v3253_v48 = vsel %vm8677_vm11, %v1138_v9, 0  ;;  %vm2995_vm6 = vcmp.eq.s32.totalorder %v8620_v58, 1  ;;  %v1140_v58 = vld [vmem:[%s5134_s17 + $0x18c] sm:$0xf] }
 0x2ed   : > { %v8628_v22 = vpop.permute.xlu1 %2814  ;;  %v8630_v60 = vpop.permute.xlu0 %2811  ;;  %v3526_v49 = vadd.f32 %v3525_v27, %v3374_v40  ;;  %v3252_v16 = vsel %vm8697_vm10, %v1137_v62, 0  ;;  %v3381_v54 = vunpack.c.l.bf16 %v3253_v48  ;;  %vm8772_vm10 = vmpackc.low %vm2995_vm6, %vm2995_vm6  ;;  %v1142_v27 = vld [vmem:[%s5134_s17 + $0x194] sm:$0xf]  ;;  %v1159_v62 = vld [vmem:[%s5134_s17 + $0x1d8] sm:$0xf] }
 0x2ee   : > { %vm2998_vm15 = vcmp.eq.s32.totalorder %v8630_v60, 1  ;;  %v3380_v31 = vunpack.c.l.bf16 %v3252_v16 }
 0x2ef   : > { %vm8717_vm12 = vmpackc.low %vm2998_vm15, %vm2998_vm15 }
 0x2f0   : > { %v3254_v20 = vsel %vm8717_vm12, %v1139_v42, 0  ;;  %v3538_v25 = vadd.f32 %v3381_v54, %v3380_v31 }
 0x2f1   : > { %v2857_v23 = vpop.permute.xlu1 %2856  ;;  %v2854_v63 = vpop.permute.xlu0 %2853  ;;  %v3382_v52 = vunpack.c.l.bf16 %v3254_v20 }
 0x2f2   : > { %vm3013_vm14 = vcmp.eq.s32.totalorder %v2857_v23, 1  ;;  %vm3012_vm8 = vcmp.eq.s32.totalorder %v2854_v63, 1  ;;  %v1161_v23 = vld [vmem:[%s5134_s17 + $0x1e0] sm:$0xf] }
 0x2f3   : > { %vm8664_vm9 = vmpackc.low %vm3013_vm14, %vm3013_vm14 }
 0x2f4   : > { %vm8671_vm0 = vmpackc.low %vm3012_vm8, %vm3012_vm8  ;;  %v3269_v47 = vsel %vm8664_vm9, %v1154_v43, 0  ;;  %vm2994_vm8 = vcmp.eq.s32.totalorder %v8622_v53, 1  ;;  %v1158_v43 = vld [vmem:[%s5134_s17 + $0x1d4] sm:$0xf]  ;;  %v1167_v53 = vld [vmem:[%s5134_s17 + $0x1f8] sm:$0xf] }
 0x2f5   : > { %v8635_v37 = vpop.permute.xlu1 %2862  ;;  %v2860_v8 = vpop.permute.xlu0 %2859  ;;  %v3268_v2 = vsel %vm8671_vm0, %v1153_v14, 0  ;;  %vm8708_vm14 = vmpackc.low %vm2992_vm4, %vm2992_vm4  ;;  %v3397_v61 = vunpack.c.l.bf16 %v3269_v47  ;;  %vm2999_vm0 = vcmp.eq.s32.totalorder %v8628_v22, 1  ;;  %v1163_v22 = vld [vmem:[%s5134_s17 + $0x1e8] sm:$0xf] }
 0x2f6   : > { %vm3014_vm13 = vcmp.eq.s32.totalorder %v2860_v8, 1  ;;  %vm3015_vm9 = vcmp.eq.s32.totalorder %v8635_v37, 1  ;;  %v3396_v26 = vunpack.c.l.bf16 %v3268_v2  ;;  %v3248_v29 = vsel %vm8708_vm14, %v1133_v1, 0  ;;  %vm8755_vm11 = vmpackc.low %vm2994_vm8, %vm2994_vm8  ;;  %v1147_v14 = vld [vmem:[%s5134_s17 + $0x1a8] sm:$0xf] }
 0x2f7   : > { %vm8684_vm3 = vmpackc.low %vm3014_vm13, %vm3014_vm13  ;;  %v3527_v37 = vadd.f32 %v3526_v49, %v3375_v44  ;;  %v3376_v8 = vunpack.c.l.bf16 %v3248_v29  ;;  %v3250_v3 = vsel %vm8755_vm11, %v1135_v51, 0 }
 0x2f8   : > { %v3270_v5 = vsel %vm8684_vm3, %v1155_v30, 0  ;;  %vm8746_vm4 = vmpackc.low %vm3015_vm9, %vm3015_vm9  ;;  %v3559_v56 = vadd.f32 %v3397_v61, %v3396_v26  ;;  %v3539_v30 = vadd.f32 %v3538_v25, %v3382_v52  ;;  %v1136_v61 = vld [vmem:[%s5134_s17 + $0x17c] sm:$0xf]  ;;  %v3378_v26 = vunpack.c.l.bf16 %v3250_v3  ;;  %v1146_v52 = vld [vmem:[%s5134_s17 + $0x1a4] sm:$0xf] }
 0x2f9   : > { %v8642_v0 = vpop.permute.xlu1 %2865  ;;  %v8644_v35 = vpop.permute.xlu0 %2817  ;;  %v3398_v63 = vunpack.c.l.bf16 %v3270_v5  ;;  %vm8780_vm14 = vmpackc.low %vm2999_vm0, %vm2999_vm0  ;;  %v3271_v59 = vsel %vm8746_vm4, %v1156_v7, 0  ;;  %v1160_v5 = vld [vmem:[%s5134_s17 + $0x1dc] sm:$0xf] }
 0x2fa   : > { %vm3016_vm13 = vcmp.eq.s32.totalorder %v8642_v0, 1  ;;  %vm3000_vm15 = vcmp.eq.s32.totalorder %v8644_v35, 1  ;;  %v3528_v35 = vadd.f32 %v3527_v37, %v3376_v8  ;;  %v3399_v33 = vunpack.c.l.bf16 %v3271_v59 }
 0x2fb   : > { %vm8764_vm3 = vmpackc.low %vm3016_vm13, %vm3016_vm13  ;;  %v3560_v6 = vadd.f32 %v3559_v56, %v3398_v63  ;;  %v3255_v9 = vsel %vm8780_vm14, %v1140_v58, 0  ;;  %v1145_v63 = vld [vmem:[%s5134_s17 + $0x1a0] sm:$0xf]  ;;  %v3251_v37 = vsel %vm8772_vm10, %v1136_v61, 0  ;;  %v1166_v61 = vld [vmem:[%s5134_s17 + $0x1f4] sm:$0xf] }
 0x2fc   : > { %vm8792_vm12 = vmpackc.low %vm3000_vm15, %vm3000_vm15  ;;  %v3272_v24 = vsel %vm8764_vm3, %v1157_v21, 0  ;;  %v3529_v49 = vadd.f32 %v3528_v35, %v3377_v13  ;;  %v3383_v42 = vunpack.c.l.bf16 %v3255_v9  ;;  %v1162_v21 = vld [vmem:[%s5134_s17 + $0x1e4] sm:$0xf] }
 0x2fd   : > { %v8660_v50 = vpop.permute.xlu1 %2868  ;;  %v8662_v45 = vpop.permute.xlu0 %2820  ;;  %v3256_v41 = vsel %vm8792_vm12, %v1141_v10, 0  ;;  %v3400_v19 = vunpack.c.l.bf16 %v3272_v24  ;;  %v3561_v47 = vadd.f32 %v3560_v6, %v3399_v33 }
 0x2fe   : > { %vm3017_vm2 = vcmp.eq.s32.totalorder %v8660_v50, 1  ;;  %vm3001_vm8 = vcmp.eq.s32.totalorder %v8662_v45, 1  ;;  %v3384_v4 = vunpack.c.l.bf16 %v3256_v41  ;;  %v3540_v20 = vadd.f32 %v3539_v30, %v3383_v42  ;;  %v1148_v45 = vld [vmem:[%s5134_s17 + $0x1ac] sm:$0xf] }
 0x2ff   : > { %vm8803_vm7 = vmpackc.low %vm3017_vm2, %vm3017_vm2  ;;  %v3530_v25 = vadd.f32 %v3529_v49, %v3378_v26  ;;  %v3379_v41 = vunpack.c.l.bf16 %v3251_v37 }
 0x300   : > { %vm8814_vm6 = vmpackc.low %vm3001_vm8, %vm3001_vm8  ;;  %v3273_v2 = vsel %vm8803_vm7, %v1158_v43, 0  ;;  %v3541_v8 = vadd.f32 %v3540_v20, %v3384_v4 }
 0x301   : > { %v8688_v39 = vpop.permute.xlu1 %2871  ;;  %v8690_v55 = vpop.permute.xlu0 %2823  ;;  %v3257_v1 = vsel %vm8814_vm6, %v1142_v27, 0  ;;  %v3531_v49 = vadd.f32 %v3530_v25, %v3379_v41 }
 0x302   : > { %vm3018_vm9 = vcmp.eq.s32.totalorder %v8688_v39, 1  ;;  %vm3002_vm13 = vcmp.eq.s32.totalorder %v8690_v55, 1  ;;  %v3385_v7 = vunpack.c.l.bf16 %v3257_v1  ;;  %v1165_v1 = vld [vmem:[%s5134_s17 + $0x1f0] sm:$0xf] }
 0x303   : > { %vm8826_vm4 = vmpackc.low %vm3018_vm9, %vm3018_vm9  ;;  %v3532_v37 = vrot.slane %v3531_v49, 4 }
 0x304   : > { %vm8837_vm15 = vmpackc.low %vm3002_vm13, %vm3002_vm13  ;;  %v3274_v55 = vsel %vm8826_vm4, %v1159_v62, 0  ;;  %v3542_v58 = vadd.f32 %v3541_v8, %v3385_v7 }
 0x305   : > { %v2875_v36 = vpop.permute.xlu1 %2874  ;;  %v8733_v60 = vpop.permute.xlu0 %2826  ;;  %v3258_v44 = vsel %vm8837_vm15, %v1143_v17, 0  ;;  %v3402_v57 = vunpack.c.l.bf16 %v3274_v55  ;;  %v1149_v55 = vld [vmem:[%s5134_s17 + $0x1b0] sm:$0xf] }
 0x306   : > { %vm3019_vm0 = vcmp.eq.s32.totalorder %v2875_v36, 1  ;;  %vm3003_vm11 = vcmp.eq.s32.totalorder %v8733_v60, 1  ;;  %v3401_v36 = vunpack.c.l.bf16 %v3273_v2  ;;  %v3562_v60 = vadd.f32 %v3561_v47, %v3400_v19 }
 0x307   : > { %vm8845_vm2 = vmpackc.low %vm3019_vm0, %vm3019_vm0  ;;  %v3386_v56 = vunpack.c.l.bf16 %v3258_v44 }
 0x308   : > { %vm8856_vm8 = vmpackc.low %vm3003_vm11, %vm3003_vm11  ;;  %v3275_v54 = vsel %vm8845_vm2, %v1160_v5, 0  ;;  %v3563_v51 = vadd.f32 %v3562_v60, %v3401_v36  ;;  %v1150_v60 = vld [vmem:[%s5134_s17 + $0x1b4] sm:$0xf] }
 0x309   : > { %v2878_v15 = vpop.permute.xlu1 %2877  ;;  %v2830_v12 = vpop.permute.xlu0 %2829  ;;  %v3259_v31 = vsel %vm8856_vm8, %v1144_v32, 0  ;;  %v3403_v6 = vunpack.c.l.bf16 %v3275_v54  ;;  %v3543_v3 = vadd.f32 %v3542_v58, %v3386_v56 }
 0x30a   : > { %vm3020_vm3 = vcmp.eq.s32.totalorder %v2878_v15, 1  ;;  %vm3004_vm14 = vcmp.eq.s32.totalorder %v2830_v12, 1  ;;  %v3387_v10 = vunpack.c.l.bf16 %v3259_v31  ;;  %v3564_v24 = vadd.f32 %v3563_v51, %v3402_v57 }
 0x30b   : > { %vm8865_vm12 = vmpackc.low %vm3020_vm3, %vm3020_vm3 }
 0x30c   : > { %vm8873_vm7 = vmpackc.low %vm3004_vm14, %vm3004_vm14  ;;  %v3276_v0 = vsel %vm8865_vm12, %v1161_v23, 0  ;;  %v3565_v47 = vadd.f32 %v3564_v24, %v3403_v6  ;;  %v3544_v2 = vadd.f32 %v3543_v3, %v3387_v10 }
 0x30d   : > { %v2881_v50 = vpop.permute.xlu1 %2880  ;;  %v2833_v34 = vpop.permute.xlu0 %2832  ;;  %v3260_v28 = vsel %vm8873_vm7, %v1145_v63, 0  ;;  %v3404_v33 = vunpack.c.l.bf16 %v3276_v0 }
 0x30e   : > { %vm3021_vm9 = vcmp.eq.s32.totalorder %v2881_v50, 1  ;;  %vm3005_vm13 = vcmp.eq.s32.totalorder %v2833_v34, 1  ;;  %v3388_v27 = vunpack.c.l.bf16 %v3260_v28  ;;  %v1164_v50 = vld [vmem:[%s5134_s17 + $0x1ec] sm:$0xf]  ;;  %v1151_v28 = vld [vmem:[%s5134_s17 + $0x1b8] sm:$0xf] }
 0x30f   : > { %vm8886_vm0 = vmpackc.low %vm3021_vm9, %vm3021_vm9  ;;  %v3566_v32 = vadd.f32 %v3565_v47, %v3404_v33 }
 0x310   : > { %vm8897_vm10 = vmpackc.low %vm3005_vm13, %vm3005_vm13  ;;  %v3277_v43 = vsel %vm8886_vm0, %v1162_v21, 0  ;;  %v3545_v38 = vadd.f32 %v3544_v2, %v3388_v27  ;;  %v1152_v27 = vld [vmem:[%s5134_s17 + $0x1bc] sm:$0xf] }
 0x311   : > { %v2884_v48 = vpop.permute.xlu1 %2883  ;;  %v2836_v16 = vpop.permute.xlu0 %2835  ;;  %v3261_v40 = vsel %vm8897_vm10, %v1146_v52, 0  ;;  %v3405_v17 = vunpack.c.l.bf16 %v3277_v43  ;;  %v1168_v43 = vld [vmem:[%s5134_s17 + $0x1fc] sm:$0xf] }
 0x312   : > { %vm3022_vm6 = vcmp.eq.s32.totalorder %v2884_v48, 1  ;;  %vm3006_vm4 = vcmp.eq.s32.totalorder %v2836_v16, 1  ;;  %v3389_v42 = vunpack.c.l.bf16 %v3261_v40 }
 0x313   : > { %vm8904_vm15 = vmpackc.low %vm3022_vm6, %vm3022_vm6  ;;  %v3567_v20 = vadd.f32 %v3566_v32, %v3405_v17 }
 0x314   : > { %vm8913_vm2 = vmpackc.low %vm3006_vm4, %vm3006_vm4  ;;  %v3278_v62 = vsel %vm8904_vm15, %v1163_v22, 0  ;;  %v3546_v18 = vadd.f32 %v3545_v38, %v3389_v42  ;;  %v3533_v22 = vadd.f32 %v3532_v37, %v3531_v49 }
 0x315   : > { %v2887_v15 = vpop.permute.xlu1 %2886  ;;  %v2839_v12 = vpop.permute.xlu0 %2838  ;;  %v3262_v39 = vsel %vm8913_vm2, %v1147_v14, 0  ;;  %v3406_v48 = vunpack.c.l.bf16 %v3278_v62 }
 0x316   : > { %vm3023_vm11 = vcmp.eq.s32.totalorder %v2887_v15, 1  ;;  %vm3007_vm3 = vcmp.eq.s32.totalorder %v2839_v12, 1  ;;  %v3390_v44 = vunpack.c.l.bf16 %v3262_v39 }
 0x317   : > { %vm8922_vm14 = vmpackc.low %vm3023_vm11, %vm3023_vm11  ;;  %v3568_v8 = vadd.f32 %v3567_v20, %v3406_v48 }
 0x318   : > { %vm8931_vm8 = vmpackc.low %vm3007_vm3, %vm3007_vm3  ;;  %v3279_v4 = vsel %vm8922_vm14, %v1164_v50, 0  ;;  %v3547_v51 = vadd.f32 %v3546_v18, %v3390_v44 }
 0x319   : > { %v2890_v9 = vpop.permute.xlu1 %2889  ;;  %v2842_v30 = vpop.permute.xlu0 %2841  ;;  %v3263_v16 = vsel %vm8931_vm8, %v1148_v45, 0  ;;  %v3407_v7 = vunpack.c.l.bf16 %v3279_v4 }
 0x31a   : > { %vm3024_vm12 = vcmp.eq.s32.totalorder %v2890_v9, 1  ;;  %vm3008_vm9 = vcmp.eq.s32.totalorder %v2842_v30, 1  ;;  %v3391_v57 = vunpack.c.l.bf16 %v3263_v16  ;;  %v3534_v9 = vrot.slane %v3533_v22, 2 }
 0x31b   : > { %vm8938_vm7 = vmpackc.low %vm3024_vm12, %vm3024_vm12  ;;  %v3569_v52 = vadd.f32 %v3568_v8, %v3407_v7 }
 0x31c   : > { %vm8945_vm13 = vmpackc.low %vm3008_vm9, %vm3008_vm9  ;;  %v3280_v29 = vsel %vm8938_vm7, %v1165_v1, 0  ;;  %v3548_v58 = vadd.f32 %v3547_v51, %v3391_v57  ;;  %v3535_v17 = vadd.f32 %v3534_v9, %v3533_v22  ;;  %vm9746_vm7 = vcmask 1047559  }
 0x31d   : > { %v2893_v26 = vpop.permute.xlu1 %2892  ;;  %v2845_v36 = vpop.permute.xlu0 %2844  ;;  %v3264_v23 = vsel %vm8945_vm13, %v1149_v55, 0  ;;  %v3408_v56 = vunpack.c.l.bf16 %v3280_v29 }
 0x31e   : > { %vm3025_vm6 = vcmp.eq.s32.totalorder %v2893_v26, 1  ;;  %vm3009_vm0 = vcmp.eq.s32.totalorder %v2845_v36, 1  ;;  %v3392_v0 = vunpack.c.l.bf16 %v3264_v23  ;;  %v3536_v42 = vrot.slane %v3535_v17, 1  ;;  %v2387_v36 = vld [vmem:[#allocation3] sm:$0xff] }
 0x31f   : > { %vm8957_vm4 = vmpackc.low %vm3025_vm6, %vm3025_vm6  ;;  %v3570_v13 = vadd.f32 %v3569_v52, %v3408_v56 }
 0x320   : > { %v3281_v54 = vsel %vm8957_vm4, %v1166_v61, 0  ;;  %vm8963_vm10 = vmpackc.low %vm3009_vm0, %vm3009_vm0  ;;  %v3549_v3 = vadd.f32 %v3548_v58, %v3392_v0  ;;  %v3537_v38 = vadd.f32 %v3536_v42, %v3535_v17 }
 0x321   : > { %v3265_v21 = vsel %vm8963_vm10, %v1150_v60, 0  ;;  %v2896_v15 = vpop.permute.xlu1 %2895  ;;  %v2848_v12 = vpop.permute.xlu0 %2847  ;;  %v3409_v59 = vunpack.c.l.bf16 %v3281_v54 }
 0x322   : > { %vm3026_vm11 = vcmp.eq.s32.totalorder %v2896_v15, 1  ;;  %vm3010_vm15 = vcmp.eq.s32.totalorder %v2848_v12, 1  ;;  %v3393_v6 = vunpack.c.l.bf16 %v3265_v21  ;;  %v3592_v44 = vsel %vm2378_vm1, %v3537_v38, %v8610_v11 }
 0x323   : > { %vm3154_vm3 = vmpackc.low %vm3026_vm11, %vm3026_vm11  ;;  %v3571_v40 = vadd.f32 %v3570_v13, %v3409_v59 }
 0x324   : > { %v3282_v10 = vsel %vm3154_vm3, %v1167_v53, 0  ;;  %vm3138_vm2 = vmpackc.low %vm3010_vm15, %vm3010_vm15  ;;  %v3550_v50 = vadd.f32 %v3549_v3, %v3393_v6 }
 0x325   : > { %v3410_v25 = vunpack.c.l.bf16 %v3282_v10  ;;  %v3266_v24 = vsel %vm3138_vm2, %v1151_v28, 0  ;;  %v2899_v14 = vpop.permute.xlu1 %2898  ;;  %v2851_v35 = vpop.permute.xlu0 %2850 }
 0x326   : > { %v3394_v33 = vunpack.c.l.bf16 %v3266_v24  ;;  %vm3027_vm14 = vcmp.eq.s32.totalorder %v2899_v14, 1  ;;  %vm3011_vm8 = vcmp.eq.s32.totalorder %v2851_v35, 1 }
 0x327   : > { %vm3155_vm12 = vmpackc.low %vm3027_vm14, %vm3027_vm14  ;;  %v3572_v30 = vadd.f32 %v3571_v40, %v3410_v25 }
 0x328   : > { %v3283_v34 = vsel %vm3155_vm12, %v1168_v43, 0  ;;  %vm3139_vm9 = vmpackc.low %vm3011_vm8, %vm3011_vm8  ;;  %v3551_v45 = vadd.f32 %v3550_v50, %v3394_v33 }
 0x329   : > { %v3411_v41 = vunpack.c.l.bf16 %v3283_v34  ;;  %v3267_v62 = vsel %vm3139_vm9, %v1152_v27, 0 }
 0x32a   : > { %v3395_v19 = vunpack.c.l.bf16 %v3267_v62 }
 0x32b   : > { %v3573_v47 = vadd.f32 %v3572_v30, %v3411_v41 }
 0x32c   : > { %v3552_v2 = vadd.f32 %v3551_v45, %v3395_v19 }
 0x32d   : > { %v3574_v39 = vrot.slane %v3573_v47, 4 }
 0x32e   : > { %v3553_v1 = vrot.slane %v3552_v2, 4 }
 0x32f   : > { %v3575_v46 = vadd.f32 %v3574_v39, %v3573_v47 }
 0x330   : > { %v3554_v49 = vadd.f32 %v3553_v1, %v3552_v2 }
 0x331   : > { %v3576_v4 = vrot.slane %v3575_v46, 2 }
 0x332   : > { %v3555_v55 = vrot.slane %v3554_v49, 2 }
 0x333   : > { %v3577_v5 = vadd.f32 %v3576_v4, %v3575_v46 }
 0x334   : > { %v3556_v32 = vadd.f32 %v3555_v55, %v3554_v49 }
 0x335   : > { %v3578_v48 = vrot.slane %v3577_v5, 1 }
 0x336   : > { %v3557_v16 = vrot.slane %v3556_v32, 1 }
 0x337   : > { %v3579_v61 = vadd.f32 %v3578_v48, %v3577_v5 }
 0x338   : > { %v3558_v26 = vadd.f32 %v3557_v16, %v3556_v32 }
 0x33a   : > { %v3593_v29 = vsel %vm2380_vm5, %v3558_v26, %v3592_v44  ;;  %3601 = sbr.rel (%p4258_p5) target bundleno = 1213 (0x4bd), region = 68 }
 0x33b   : > { %v3594_v60 = vsel %vm9746_vm7, %v3579_v61, %v3593_v29 }
 0x33c   : > { %v3596_v20 = vadd.f32 %v3594_v60, %v2387_v36 }
 0x33e   : > { %3597 = vst [vmem:[#allocation3] sm:$0xff] %v3596_v20 }
 0x33f   : > { %v3605_v7 = vld [vmem:[%s5163_s3] sm:$0xff]  ;;  %v4863_v63 = vmov 0   ;;  %v4864_v54 = vmov 0.0   ;;  %v4597_v11 = vld [vmem:[#allocation9 + $0x78] sm:$0xff]   ;;  %vm4865_vm1 = vmmov 0   ;;  %v4600_v53 = vld [vmem:[#allocation9 + $0x68] sm:$0xff]  }
 0x340   : > { %v3602_v23 = vld [vmem:[%s5158_s4] sm:$0xff]  ;;  %4596 = vset.pattern.permute.xlu0 %v4863_v63  ;;  %v3606_v18 = vcvt.s32.f32 %v3605_v7  ;;  %4333 = vmatprep.subr.bf16.mxu0 %v4864_v54  ;;  %v4599_v56 = vld [vmem:[#allocation9 + $0x38] sm:$0xff]   ;;  %v4603_v15 = vld [vmem:[#allocation9 + $0x28] sm:$0xff]  }
 0x341   : > { %v3603_v57 = vcvt.s32.f32 %v3602_v23  ;;  %4353 = vmatprep.subr.bf16.mxu1 %v4864_v54  ;;  %4334 = vmatpush3.bf16.msra.mxu0 %v4597_v11  ;;  %v4598_v8 = vld [vmem:[#allocation9 + $0x70] sm:$0xff]   ;;  %v4602_v12 = vld [vmem:[#allocation9 + $0x60] sm:$0xff]   ;;  %v4604_v0 = vld [vmem:[#allocation9 + $0x58] sm:$0xff]  }
 0x342   : > { %v3607_v31 = vmax.f32 %v3606_v18, 1.0  ;;  %4335 = vmatprep.subr.bf16.mxu0 %v4864_v54  ;;  %4354 = vmatpush3.bf16.msra.mxu1 %v4599_v56  ;;  %v4601_v21 = vld [vmem:[#allocation9 + $0x30] sm:$0xff]   ;;  %v4605_v51 = vld [vmem:[#allocation9 + $0x20] sm:$0xff]   ;;  %v4607_v52 = vld [vmem:[#allocation9 + $0x18] sm:$0xff]  }
 0x343   : > { %v3604_v37 = vmax.f32 %v3603_v57, 1.0  ;;  %4355 = vmatprep.subr.bf16.mxu1 %v4864_v54  ;;  %4349 = vmatprep.mubr.msk.bf16.mxu0 %vm4865_vm1, %v4864_v54  ;;  %v4606_v28 = vld [vmem:[#allocation9 + $0x50] sm:$0xff]   ;;  %v4608_v58 = vld [vmem:[#allocation9 + $0x48] sm:$0xff]   ;;  %v4610_v10 = vld [vmem:[#allocation9 + $0x40] sm:$0xff]  }
 0x344   : > { %3619 = vperm.xlu0 %4596, %v3607_v31   ;;  %4369 = vmatprep.mubr.msk.bf16.mxu1 %vm4865_vm1, %v4864_v54  ;;  %v4609_v59 = vld [vmem:[#allocation9 + $0x10] sm:$0xff]   ;;  %v4611_v6 = vld [vmem:[#allocation9 + $0x8] sm:$0xff]   ;;  %v4612_v22 = vld [vmem:[#allocation9] sm:$0xff]  }
 0x345   : > { %4336 = vmatpush3.bf16.msra.mxu0 %v4598_v8  ;;  %v3616_v24 = vld [vmem:[#allocation3] sm:$0xff]  ;;  %v3608_v3 = vld [vmem:[#allocation2] sm:$0xff]  ;;  %v4616_v30 = vld [vmem:[#allocation9 + $0xa8] sm:$0xff]  }
 0x346   : > { %4337 = vmatprep.subr.bf16.mxu0 %v4864_v54  ;;  %4356 = vmatpush3.bf16.msra.mxu1 %v4601_v21  ;;  %v4613_v35 = vld [vmem:[#allocation9 + $0xb8] sm:$0xff]   ;;  %v4614_v50 = vld [vmem:[#allocation9 + $0xb0] sm:$0xff]   ;;  %v4618_v62 = vld [vmem:[#allocation9 + $0xa0] sm:$0xff]  }
 0x347   : > { %4357 = vmatprep.subr.bf16.mxu1 %v4864_v54  ;;  %v4615_v34 = vld [vmem:[#allocation9 + $0xf8] sm:$0xff]   ;;  %v4617_v41 = vld [vmem:[#allocation9 + $0xf0] sm:$0xff]   ;;  %v4619_v45 = vld [vmem:[#allocation9 + $0xe8] sm:$0xff]  }
 0x348   : > { %3611 = vperm.xlu0 %4596, %v3604_v37   ;;  %v4620_v19 = vld [vmem:[#allocation9 + $0x98] sm:$0xff]   ;;  %v4621_v47 = vld [vmem:[#allocation9 + $0xe0] sm:$0xff]   ;;  %v4622_v2 = vld [vmem:[#allocation9 + $0x90] sm:$0xff]  }
 0x349   : > { %4338 = vmatpush3.bf16.msra.mxu0 %v4600_v53  ;;  %v4623_v17 = vld [vmem:[#allocation9 + $0xd8] sm:$0xff]   ;;  %v4624_v39 = vld [vmem:[#allocation9 + $0x88] sm:$0xff]   ;;  %v4625_v1 = vld [vmem:[#allocation9 + $0xd0] sm:$0xff]  }
 0x34a   : > { %4339 = vmatprep.subr.bf16.mxu0 %v4864_v54  ;;  %4358 = vmatpush3.bf16.msra.mxu1 %v4603_v15  ;;  %v4626_v49 = vld [vmem:[#allocation9 + $0x80] sm:$0xff]   ;;  %v4627_v42 = vld [vmem:[#allocation9 + $0xc8] sm:$0xff]  }
 0x34b   : > { %4359 = vmatprep.subr.bf16.mxu1 %v4864_v54  ;;  %v4628_v55 = vld [vmem:[#allocation9 + $0xc0] sm:$0xff]  }
 0x34d   : > { %4340 = vmatpush3.bf16.msra.mxu0 %v4602_v12 }
 0x34e   : > { %4341 = vmatprep.subr.bf16.mxu0 %v4864_v54  ;;  %4360 = vmatpush3.bf16.msra.mxu1 %v4605_v51 }
 0x34f   : > { %4361 = vmatprep.subr.bf16.mxu1 %v4864_v54 }
 0x351   : > { %4342 = vmatpush3.bf16.msra.mxu0 %v4604_v0 }
 0x352   : > { %4343 = vmatprep.subr.bf16.mxu0 %v4864_v54  ;;  %4362 = vmatpush3.bf16.msra.mxu1 %v4607_v52 }
 0x353   : > { %4363 = vmatprep.subr.bf16.mxu1 %v4864_v54 }
 0x355   : > { %4344 = vmatpush3.bf16.msra.mxu0 %v4606_v28 }
 0x356   : > { %4345 = vmatprep.subr.bf16.mxu0 %v4864_v54  ;;  %4364 = vmatpush3.bf16.msra.mxu1 %v4609_v59 }
 0x357   : > { %4365 = vmatprep.subr.bf16.mxu1 %v4864_v54 }
 0x359   : > { %4346 = vmatpush3.bf16.msra.mxu0 %v4608_v58 }
 0x35a   : > { %4347 = vmatprep.subr.bf16.mxu0 %v4864_v54  ;;  %4366 = vmatpush3.bf16.msra.mxu1 %v4611_v6 }
 0x35b   : > { %4367 = vmatprep.subr.bf16.mxu1 %v4864_v54 }
 0x35d   : > { %4348 = vmatpush3.bf16.msra.mxu0 %v4610_v10 }
 0x35e   : > { %4373 = vmatprep.subr.bf16.mxu0 %v4864_v54  ;;  %4368 = vmatpush3.bf16.msra.mxu1 %v4612_v22 }
 0x35f   : > { %4393 = vmatprep.subr.bf16.mxu1 %v4864_v54 }
 0x3bf   : > { %v3620_v13 = vpop.permute.xlu0 %3619 }
 0x3c0   : > { %4629 = vrcp.f32 %v3620_v13 }
 0x3c3   : > { %v3612_v25 = vpop.permute.xlu0 %3611 }
 0x3c4   : > { %4631 = vrcp.f32 %v3612_v25 }
 0x3cd   : > { %v4630_v43 = vpop.eup %4629 }
 0x3ce   : > { %v3623_v14 = vmul.f32 %v4630_v43, %v3616_v24 }
 0x3d0   : > { %v3641_v33 = vpack.c.bf16 %v3623_v14, %v3623_v14 }
 0x3d1   : > { %v4632_v27 = vpop.eup %4631 }
 0x3d2   : > { %4350 = vmatmul.mubr.bf16.vlgmr.msra.gmra.mxu0 %v3641_v33  ;;  %v3615_v40 = vmul.f32 %v4632_v27, %v3608_v3 }
 0x3d3   : > { %4374 = vmatpush3.bf16.msra.mxu0 %v4613_v35  ;;  %4389 = vmatprep.mubr.msk.bf16.mxu0 %vm4865_vm1, %v4864_v54 }
 0x3d4   : > { %4375 = vmatprep.subr.bf16.mxu0 %v4864_v54  ;;  %v3624_v9 = vpack.c.bf16 %v3615_v40, %v3615_v40  ;;  %v3835_v46 = vsub.f32 %v3615_v40, %v3623_v14  ;;  %v3944_v32 = vmul.f32 %v3623_v14, %v3615_v40 }
 0x3d6   : > { %4370 = vmatmul.mubr.bf16.vlgmr.msra.gmra.mxu1 %v3624_v9  ;;  %v3836_v4 = vand.u32 2147483647, %v3835_v46  ;;  %v3945_v38 = vpack.c.bf16 %v3944_v32, %v3944_v32 }
 0x3d7   : > { %4376 = vmatpush3.bf16.msra.mxu0 %v4614_v50  ;;  %4394 = vmatpush3.bf16.msra.mxu1 %v4615_v34 }
 0x3d8   : > { %4377 = vmatprep.subr.bf16.mxu0 %v4864_v54  ;;  %4395 = vmatprep.subr.bf16.mxu1 %v4864_v54  ;;  %v3837_v5 = vpack.c.bf16 %v3836_v4, %v3836_v4 }
 0x3d9   : > { %4409 = vmatprep.mubr.msk.bf16.mxu1 %vm4865_vm1, %v4864_v54 }
 0x3db   : > { %4378 = vmatpush3.bf16.msra.mxu0 %v4616_v30  ;;  %4396 = vmatpush3.bf16.msra.mxu1 %v4617_v41 }
 0x3dc   : > { %4379 = vmatprep.subr.bf16.mxu0 %v4864_v54  ;;  %4397 = vmatprep.subr.bf16.mxu1 %v4864_v54 }
 0x3df   : > { %4380 = vmatpush3.bf16.msra.mxu0 %v4618_v62  ;;  %4398 = vmatpush3.bf16.msra.mxu1 %v4619_v45 }
 0x3e0   : > { %4381 = vmatprep.subr.bf16.mxu0 %v4864_v54  ;;  %4399 = vmatprep.subr.bf16.mxu1 %v4864_v54 }
 0x3e3   : > { %4382 = vmatpush3.bf16.msra.mxu0 %v4620_v19  ;;  %4400 = vmatpush3.bf16.msra.mxu1 %v4621_v47 }
 0x3e4   : > { %4383 = vmatprep.subr.bf16.mxu0 %v4864_v54  ;;  %4401 = vmatprep.subr.bf16.mxu1 %v4864_v54 }
 0x3e7   : > { %4384 = vmatpush3.bf16.msra.mxu0 %v4622_v2  ;;  %4402 = vmatpush3.bf16.msra.mxu1 %v4623_v17 }
 0x3e8   : > { %4385 = vmatprep.subr.bf16.mxu0 %v4864_v54  ;;  %4403 = vmatprep.subr.bf16.mxu1 %v4864_v54 }
 0x3eb   : > { %4386 = vmatpush3.bf16.msra.mxu0 %v4624_v39  ;;  %4404 = vmatpush3.bf16.msra.mxu1 %v4625_v1 }
 0x3ec   : > { %4387 = vmatprep.subr.bf16.mxu0 %v4864_v54  ;;  %4405 = vmatprep.subr.bf16.mxu1 %v4864_v54 }
 0x3ef   : > { %4388 = vmatpush3.bf16.msra.mxu0 %v4626_v49  ;;  %4406 = vmatpush3.bf16.msra.mxu1 %v4627_v42 }
 0x3f0   : > { %4407 = vmatprep.subr.bf16.mxu1 %v4864_v54  ;;  %v4291_v54 = vld [vmem:[#allocation10] ss:$0 sm:$0xff] }
 0x3f2   : > { %4390 = vmatmul.mubr.bf16.vlgmr.msra.gmra.mxu0 %v3837_v5 }
 0x3f3   : > { %4408 = vmatpush3.bf16.msra.mxu1 %v4628_v55 }
 0x3f6   : > { %4410 = vmatmul.mubr.bf16.vlgmr.msra.gmra.mxu1 %v3945_v38 }
 0x492   : > { %v3741_v48 = vpop.f32.mrf.mxu0 }
 0x494   : > { %v4351_v16 = vpop.f32.mrf.mxu0 }
 0x496   : > { %v3744_v61 = vpop.f32.mrf.mxu0  ;;  %v3829_v26 = vpop.f32.mrf.mxu1 }
 0x497   : > { %v3830_v7 = vadd.f32 %v3829_v26, %v3741_v48 }
 0x498   : > { %v4352_v36 = vpop.f32.mrf.mxu0  ;;  %v4371_v44 = vpop.f32.mrf.mxu1 }
 0x49a   : > { %v3832_v29 = vpop.f32.mrf.mxu1 }
 0x49c   : > { %v4372_v60 = vpop.f32.mrf.mxu1 }
 0x4b2   : > { %v3937_v20 = vpop.f32.mrf.mxu0 }
 0x4b3   : > { %v3943_v63 = vadd.f32 %v3937_v20, %v3830_v7 }
 0x4b4   : > { %v4391_v23 = vpop.f32.mrf.mxu0 }
 0x4b6   : > { %v3940_v18 = vpop.f32.mrf.mxu0  ;;  %v4045_v57 = vpop.f32.mrf.mxu1 }
 0x4b7   : > { %v4051_v11 = vadd.f32 %v4045_v57, %v3943_v63 }
 0x4b8   : > { %v4392_v31 = vpop.f32.mrf.mxu0  ;;  %v4411_v37 = vpop.f32.mrf.mxu1 }
 0x4b9   : > { %v4059_v8 = vadd.f32 %v4291_v54, %v4051_v11 }
 0x4ba   : > { %v4048_v56 = vpop.f32.mrf.mxu1 }
 0x4bb   : > { %4060 = vst [vmem:[%s437_s30] sm:$0xff] %v4059_v8 }
 0x4bc   : > { %v4412_v21 = vpop.f32.mrf.mxu1 }
 0x4bd PF: > { %s9747_s16 = sld [smem:[#allocation26_spill]]  ;;  %s4075_s14 = sshll.u32 %s437_s30, 4  ;;  %s4076_s14 = int_to_ptr.vmem [resolvable:$true] %s4075_s14 }
 0x4be   : > { %s9748_s17 = sld [smem:[#allocation81_spill]]  ;;  %s4062_s20 = scalar_lea.sflag [#allocation6], %s435_s24 }
 0x4bf   : > { %s4686_s0 = scalar_lea.vmem %s4076_s14, 128  ;;  %p9749_p7 = scmp.ne.s32.totalorder %s9207_s13, 0 }
 0x4c0   : > { %p4687_p8 = scmp.ne.s32.totalorder %s4076_s14, %s4686_s0  ;;  %s4866_s27 = smov [#allocation12]  }
 0x4c1   : > { %s4690_s4 = sshll.u32 %s4866_s27, 4  ;;  %s4691_s4 = int_to_ptr.vmem [resolvable:$false] %s4690_s4 }
 0x4c2   : > { %p4688_p9 = pnand %p4687_p8, %p9749_p7  ;;  %s4692_s23 = scalar_lea.vmem %s4691_s4, 256 }
 0x4c3   : > { %s4293_s5 = sshll.u32 %s9747_s16, 7  ;;  %p4693_p10 = scmp.lt.s32.totalorder %s4076_s14, %s4691_s4 }
 0x4c4   : > { %s4073_s19 = scalar_lea.hbm %s9748_s17, %s4293_s5  ;;  %p4689_p2 = pneg %p4688_p9 }
 0x4c5   : > { %p4694_p3 = scmp.lt.s32.totalorder %s4692_s23, %s4686_s0 }
 0x4c7   : > { %p4695_p6 = por %p4694_p3, %p4693_p10 }
 0x4c9   : > { %p4696_p11 = pnand %p4695_p6, %p4689_p2 }
 0x4cb   : > { %4699 = shalt.err (!%p4696_p11)
}
 0x4cc   : > { %s4700_s11 = scalar_lea.hbm %s4073_s19, 128  ;;  %s4704_s6 = scalar_lea.hbm %s9748_s17, 256 }
 0x4cd   : > { %p4701_p0 = scmp.ne.s32.totalorder %s4073_s19, %s4700_s11  ;;  %p4705_p4 = scmp.lt.s32.totalorder %s4073_s19, %s9748_s17 }
 0x4ce   : > { %p4706_p13 = scmp.lt.s32.totalorder %s4704_s6, %s4700_s11 }
 0x4cf   : > { %p4702_p12 = pnand %p4701_p0, %p9749_p7 }
 0x4d0   : > { %p4707_p5 = por %p4706_p13, %p4705_p4 }
 0x4d1   : > { %p4703_p1 = pneg %p4702_p12 }
 0x4d3   : > { %p4708_p8 = pnand %p4707_p5, %p4703_p1 }
 0x4d5   : > { %4711 = shalt.err (!%p4708_p8)
}
 0x4d6   : > { %4439 = dma.vmem_to_hbm [thread:$0]  (%p9749_p7), %s4076_s14, 128, %s4073_s19, %s4062_s20  }
 0x4d7 PF: > { %s9750_s2 = sld [smem:[#allocation33_spill]]  ;;  %p4456_p9 = scmp.ge.s32.totalorder %s4842_s10, 2 }
 0x4d8   : > { %s4087_s9 = sand.u32 1, %s4790_s21  }
 0x4d9   : > { %s4088_s7 = scalar_lea.sflag [#allocation6], %s4087_s9 }
 0x4dd   : > { %p9751_p2 = scmp.ne.s32.totalorder %s9750_s2, 0 }
 0x4df   : > { %p4449_p10 = pnand %p4456_p9, %p9751_p2 }
 0x4e1   : > { %p4450_p3 = pneg %p4449_p10 }
 0x4e3   : > { %4785 = dma.done.wait (%p4450_p3), %s4088_s7, 128  }
 0x4e4   : > { %4787 = vsyncadd (%p4450_p3), %s4088_s7, 4294967168  ;;  %s26_s10 = sadd.s32 1, %s4842_s10   ;;  %s9753_s13 = sld [smem:[#allocation24_spill]] }
 0x4e5   : > { %p9047_p6 = scmp.ge.s32.totalorder %s26_s10, 6   ;;  %s9754_s23 = sld [smem:[#allocation32_spill]] }
 0x4e6   : > { %s9755_s5 = sld [smem:[#allocation31_spill]]  ;;  %s9760_s21 = smov %s4794_s22 }
 0x4e7   : > { %s9756_s18 = sld [smem:[#allocation30_spill]]  ;;  %s9762_s24 = smov %s4806_s25 }
 0x4e8   : > { %s9757_s7 = sld [smem:[#allocation27_spill]]  ;;  %s9763_s25 = smov %s4810_s26 }
 0x4e9   : > { %s9758_s15 = sld [smem:[#allocation28_spill]]  ;;  %s9765_s27 = smov %s4818_s28 }
 0x4ea   : > { %s9759_s9 = sld [smem:[#allocation29_spill]]  ;;  %s9761_s22 = smov %s9753_s13 }
 0x4eb   : > { %s9766_s28 = smov %s4822_s29  ;;  %s9768_s30 = smov %s4834_s8 }
 0x4ec   : > { %s9764_s26 = smov %s9755_s5  ;;  %25 = sbr.rel (!%p9047_p6) target bundleno = 20 (0x14), region = 137 }
 0x4ed   : > { %s9767_s29 = smov %s9756_s18 }
 0x4ef   : > { %s9769_s8 = smov %s9758_s15 }
 0x4f1   :  { %4093 = vsyncpa [#allocation5], 1 }
 0x4f2   :  { %4095 = vsyncpa [#allocation5 + $0x1], 1 }
 0x4f3   :  { %4096 = vsyncpa [#allocation8], 1 }
 0x4f4   :  { %4098 = vsyncpa [#allocation8 + $0x1], 1 }
 0x4f5   :  { %4099 = vsyncpa [#allocation11], 1 }
 0x4f6   :  { %4100 = vsyncpa [#allocation6], 1 }
 0x4f7   :  { %4102 = vsyncpa [#allocation6 + $0x1], 1 }

</bundles_post_ra>
